<compile_context>
chip_gen: v5e
topology: v5e:2x2
jax: 0.10.0
libtpu: 0.0.40
codegen_flags: <defaults>
</compile_context>

<pallas_src>
import jax
import jax.numpy as jnp
from jax.experimental import pallas as pl
from jax.experimental.pallas import tpu as pltpu

IMG_SIZE = 28 * 28           # 784
K1_PAD = 896                 # 7 * 128, zero-padded contraction dim for layer 1
H1, H2, H3 = 1024, 512, 256
TM_TARGET = 256              # batch tile: fills v6e/v7x MXU rows, fine on v5e


def _round_up(x, m):
    return (x + m - 1) // m * m


def _leaky_relu(x, slope=0.2):
    return jnp.where(x > 0, x, slope * x)


def mlp_kernel(x_ref, w1_ref, w2_ref, w3_ref, w4_ref, b4_ref, out_ref):
    # x:  (TM, 896) bf16     w1: (896, 1024) bf16   w2: (1024, 512) bf16
    # w3: (512, 256) bf16    w4: (1, 256)   bf16    b4: (1,) f32 in SMEM
    # out: (TM, 1) f32
    h = jnp.dot(x_ref[...], w1_ref[...], preferred_element_type=jnp.float32)
    h = _leaky_relu(h)
    # Dropout(p=0.3) -> identity (eval mode)
    h = jnp.dot(h.astype(jnp.bfloat16), w2_ref[...],
                preferred_element_type=jnp.float32)
    h = _leaky_relu(h)
    h = jnp.dot(h.astype(jnp.bfloat16), w3_ref[...],
                preferred_element_type=jnp.float32)
    h = _leaky_relu(h)
    # Final N=1 layer: VPU multiply + XLU lane-reduction instead of a 1-column
    # MXU matmul; bias read as an SMEM scalar.
    w4_row = w4_ref[...].astype(jnp.float32)                  # (1, 256)
    logits = jnp.sum(h * w4_row, axis=-1, keepdims=True) + b4_ref[0]
    # Numerically stable sigmoid; exp and approx reciprocal both go to the EUP.
    z = jnp.exp(-jnp.abs(logits))
    pos = pl.reciprocal(1.0 + z, approx=True)                 # sigmoid(|logits|)
    out_ref[...] = jnp.where(logits >= 0, pos, z * pos)


def dcgan_discriminator_mnist(img, params):
    """img: (B, 1, 28, 28) float32, NCHW.  Returns (B, 1) float32."""
    b = img.shape[0]
    w1, w2, w3, w4, b4 = params

    x = img.reshape(b, -1).astype(jnp.bfloat16)               # same as torch .view(B, -1)

    # Pad batch to a multiple of the batch tile and the contraction dim to 896.
    b_pad = max(_round_up(b, 8), 8)
    if b_pad > TM_TARGET:
        tm = TM_TARGET
        b_pad = _round_up(b_pad, tm)
    else:
        tm = b_pad
    x = jnp.pad(x, ((0, b_pad - b), (0, K1_PAD - x.shape[1])))

    grid = (b_pad // tm,)

    out = pl.pallas_call(
        mlp_kernel,
        out_shape=jax.ShapeDtypeStruct((b_pad, 1), jnp.float32),
        grid=grid,
        in_specs=[
            pl.BlockSpec((tm, K1_PAD), lambda i: (i, 0)),        # x: batch-tiled
            pl.BlockSpec((K1_PAD, H1), lambda i: (0, 0)),        # weights: VMEM-resident
            pl.BlockSpec((H1, H2), lambda i: (0, 0)),
            pl.BlockSpec((H2, H3), lambda i: (0, 0)),
            pl.BlockSpec((1, H3), lambda i: (0, 0)),
            pl.BlockSpec(memory_space=pltpu.MemorySpace.SMEM),   # fc4 bias scalar
        ],
        out_specs=pl.BlockSpec((tm, 1), lambda i: (i, 0)),
        compiler_params=pltpu.CompilerParams(
            dimension_semantics=("parallel",),
            vmem_limit_bytes=64 << 20),
    )(x, w1, w2, w3, w4, b4)
    return out[:b]


def init_params(key):
    """Deterministic synthetic weights, stored pre-transposed ((in, out)) so the
    kernel does plain x @ W.  Weights are bf16; fc1..fc3 have no bias
    (use_bias=False); fc4's bias is a (1,) f32 scalar.  w1 is zero-padded to
    the 896-row padded contraction dim (zero rows match the zero-padded x cols)."""
    k1, k2, k3, k4, k5 = jax.random.split(key, 5)
    w1 = jax.random.normal(k1, (IMG_SIZE, H1), jnp.float32) * 0.02
    w1 = jnp.pad(w1, ((0, K1_PAD - IMG_SIZE), (0, 0)))
    w2 = jax.random.normal(k2, (H1, H2), jnp.float32) * 0.02
    w3 = jax.random.normal(k3, (H2, H3), jnp.float32) * 0.02
    w4 = jax.random.normal(k4, (1, H3), jnp.float32) * 0.02    # row vector
    b4 = jax.random.normal(k5, (1,), jnp.float32) * 0.02
    return (w1.astype(jnp.bfloat16), w2.astype(jnp.bfloat16),
            w3.astype(jnp.bfloat16), w4.astype(jnp.bfloat16), b4)


def _ref_forward(img, params):
    """Pure-JAX reference mirroring the kernel's bf16 numerics (eval-mode dropout)."""
    b = img.shape[0]
    w1, w2, w3, w4, b4 = [p.astype(jnp.float32) for p in params]
    x = img.reshape(b, -1).astype(jnp.bfloat16).astype(jnp.float32)
    x = jnp.pad(x, ((0, 0), (0, K1_PAD - x.shape[1])))
    h = _leaky_relu(x @ w1)
    h = _leaky_relu(h.astype(jnp.bfloat16).astype(jnp.float32) @ w2)
    h = _leaky_relu(h.astype(jnp.bfloat16).astype(jnp.float32) @ w3)
    logits = jnp.sum(h * w4, axis=-1, keepdims=True) + b4
    return jax.nn.sigmoid(logits)


if __name__ == "__main__":
    key = jax.random.PRNGKey(0)
    pkey, xkey = jax.random.split(key)
    params = init_params(pkey)

    batch = 2
    img = jax.random.normal(xkey, (batch, 1, 28, 28), jnp.float32)

    out = dcgan_discriminator_mnist(img, params)
    out = jax.block_until_ready(out)

    ref = _ref_forward(img, params)
    assert out.shape == (batch, 1)
    assert jnp.allclose(out, ref, atol=2e-3, rtol=2e-3), (out, ref)

    print("KERNEL_OK")
</pallas_src>

<mosaic_0001>
module attributes {stable_mosaic.version = 11 : i64} {
  func.func @mlp_kernel(%arg0: i32, %arg1: memref<8x896xbf16, #tpu.memory_space<vmem>>, %arg2: memref<896x1024xbf16, #tpu.memory_space<vmem>>, %arg3: memref<1024x512xbf16, #tpu.memory_space<vmem>>, %arg4: memref<512x256xbf16, #tpu.memory_space<vmem>>, %arg5: memref<1x256xbf16, #tpu.memory_space<vmem>>, %arg6: memref<1xf32, #tpu.memory_space<smem>>, %arg7: memref<8x1xf32, #tpu.memory_space<vmem>>) attributes {dimension_semantics = [#tpu.dimension_semantics<parallel>], iteration_bounds = array<i64: 1>, scalar_prefetch = 0 : i64, scratch_operands = 0 : i64, tpu.core_type = #tpu.core_type<tc>, window_params = [{transform_indices = @transform_0, window_bounds = array<i64: 8, 896>}, {pipeline_mode = #tpu.pipeline_mode<synchronous>, transform_indices = @transform_1, window_bounds = array<i64: 896, 1024>}, {pipeline_mode = #tpu.pipeline_mode<synchronous>, transform_indices = @transform_2, window_bounds = array<i64: 1024, 512>}, {pipeline_mode = #tpu.pipeline_mode<synchronous>, transform_indices = @transform_3, window_bounds = array<i64: 512, 256>}, {pipeline_mode = #tpu.pipeline_mode<synchronous>, transform_indices = @transform_4, window_bounds = array<i64: 1, 256>}, {transform_indices = @transform_5, window_bounds = array<i64: 1>}, {transform_indices = @transform_6, window_bounds = array<i64: 8, 1>}]} {
    %c0 = arith.constant 0 : index
    %c0_0 = arith.constant 0 : index
    %0 = vector.load %arg1[%c0, %c0_0] : memref<8x896xbf16, #tpu.memory_space<vmem>>, vector<8x896xbf16>
    %c0_1 = arith.constant 0 : index
    %c0_2 = arith.constant 0 : index
    %1 = vector.load %arg2[%c0_1, %c0_2] : memref<896x1024xbf16, #tpu.memory_space<vmem>>, vector<896x1024xbf16>
    %cst = arith.constant dense<0.000000e+00> : vector<8x1024xf32>
    %2 = tpu.matmul %0, %1, %cst {dimension_numbers = #tpu.dot_dimension_numbers<[1], [0], [0], [1], [0, 0, 1, 1], [], []>} : vector<8x896xbf16>, vector<896x1024xbf16>, vector<8x1024xf32> -> vector<8x1024xf32>
    %cst_3 = arith.constant 0.000000e+00 : f32
    %3 = vector.broadcast %cst_3 : f32 to vector<8x1024xf32>
    %4 = arith.cmpf ogt, %2, %3 : vector<8x1024xf32>
    %cst_4 = arith.constant 2.000000e-01 : f32
    %5 = vector.broadcast %cst_4 : f32 to vector<8x1024xf32>
    %6 = arith.mulf %5, %2 : vector<8x1024xf32>
    %7 = arith.select %4, %2, %6 : vector<8x1024xi1>, vector<8x1024xf32>
    %8 = arith.truncf %7 : vector<8x1024xf32> to vector<8x1024xbf16>
    %c0_5 = arith.constant 0 : index
    %c0_6 = arith.constant 0 : index
    %9 = vector.load %arg3[%c0_5, %c0_6] : memref<1024x512xbf16, #tpu.memory_space<vmem>>, vector<1024x512xbf16>
    %cst_7 = arith.constant dense<0.000000e+00> : vector<8x512xf32>
    %10 = tpu.matmul %8, %9, %cst_7 {dimension_numbers = #tpu.dot_dimension_numbers<[1], [0], [0], [1], [0, 0, 1, 1], [], []>} : vector<8x1024xbf16>, vector<1024x512xbf16>, vector<8x512xf32> -> vector<8x512xf32>
    %cst_8 = arith.constant 0.000000e+00 : f32
    %11 = vector.broadcast %cst_8 : f32 to vector<8x512xf32>
    %12 = arith.cmpf ogt, %10, %11 : vector<8x512xf32>
    %cst_9 = arith.constant 2.000000e-01 : f32
    %13 = vector.broadcast %cst_9 : f32 to vector<8x512xf32>
    %14 = arith.mulf %13, %10 : vector<8x512xf32>
    %15 = arith.select %12, %10, %14 : vector<8x512xi1>, vector<8x512xf32>
    %16 = arith.truncf %15 : vector<8x512xf32> to vector<8x512xbf16>
    %c0_10 = arith.constant 0 : index
    %c0_11 = arith.constant 0 : index
    %17 = vector.load %arg4[%c0_10, %c0_11] : memref<512x256xbf16, #tpu.memory_space<vmem>>, vector<512x256xbf16>
    %cst_12 = arith.constant dense<0.000000e+00> : vector<8x256xf32>
    %18 = tpu.matmul %16, %17, %cst_12 {dimension_numbers = #tpu.dot_dimension_numbers<[1], [0], [0], [1], [0, 0, 1, 1], [], []>} : vector<8x512xbf16>, vector<512x256xbf16>, vector<8x256xf32> -> vector<8x256xf32>
    %cst_13 = arith.constant 0.000000e+00 : f32
    %19 = vector.broadcast %cst_13 : f32 to vector<8x256xf32>
    %20 = arith.cmpf ogt, %18, %19 : vector<8x256xf32>
    %cst_14 = arith.constant 2.000000e-01 : f32
    %21 = vector.broadcast %cst_14 : f32 to vector<8x256xf32>
    %22 = arith.mulf %21, %18 : vector<8x256xf32>
    %23 = arith.select %20, %18, %22 : vector<8x256xi1>, vector<8x256xf32>
    %c0_15 = arith.constant 0 : index
    %c0_16 = arith.constant 0 : index
    %24 = vector.load %arg5[%c0_15, %c0_16] : memref<1x256xbf16, #tpu.memory_space<vmem>>, vector<1x256xbf16>
    %25 = arith.extf %24 : vector<1x256xbf16> to vector<1x256xf32>
    %26 = vector.broadcast %25 : vector<1x256xf32> to vector<8x256xf32>
    %27 = arith.mulf %23, %26 : vector<8x256xf32>
    %cst_17 = arith.constant dense<0.000000e+00> : vector<8xf32>
    %28 = vector.multi_reduction <add>, %27, %cst_17 [1] : vector<8x256xf32> to vector<8xf32>
    %29 = vector.shape_cast %28 : vector<8xf32> to vector<8x1xf32>
    %c0_18 = arith.constant 0 : index
    %30 = memref.load %arg6[%c0_18] : memref<1xf32, #tpu.memory_space<smem>>
    %31 = vector.broadcast %30 : f32 to vector<8x1xf32>
    %32 = arith.addf %29, %31 : vector<8x1xf32>
    %33 = math.absf %32 : vector<8x1xf32>
    %cst_19 = arith.constant 0.000000e+00 : f32
    %34 = vector.broadcast %cst_19 : f32 to vector<8x1xf32>
    %35 = arith.subf %34, %33 : vector<8x1xf32>
    %36 = math.exp %35 : vector<8x1xf32>
    %cst_20 = arith.constant 1.000000e+00 : f32
    %37 = vector.broadcast %cst_20 : f32 to vector<8x1xf32>
    %38 = arith.addf %37, %36 : vector<8x1xf32>
    %39 = tpu.reciprocal %38 {approx = true} : vector<8x1xf32> -> vector<8x1xf32>
    %cst_21 = arith.constant 0.000000e+00 : f32
    %40 = vector.broadcast %cst_21 : f32 to vector<8x1xf32>
    %41 = arith.cmpf oge, %32, %40 : vector<8x1xf32>
    %42 = arith.mulf %36, %39 : vector<8x1xf32>
    %43 = arith.select %41, %39, %42 : vector<8x1xi1>, vector<8x1xf32>
    %c0_22 = arith.constant 0 : index
    %c0_23 = arith.constant 0 : index
    %44 = vector.load %arg7[%c0_22, %c0_23] : memref<8x1xf32, #tpu.memory_space<vmem>>, vector<8x1xf32>
    tpu.vector_store %arg7[%c0_22, %c0_23], %43 {strides = array<i32>} : memref<8x1xf32, #tpu.memory_space<vmem>>, vector<8x1xf32>,
    return
  }
  func.func @transform_0(%arg0: i32) -> (i32, i32) {
    %c0_i32 = arith.constant 0 : i32
    %c0_i32_0 = arith.constant 0 : i32
    return %arg0, %c0_i32 : i32, i32
  }
  func.func @transform_1(%arg0: i32) -> (i32, i32) {
    %c0_i32 = arith.constant 0 : i32
    %c0_i32_0 = arith.constant 0 : i32
    %c0_i32_1 = arith.constant 0 : i32
    return %c0_i32, %c0_i32_0 : i32, i32
  }
  func.func @transform_2(%arg0: i32) -> (i32, i32) {
    %c0_i32 = arith.constant 0 : i32
    %c0_i32_0 = arith.constant 0 : i32
    %c0_i32_1 = arith.constant 0 : i32
    return %c0_i32, %c0_i32_0 : i32, i32
  }
  func.func @transform_3(%arg0: i32) -> (i32, i32) {
    %c0_i32 = arith.constant 0 : i32
    %c0_i32_0 = arith.constant 0 : i32
    %c0_i32_1 = arith.constant 0 : i32
    return %c0_i32, %c0_i32_0 : i32, i32
  }
  func.func @transform_4(%arg0: i32) -> (i32, i32) {
    %c0_i32 = arith.constant 0 : i32
    %c0_i32_0 = arith.constant 0 : i32
    %c0_i32_1 = arith.constant 0 : i32
    return %c0_i32, %c0_i32_0 : i32, i32
  }
  func.func @transform_5(%arg0: i32) -> i32 {
    %c0_i32 = arith.constant 0 : i32
    %c0_i32_0 = arith.constant 0 : i32
    return %c0_i32 : i32
  }
  func.func @transform_6(%arg0: i32) -> (i32, i32) {
    %c0_i32 = arith.constant 0 : i32
    %c0_i32_0 = arith.constant 0 : i32
    return %arg0, %c0_i32 : i32, i32
  }
}

</mosaic_0001>

<bundles_post_ra>
// kernel: tpu_custom_call.1
= control target key start
LH: loop header
LB: loop body
LE: loop exit
PB: predicated region body
PF: predicated region fallthrough
CT: control target
= control target key end

     0   :  { %12 = vsyncpa [#allocation4], 0  ;;  %s10385_s0 = inlined_call_operand.hbm [shape: bf16[8,896], index: 0, kind: input, shape index: {}]   ;;  %s10386_s1 = inlined_call_operand.hbm [shape: bf16[896,1024], index: 1, kind: input, shape index: {}]   ;;  %s10387_s2 = inlined_call_operand.hbm [shape: bf16[1024,512], index: 2, kind: input, shape index: {}]   ;;  %s10388_s3 = inlined_call_operand.hbm [shape: bf16[512,256], index: 3, kind: input, shape index: {}]   ;;  %s10389_s4 = inlined_call_operand.hbm [shape: bf16[1,256], index: 4, kind: input, shape index: {}]   ;;  %s10390_s5 = inlined_call_operand.<no memory space> [shape: f32[1], index: 5, kind: input, shape index: {}]   ;;  %s10391_s6 = inlined_call_operand.vmem [shape: f32[8,1], index: 6, kind: output, shape index: {}]  }
   0x1   :  { %13 = vsyncpa [#allocation6], 0  ;;  %s30_s23 = sshll.u32 %s10386_s1, 4  ;;  %s31_s23 = int_to_ptr.hbm [resolvable:$true] %s30_s23 }
   0x2   :  { %14 = vsyncpa [#allocation9], 0  ;;  %s10053_s24 = smov [#allocation5]   ;;  %s56_s28 = sshll.u32 %s10388_s3, 4  ;;  %s57_s28 = int_to_ptr.hbm [resolvable:$true] %s56_s28 }
   0x3   :  { %s32_s25 = sshll.u32 %s10053_s24, 4  ;;  %s10054_s29 = smov 512   ;;  %s33_s25 = int_to_ptr.vmem [resolvable:$true] %s32_s25 }
   0x4   :  { %s10055_s30 = smov 32   ;;  %s10056_s7 = smov [#allocation8]  }
   0x5   :  { %38 = dma.hbm_to_vmem [thread:$0]  %s31_s23, 57344, %s33_s25, [#allocation6], %s10054_s29, %s10054_s29, %s10055_s30  }
   0x6   :  { %s58_s8 = sshll.u32 %s10056_s7, 4  ;;  %s10057_s9 = smov 128   ;;  %s59_s8 = int_to_ptr.vmem [resolvable:$true] %s58_s8 }
   0x7   :  { %s10058_s10 = smov 8   ;;  %s20_s12 = sshll.u32 %s10385_s0, 4  ;;  %s21_s12 = int_to_ptr.hbm [resolvable:$true] %s20_s12 }
   0x8   :  { %64 = dma.hbm_to_vmem [thread:$0]  %s57_s28, 8192, %s59_s8, [#allocation9], %s10057_s9, %s10057_s9, %s10058_s10  }
   0x9   :  { %s10059_s13 = smov [#allocation3]   ;;  %s43_s16 = sshll.u32 %s10387_s2, 4  ;;  %s44_s16 = int_to_ptr.hbm [resolvable:$true] %s43_s16 }
   0xa   :  { %s22_s14 = sshll.u32 %s10059_s13, 4  ;;  %s10060_s17 = smov [#allocation7]   ;;  %s23_s14 = int_to_ptr.vmem [resolvable:$true] %s22_s14 }
   0xb   :  { %25 = dma.hbm_to_vmem [thread:$0]  %s21_s12, 448, %s23_s14, [#allocation4]  }
   0xc   :  { %s45_s18 = sshll.u32 %s10060_s17, 4  ;;  %s10061_s19 = smov 256   ;;  %s46_s18 = int_to_ptr.vmem [resolvable:$true] %s45_s18 }
   0xd   :  { %s10062_s20 = smov 16   ;;  %s70_s0 = sshll.u32 %s10389_s4, 4  ;;  %s71_s0 = int_to_ptr.hbm [resolvable:$true] %s70_s0 }
   0xe   :  { %51 = dma.hbm_to_vmem [thread:$0]  %s44_s16, 32768, %s46_s18, [#allocation6], %s10061_s19, %s10061_s19, %s10062_s20  }
   0xf   :  { %s10063_s23 = smov [#allocation10]  }
  0x10   :  { %s72_s24 = sshll.u32 %s10063_s23, 4  ;;  %s73_s24 = int_to_ptr.vmem [resolvable:$true] %s72_s24 }
  0x11   :  { %75 = dma.hbm_to_vmem [thread:$0]  %s71_s0, 32, %s73_s24, [#allocation9]  }
  0x12   :  { %10047 = dma.done.wait [#allocation4], 448  }
  0x13   :  { %10048 = vsyncadd [#allocation4], 4294966848 }
  0x14   :  { %10049 = dma.done.wait [#allocation6], 90112  }
  0x15   :  { %10050 = vsyncadd [#allocation6], 4294877184 }
  0x16   :  { %10051 = dma.done.wait [#allocation9], 8224  }
  0x17   :  { %10052 = vsyncadd [#allocation9], 4294959072  ;;  %v6298_v0 = vld [vmem:[#allocation5 + $0x1c0] sm:$0xf]  ;;  %vm6063_vm14 = vcmask 7168  }
  0x18   :  { %v9204_v1 = vld [vmem:[#allocation5 + $0x1dc] sm:$0xf0] }
  0x19   :  { %v6554_v2 = vld [vmem:[#allocation5 + $0x3c0] sm:$0xf]  ;;  %v6299_v3 = vor.u32 %v9204_v1, %v6298_v0 }
  0x1a   :  { %v9268_v4 = vld [vmem:[#allocation5 + $0x3dc] sm:$0xf0] }
  0x1b   :  { %v6810_v5 = vld [vmem:[#allocation5 + $0x5c0] sm:$0xf]  ;;  %v6555_v7 = vor.u32 %v9268_v4, %v6554_v2  ;;  %2815 = vmatpush.bf16.msra.mxu0 %v6299_v3 }
  0x1c   :  { %v9332_v6 = vld [vmem:[#allocation5 + $0x5dc] sm:$0xf0] }
  0x1d   :  { %v6811_v8 = vor.u32 %v9332_v6, %v6810_v5  ;;  %v7066_v9 = vld [vmem:[#allocation5 + $0x7c0] sm:$0xf]  ;;  %2828 = vmatpush.bf16.msra.mxu1 %v6555_v7 }
  0x1e   :  { %v9396_v10 = vld [vmem:[#allocation5 + $0x7dc] sm:$0xf0] }
  0x1f   :  { %v6266_v11 = vld [vmem:[#allocation5 + $0x180] sm:$0xf]  ;;  %v7067_v12 = vor.u32 %v9396_v10, %v7066_v9  ;;  %2841 = vmatpush.bf16.msra.mxu2 %v6811_v8 }
  0x20   :  { %v9196_v13 = vld [vmem:[#allocation5 + $0x19c] sm:$0xf0] }
  0x21   :  { %v6522_v14 = vld [vmem:[#allocation5 + $0x380] sm:$0xf]  ;;  %v6267_v16 = vor.u32 %v9196_v13, %v6266_v11  ;;  %2854 = vmatpush.bf16.msra.mxu3 %v7067_v12 }
  0x22   :  { %v9260_v15 = vld [vmem:[#allocation5 + $0x39c] sm:$0xf0] }
  0x23   :  { %v6523_v17 = vor.u32 %v9260_v15, %v6522_v14  ;;  %v6778_v18 = vld [vmem:[#allocation5 + $0x580] sm:$0xf]  ;;  %2816 = vmatpush.bf16.msra.mxu0 %v6267_v16 }
  0x24   :  { %v9324_v19 = vld [vmem:[#allocation5 + $0x59c] sm:$0xf0] }
  0x25   :  { %v7034_v20 = vld [vmem:[#allocation5 + $0x780] sm:$0xf]  ;;  %v6779_v21 = vor.u32 %v9324_v19, %v6778_v18  ;;  %2829 = vmatpush.bf16.msra.mxu1 %v6523_v17 }
  0x26   :  { %v9388_v22 = vld [vmem:[#allocation5 + $0x79c] sm:$0xf0] }
  0x27   :  { %v6234_v23 = vld [vmem:[#allocation5 + $0x140] sm:$0xf]  ;;  %v7035_v25 = vor.u32 %v9388_v22, %v7034_v20  ;;  %2842 = vmatpush.bf16.msra.mxu2 %v6779_v21 }
  0x28   :  { %v9188_v24 = vld [vmem:[#allocation5 + $0x15c] sm:$0xf0] }
  0x29   :  { %v6490_v26 = vld [vmem:[#allocation5 + $0x340] sm:$0xf]  ;;  %v6235_v29 = vor.u32 %v9188_v24, %v6234_v23  ;;  %2855 = vmatpush.bf16.msra.mxu3 %v7035_v25 }
  0x2a   :  { %v9252_v27 = vld [vmem:[#allocation5 + $0x35c] sm:$0xf0] }
  0x2b   :  { %v6746_v28 = vld [vmem:[#allocation5 + $0x540] sm:$0xf]  ;;  %v6491_v33 = vor.u32 %v9252_v27, %v6490_v26  ;;  %2817 = vmatpush.bf16.msra.mxu0 %v6235_v29 }
  0x2c   :  { %v9316_v30 = vld [vmem:[#allocation5 + $0x55c] sm:$0xf0] }
  0x2d   :  { %v7002_v31 = vld [vmem:[#allocation5 + $0x740] sm:$0xf]  ;;  %v6747_v34 = vor.u32 %v9316_v30, %v6746_v28  ;;  %2830 = vmatpush.bf16.msra.mxu1 %v6491_v33 }
  0x2e   :  { %v9380_v32 = vld [vmem:[#allocation5 + $0x75c] sm:$0xf0] }
  0x2f   :  { %v6202_v35 = vld [vmem:[#allocation5 + $0x100] sm:$0xf]  ;;  %v7003_v38 = vor.u32 %v9380_v32, %v7002_v31  ;;  %2843 = vmatpush.bf16.msra.mxu2 %v6747_v34 }
  0x30   :  { %v9180_v36 = vld [vmem:[#allocation5 + $0x11c] sm:$0xf0] }
  0x31   :  { %v6458_v37 = vld [vmem:[#allocation5 + $0x300] sm:$0xf]  ;;  %v6203_v44 = vor.u32 %v9180_v36, %v6202_v35  ;;  %2856 = vmatpush.bf16.msra.mxu3 %v7003_v38  ;;  %v6300_v38 = vld [vmem:[#allocation5 + $0x1e0] sm:$0xf0] }
  0x32   :  { %v9244_v39 = vld [vmem:[#allocation5 + $0x31c] sm:$0xf0] }
  0x33   :  { %v6714_v40 = vld [vmem:[#allocation5 + $0x500] sm:$0xf]  ;;  %v6459_v45 = vor.u32 %v9244_v39, %v6458_v37  ;;  %2818 = vmatpush.bf16.msra.mxu0 %v6203_v44  ;;  %v9200_v37 = vld [vmem:[#allocation5 + $0x1c4] sm:$0xf] }
  0x34   :  { %v9308_v41 = vld [vmem:[#allocation5 + $0x51c] sm:$0xf0] }
  0x35   :  { %v6970_v42 = vld [vmem:[#allocation5 + $0x700] sm:$0xf]  ;;  %v6715_v46 = vor.u32 %v9308_v41, %v6714_v40  ;;  %2831 = vmatpush.bf16.msra.mxu1 %v6459_v45 }
  0x36   :  { %v9372_v43 = vld [vmem:[#allocation5 + $0x71c] sm:$0xf0] }
  0x37   :  { %v6170_v47 = vld [vmem:[#allocation5 + $0xc0] sm:$0xf]  ;;  %v6971_v50 = vor.u32 %v9372_v43, %v6970_v42  ;;  %2844 = vmatpush.bf16.msra.mxu2 %v6715_v46  ;;  %v6303_v46 = vor.u32 %v9200_v37, %v6300_v38 }
  0x38   :  { %v9172_v48 = vld [vmem:[#allocation5 + $0xdc] sm:$0xf0] }
  0x39   :  { %v6426_v49 = vld [vmem:[#allocation5 + $0x2c0] sm:$0xf]  ;;  %v6171_v56 = vor.u32 %v9172_v48, %v6170_v47  ;;  %2857 = vmatpush.bf16.msra.mxu3 %v6971_v50  ;;  %v9192_v50 = vld [vmem:[#allocation5 + $0x184] sm:$0xf] }
  0x3a   :  { %v9236_v51 = vld [vmem:[#allocation5 + $0x2dc] sm:$0xf0] }
  0x3b   :  { %v6682_v52 = vld [vmem:[#allocation5 + $0x4c0] sm:$0xf]  ;;  %v6427_v57 = vor.u32 %v9236_v51, %v6426_v49  ;;  %2819 = vmatpush.bf16.msra.mxu0 %v6171_v56  ;;  %v6268_v51 = vld [vmem:[#allocation5 + $0x1a0] sm:$0xf0] }
  0x3c   :  { %v9300_v53 = vld [vmem:[#allocation5 + $0x4dc] sm:$0xf0] }
  0x3d   :  { %v6938_v54 = vld [vmem:[#allocation5 + $0x6c0] sm:$0xf]  ;;  %v6683_v58 = vor.u32 %v9300_v53, %v6682_v52  ;;  %2832 = vmatpush.bf16.msra.mxu1 %v6427_v57 }
  0x3e   :  { %v9364_v55 = vld [vmem:[#allocation5 + $0x6dc] sm:$0xf0] }
  0x3f   :  { %v6138_v59 = vld [vmem:[#allocation5 + $0x80] sm:$0xf]  ;;  %v6939_v62 = vor.u32 %v9364_v55, %v6938_v54  ;;  %2845 = vmatpush.bf16.msra.mxu2 %v6683_v58 }
  0x40   :  { %v9164_v60 = vld [vmem:[#allocation5 + $0x9c] sm:$0xf0] }
  0x41   :  { %v6394_v61 = vld [vmem:[#allocation5 + $0x280] sm:$0xf]  ;;  %v6139_v4 = vor.u32 %v9164_v60, %v6138_v59  ;;  %2858 = vmatpush.bf16.msra.mxu3 %v6939_v62  ;;  %v99_v59 = vld [vmem:[#allocation3 + $0x8] sm:$0xff]  ;;  %v6271_v60 = vor.u32 %v9192_v50, %v6268_v51 }
  0x42   :  { %v9228_v63 = vld [vmem:[#allocation5 + $0x29c] sm:$0xf0] }
  0x43   :  { %v6650_v0 = vld [vmem:[#allocation5 + $0x480] sm:$0xf]  ;;  %v6395_v5 = vor.u32 %v9228_v63, %v6394_v61  ;;  %2820 = vmatpush.bf16.msra.mxu0 %v6139_v4  ;;  %v556_v63 = vunpack.c.l.b16 %v99_v59 }
  0x44   :  { %v9292_v1 = vld [vmem:[#allocation5 + $0x49c] sm:$0xf0] }
  0x45   :  { %v6906_v2 = vld [vmem:[#allocation5 + $0x680] sm:$0xf]  ;;  %v6651_v6 = vor.u32 %v9292_v1, %v6650_v0  ;;  %2833 = vmatpush.bf16.msra.mxu1 %v6395_v5  ;;  %v98_v0 = vld [vmem:[#allocation3] sm:$0xff]  ;;  %v557_v1 = vunpack.c.h.b16 %v99_v59 }
  0x46   :  { %v9356_v3 = vld [vmem:[#allocation5 + $0x69c] sm:$0xf0]  ;;  %v554_v4 = vunpack.c.l.b16 %v98_v0  ;;  %v555_v5 = vunpack.c.h.b16 %v98_v0 }
  0x47   :  { %v6106_v7 = vld [vmem:[#allocation5 + $0x40] sm:$0xf]  ;;  %v6907_v10 = vor.u32 %v9356_v3, %v6906_v2  ;;  %2846 = vmatpush.bf16.msra.mxu2 %v6651_v6  ;;  %v9184_v2 = vld [vmem:[#allocation5 + $0x144] sm:$0xf] }
  0x48   :  { %v9156_v8 = vld [vmem:[#allocation5 + $0x5c] sm:$0xf0]  ;;  %v6236_v3 = vld [vmem:[#allocation5 + $0x160] sm:$0xf0] }
  0x49   :  { %v6362_v9 = vld [vmem:[#allocation5 + $0x240] sm:$0xf]  ;;  %v6107_v16 = vor.u32 %v9156_v8, %v6106_v7  ;;  %2859 = vmatpush.bf16.msra.mxu3 %v6907_v10  ;;  %v10114_v7 = vpack.c.b16 %v556_v63, %v556_v63  ;;  %v10116_v8 = vpack.c.b16 %v557_v1, %v557_v1 }
  0x4a   :  { %v9220_v11 = vld [vmem:[#allocation5 + $0x25c] sm:$0xf0] }
  0x4b   :  { %v6618_v12 = vld [vmem:[#allocation5 + $0x440] sm:$0xf]  ;;  %v6363_v19 = vor.u32 %v9220_v11, %v6362_v9  ;;  %2821 = vmatpush.bf16.msra.mxu0 %v6107_v16 }
  0x4c   :  { %v9284_v13 = vld [vmem:[#allocation5 + $0x45c] sm:$0xf0] }
  0x4d   :  { %v6874_v14 = vld [vmem:[#allocation5 + $0x640] sm:$0xf]  ;;  %v6619_v20 = vor.u32 %v9284_v13, %v6618_v12  ;;  %2834 = vmatpush.bf16.msra.mxu1 %v6363_v19  ;;  %v10121_v19 = vpack.c.b16 %v555_v5, %v555_v5  ;;  %v9144_v5 = vld [vmem:[#allocation5 + $0x4] sm:$0xf] }
  0x4e   :  { %v9348_v15 = vld [vmem:[#allocation5 + $0x65c] sm:$0xf0] }
  0x4f   :  { %v6074_v17 = vld [vmem:[#allocation5] sm:$0xf]  ;;  %v6875_v24 = vor.u32 %v9348_v15, %v6874_v14  ;;  %2847 = vmatpush.bf16.msra.mxu2 %v6619_v20  ;;  %v10118_v14 = vpack.c.b16 %v554_v4, %v554_v4  ;;  %v6239_v15 = vor.u32 %v9184_v2, %v6236_v3  ;;  %v9176_v20 = vld [vmem:[#allocation5 + $0x104] sm:$0xf]  ;;  %v101_v3 = vld [vmem:[#allocation3 + $0x18] sm:$0xf] }
  0x50   :  { %v9148_v18 = vld [vmem:[#allocation5 + $0x1c] sm:$0xf0] }
  0x51   :  { %v6330_v21 = vld [vmem:[#allocation5 + $0x200] sm:$0xf]  ;;  %v6075_v31 = vor.u32 %v9148_v18, %v6074_v17  ;;  %2860 = vmatpush.bf16.msra.mxu3 %v6875_v24 }
  0x52   :  { %v9212_v22 = vld [vmem:[#allocation5 + $0x21c] sm:$0xf0] }
  0x53   :  { %v6586_v23 = vld [vmem:[#allocation5 + $0x400] sm:$0xf]  ;;  %v6331_v35 = vor.u32 %v9212_v22, %v6330_v21  ;;  %2822 = vmatpush.bf16.msra.mxu0 %v6075_v31  ;;  %v6204_v21 = vld [vmem:[#allocation5 + $0x120] sm:$0xf0] }
  0x54   :  { %v9276_v25 = vld [vmem:[#allocation5 + $0x41c] sm:$0xf0] }
  0x55   :  { %v6842_v26 = vld [vmem:[#allocation5 + $0x600] sm:$0xf]  ;;  %v6587_v36 = vor.u32 %v9276_v25, %v6586_v23  ;;  %2835 = vmatpush.bf16.msra.mxu1 %v6331_v35 }
  0x56   :  { %v9340_v27 = vld [vmem:[#allocation5 + $0x61c] sm:$0xf0]  ;;  %2823 = vmatmul.bf16.vlgmr.msra.gmra.mxu0 %v10118_v14 }
  0x57   :  { %v7322_v28 = vld [vmem:[#allocation5 + $0x9c0] sm:$0xf]  ;;  %v6843_v39 = vor.u32 %v9340_v27, %v6842_v26  ;;  %2848 = vmatpush.bf16.msra.mxu2 %v6587_v36 }
  0x58   :  { %v9460_v29 = vld [vmem:[#allocation5 + $0x9dc] sm:$0xf0]  ;;  %2836 = vmatmul.bf16.vlgmr.msra.gmra.mxu1 %v10121_v19 }
  0x59   :  { %v7578_v30 = vld [vmem:[#allocation5 + $0xbc0] sm:$0xf]  ;;  %v7323_v40 = vor.u32 %v9460_v29, %v7322_v28  ;;  %2861 = vmatpush.bf16.msra.mxu3 %v6843_v39  ;;  %v6207_v28 = vor.u32 %v9176_v20, %v6204_v21 }
  0x5a   :  { %v9524_v32 = vld [vmem:[#allocation5 + $0xbdc] sm:$0xf0]  ;;  %2849 = vmatmul.bf16.vlgmr.msra.gmra.mxu2 %v10114_v7 }
  0x5b   :  { %v7834_v33 = vld [vmem:[#allocation5 + $0xdc0] sm:$0xf]  ;;  %v7579_v41 = vor.u32 %v9524_v32, %v7578_v30  ;;  %2867 = vmatpush.bf16.msrb.mxu0 %v7323_v40  ;;  %v9168_v32 = vld [vmem:[#allocation5 + $0xc4] sm:$0xf] }
  0x5c   :  { %v9588_v34 = vld [vmem:[#allocation5 + $0xddc] sm:$0xf0]  ;;  %2862 = vmatmul.bf16.vlgmr.msra.gmra.mxu3 %v10116_v8 }
  0x5d   :  { %v7835_v42 = vor.u32 %v9588_v34, %v7834_v33  ;;  %v7290_v43 = vld [vmem:[#allocation5 + $0x980] sm:$0xf]  ;;  %2880 = vmatpush.bf16.msrb.mxu1 %v7579_v41  ;;  %2906 = vmatpush.bf16.msrb.mxu3 %v6303_v46  ;;  %v6172_v33 = vld [vmem:[#allocation5 + $0xe0] sm:$0xf0] }
  0x5e   :  { %v9452_v44 = vld [vmem:[#allocation5 + $0x99c] sm:$0xf0]  ;;  %v6175_v40 = vor.u32 %v9168_v32, %v6172_v33  ;;  %v9320_v32 = vld [vmem:[#allocation5 + $0x584] sm:$0xf] }
  0x5f   :  { %v7546_v45 = vld [vmem:[#allocation5 + $0xb80] sm:$0xf]  ;;  %v7291_v52 = vor.u32 %v9452_v44, %v7290_v43  ;;  %2893 = vmatpush.bf16.msrb.mxu2 %v7835_v42  ;;  %v9160_v44 = vld [vmem:[#allocation5 + $0x84] sm:$0xf] }
  0x60   :  { %v9516_v47 = vld [vmem:[#allocation5 + $0xb9c] sm:$0xf0] }
  0x61   :  { %v7802_v48 = vld [vmem:[#allocation5 + $0xd80] sm:$0xf]  ;;  %v7547_v55 = vor.u32 %v9516_v47, %v7546_v45  ;;  %2868 = vmatpush.bf16.msrb.mxu0 %v7291_v52  ;;  %2907 = vmatpush.bf16.msrb.mxu3 %v6271_v60  ;;  %v6140_v45 = vld [vmem:[#allocation5 + $0xa0] sm:$0xf0] }
  0x62   :  { %v9580_v49 = vld [vmem:[#allocation5 + $0xd9c] sm:$0xf0]  ;;  %v6143_v52 = vor.u32 %v9160_v44, %v6140_v45  ;;  %v9248_v45 = vld [vmem:[#allocation5 + $0x344] sm:$0xf] }
  0x63   :  { %v7258_v53 = vld [vmem:[#allocation5 + $0x940] sm:$0xf]  ;;  %v7803_v56 = vor.u32 %v9580_v49, %v7802_v48  ;;  %2881 = vmatpush.bf16.msrb.mxu1 %v7547_v55 }
  0x64   :  { %v9444_v54 = vld [vmem:[#allocation5 + $0x95c] sm:$0xf0] }
  0x65   :  { %v7514_v57 = vld [vmem:[#allocation5 + $0xb40] sm:$0xf]  ;;  %v7259_v6 = vor.u32 %v9444_v54, %v7258_v53  ;;  %2894 = vmatpush.bf16.msrb.mxu2 %v7803_v56  ;;  %2908 = vmatpush.bf16.msrb.mxu3 %v6239_v15  ;;  %v9152_v56 = vld [vmem:[#allocation5 + $0x44] sm:$0xf] }
  0x66   :  { %v9508_v58 = vld [vmem:[#allocation5 + $0xb5c] sm:$0xf0]  ;;  %v6812_v15 = vld [vmem:[#allocation5 + $0x5e0] sm:$0xf0] }
  0x67   :  { %v7770_v61 = vld [vmem:[#allocation5 + $0xd40] sm:$0xf]  ;;  %v7515_v9 = vor.u32 %v9508_v58, %v7514_v57  ;;  %2869 = vmatpush.bf16.msrb.mxu0 %v7259_v6  ;;  %v6108_v57 = vld [vmem:[#allocation5 + $0x60] sm:$0xf0] }
  0x68   :  { %v9572_v62 = vld [vmem:[#allocation5 + $0xd5c] sm:$0xf0]  ;;  %v6111_v4 = vor.u32 %v9152_v56, %v6108_v57  ;;  %v6076_v6 = vld [vmem:[#allocation5 + $0x20] sm:$0xf0] }
  0x69   :  { %v7771_v10 = vor.u32 %v9572_v62, %v7770_v61  ;;  %v7226_v11 = vld [vmem:[#allocation5 + $0x900] sm:$0xf]  ;;  %2882 = vmatpush.bf16.msrb.mxu1 %v7515_v9  ;;  %2909 = vmatpush.bf16.msrb.mxu3 %v6207_v28  ;;  %v100_v9 = vld [vmem:[#allocation3 + $0x10] sm:$0xff]  ;;  %v9240_v57 = vld [vmem:[#allocation5 + $0x304] sm:$0xf] }
  0x6a   :  { %v9436_v12 = vld [vmem:[#allocation5 + $0x91c] sm:$0xf0] }
  0x6b   :  { %v7482_v13 = vld [vmem:[#allocation5 + $0xb00] sm:$0xf]  ;;  %v7227_v22 = vor.u32 %v9436_v12, %v7226_v11  ;;  %2895 = vmatpush.bf16.msrb.mxu2 %v7771_v10  ;;  %v9264_v10 = vld [vmem:[#allocation5 + $0x3c4] sm:$0xf] }
  0x6c   :  { %v9500_v16 = vld [vmem:[#allocation5 + $0xb1c] sm:$0xf0]  ;;  %v6556_v11 = vld [vmem:[#allocation5 + $0x3e0] sm:$0xf0] }
  0x6d   :  { %v7738_v17 = vld [vmem:[#allocation5 + $0xd00] sm:$0xf]  ;;  %v7483_v23 = vor.u32 %v9500_v16, %v7482_v13  ;;  %2870 = vmatpush.bf16.msrb.mxu0 %v7227_v22  ;;  %2910 = vmatpush.bf16.msrb.mxu3 %v6175_v40  ;;  %v9328_v12 = vld [vmem:[#allocation5 + $0x5c4] sm:$0xf] }
  0x6e   :  { %v9564_v18 = vld [vmem:[#allocation5 + $0xd1c] sm:$0xf0]  ;;  %v9392_v16 = vld [vmem:[#allocation5 + $0x7c4] sm:$0xf]  ;;  %v6815_v28 = vor.u32 %v9328_v12, %v6812_v15 }
  0x6f   :  { %v7739_v24 = vor.u32 %v9564_v18, %v7738_v17  ;;  %v7194_v25 = vld [vmem:[#allocation5 + $0x8c0] sm:$0xf]  ;;  %2883 = vmatpush.bf16.msrb.mxu1 %v7483_v23  ;;  %v7068_v17 = vld [vmem:[#allocation5 + $0x7e0] sm:$0xf0]  ;;  %v560_v18 = vunpack.c.l.b16 %v101_v3 }
  0x70   :  { %v9428_v26 = vld [vmem:[#allocation5 + $0x8dc] sm:$0xf0]  ;;  %v9456_v22 = vld [vmem:[#allocation5 + $0x9c4] sm:$0xf] }
  0x71   :  { %v7450_v27 = vld [vmem:[#allocation5 + $0xac0] sm:$0xf]  ;;  %v7195_v34 = vor.u32 %v9428_v26, %v7194_v25  ;;  %2896 = vmatpush.bf16.msrb.mxu2 %v7739_v24  ;;  %2911 = vmatpush.bf16.msrb.mxu3 %v6143_v52  ;;  %v7324_v23 = vld [vmem:[#allocation5 + $0x9e0] sm:$0xf0]  ;;  %v558_v24 = vunpack.c.l.b16 %v100_v9  ;;  %v559_v25 = vunpack.c.h.b16 %v100_v9  ;;  %v6079_v26 = vor.u32 %v9144_v5, %v6076_v6 }
  0x72   :  { %v9492_v29 = vld [vmem:[#allocation5 + $0xadc] sm:$0xf0]  ;;  %v7327_v33 = vor.u32 %v9456_v22, %v7324_v23  ;;  %v9440_v52 = vld [vmem:[#allocation5 + $0x944] sm:$0xf] }
  0x73   :  { %v7706_v30 = vld [vmem:[#allocation5 + $0xcc0] sm:$0xf]  ;;  %v7451_v35 = vor.u32 %v9492_v29, %v7450_v27  ;;  %2871 = vmatpush.bf16.msrb.mxu0 %v7195_v34  ;;  %v6559_v27 = vor.u32 %v9264_v10, %v6556_v11  ;;  %v7071_v29 = vor.u32 %v9392_v16, %v7068_v17  ;;  %v10126_v34 = vpack.c.b16 %v560_v18, %v560_v18  ;;  %v9232_v5 = vld [vmem:[#allocation5 + $0x2c4] sm:$0xf] }
  0x74   :  { %v9556_v31 = vld [vmem:[#allocation5 + $0xcdc] sm:$0xf0]  ;;  %v10128_v40 = vpack.c.b16 %v558_v24, %v558_v24  ;;  %v6428_v6 = vld [vmem:[#allocation5 + $0x2e0] sm:$0xf0] }
  0x75   :  { %v7707_v36 = vor.u32 %v9556_v31, %v7706_v30  ;;  %v7162_v37 = vld [vmem:[#allocation5 + $0x880] sm:$0xf]  ;;  %2884 = vmatpush.bf16.msrb.mxu1 %v7451_v35  ;;  %2912 = vmatpush.bf16.msrb.mxu3 %v6111_v4  ;;  %v9256_v30 = vld [vmem:[#allocation5 + $0x384] sm:$0xf]  ;;  %v6431_v17 = vor.u32 %v9232_v5, %v6428_v6 }
  0x76   :  { %v9420_v38 = vld [vmem:[#allocation5 + $0x89c] sm:$0xf0]  ;;  %v6524_v31 = vld [vmem:[#allocation5 + $0x3a0] sm:$0xf0] }
  0x77   :  { %v7418_v39 = vld [vmem:[#allocation5 + $0xa80] sm:$0xf]  ;;  %v7163_v46 = vor.u32 %v9420_v38, %v7162_v37  ;;  %2897 = vmatpush.bf16.msrb.mxu2 %v7707_v36  ;;  %v6780_v35 = vld [vmem:[#allocation5 + $0x5a0] sm:$0xf0] }
  0x78   :  { %v9484_v41 = vld [vmem:[#allocation5 + $0xa9c] sm:$0xf0]  ;;  %v9384_v36 = vld [vmem:[#allocation5 + $0x784] sm:$0xf] }
  0x79   :  { %v7674_v42 = vld [vmem:[#allocation5 + $0xc80] sm:$0xf]  ;;  %v7419_v47 = vor.u32 %v9484_v41, %v7418_v39  ;;  %2872 = vmatpush.bf16.msrb.mxu0 %v7163_v46  ;;  %v7036_v37 = vld [vmem:[#allocation5 + $0x7a0] sm:$0xf0]  ;;  %v10130_v41 = vpack.c.b16 %v559_v25, %v559_v25  ;;  %2913 = vmatpush.bf16.msrb.mxu3 %v6079_v26 }
  0x7a   :  { %v9548_v43 = vld [vmem:[#allocation5 + $0xc9c] sm:$0xf0]  ;;  %v9448_v38 = vld [vmem:[#allocation5 + $0x984] sm:$0xf]  ;;  %v7039_v44 = vor.u32 %v9384_v36, %v7036_v37 }
  0x7b   :  { %v7675_v48 = vor.u32 %v9548_v43, %v7674_v42  ;;  %v7130_v49 = vld [vmem:[#allocation5 + $0x840] sm:$0xf]  ;;  %2885 = vmatpush.bf16.msrb.mxu1 %v7419_v47  ;;  %v7292_v39 = vld [vmem:[#allocation5 + $0x9a0] sm:$0xf0]  ;;  %v6527_v42 = vor.u32 %v9256_v30, %v6524_v31  ;;  %v6783_v43 = vor.u32 %v9320_v32, %v6780_v35 }
  0x7c   :  { %v9412_v50 = vld [vmem:[#allocation5 + $0x85c] sm:$0xf0]  ;;  %v6492_v46 = vld [vmem:[#allocation5 + $0x360] sm:$0xf0]  ;;  %2914 = vmatmul.bf16.vlgmr.msrb.gmra.mxu3 %v10118_v14 }
  0x7d   :  { %v7386_v51 = vld [vmem:[#allocation5 + $0xa40] sm:$0xf]  ;;  %v7131_v59 = vor.u32 %v9412_v50, %v7130_v49  ;;  %2898 = vmatpush.bf16.msrb.mxu2 %v7675_v48  ;;  %v9312_v47 = vld [vmem:[#allocation5 + $0x544] sm:$0xf]  ;;  %2958 = vmatpush.bf16.msra.mxu3 %v7327_v33  ;;  %v7295_v48 = vor.u32 %v9448_v38, %v7292_v39 }
  0x7e   :  { %v9476_v53 = vld [vmem:[#allocation5 + $0xa5c] sm:$0xf0]  ;;  %v6748_v49 = vld [vmem:[#allocation5 + $0x560] sm:$0xf0] }
  0x7f   :  { %v7642_v54 = vld [vmem:[#allocation5 + $0xc40] sm:$0xf]  ;;  %v7387_v63 = vor.u32 %v9476_v53, %v7386_v51  ;;  %2873 = vmatpush.bf16.msrb.mxu0 %v7131_v59  ;;  %v9376_v50 = vld [vmem:[#allocation5 + $0x744] sm:$0xf] }
  0x80   :  { %v9540_v55 = vld [vmem:[#allocation5 + $0xc5c] sm:$0xf0]  ;;  %v7004_v51 = vld [vmem:[#allocation5 + $0x760] sm:$0xf0] }
  0x81   :  { %v7098_v58 = vld [vmem:[#allocation5 + $0x800] sm:$0xf]  ;;  %v7643_v0 = vor.u32 %v9540_v55, %v7642_v54  ;;  %2886 = vmatpush.bf16.msrb.mxu1 %v7387_v63  ;;  %v7260_v53 = vld [vmem:[#allocation5 + $0x960] sm:$0xf0]  ;;  %v6495_v54 = vor.u32 %v9248_v45, %v6492_v46  ;;  %v6751_v55 = vor.u32 %v9312_v47, %v6748_v49  ;;  %v7007_v56 = vor.u32 %v9376_v50, %v7004_v51 }
  0x82   :  { %v9404_v60 = vld [vmem:[#allocation5 + $0x81c] sm:$0xf0]  ;;  %v9304_v59 = vld [vmem:[#allocation5 + $0x504] sm:$0xf]  ;;  %2959 = vmatpush.bf16.msra.mxu3 %v7295_v48 }
  0x83   :  { %v7354_v61 = vld [vmem:[#allocation5 + $0xa00] sm:$0xf]  ;;  %v7099_v13 = vor.u32 %v9404_v60, %v7098_v58  ;;  %2899 = vmatpush.bf16.msrb.mxu2 %v7643_v0  ;;  %v6460_v58 = vld [vmem:[#allocation5 + $0x320] sm:$0xf0]  ;;  %v7263_v60 = vor.u32 %v9440_v52, %v7260_v53 }
  0x84   :  { %v9468_v62 = vld [vmem:[#allocation5 + $0xa1c] sm:$0xf0]  ;;  %v6972_v63 = vld [vmem:[#allocation5 + $0x720] sm:$0xf0] }
  0x85   :  { %v7610_v1 = vld [vmem:[#allocation5 + $0xc00] sm:$0xf]  ;;  %v7355_v20 = vor.u32 %v9468_v62, %v7354_v61  ;;  %2874 = vmatpush.bf16.msrb.mxu0 %v7099_v13  ;;  %v6716_v61 = vld [vmem:[#allocation5 + $0x520] sm:$0xf0] }
  0x86   :  { %v9532_v2 = vld [vmem:[#allocation5 + $0xc1c] sm:$0xf0]  ;;  %v9368_v62 = vld [vmem:[#allocation5 + $0x704] sm:$0xf]  ;;  %v6719_v3 = vor.u32 %v9304_v59, %v6716_v61  ;;  %2960 = vmatpush.bf16.msra.mxu3 %v7263_v60 }
  0x87   :  { %v7611_v21 = vor.u32 %v9532_v2, %v7610_v1  ;;  %2887 = vmatpush.bf16.msrb.mxu1 %v7355_v20  ;;  %v9432_v0 = vld [vmem:[#allocation5 + $0x904] sm:$0xf]  ;;  %v6463_v2 = vor.u32 %v9240_v57, %v6460_v58  ;;  %v6975_v4 = vor.u32 %v9368_v62, %v6972_v63  ;;  %v6306_v62 = vld [vmem:[#allocation5 + $0x1c8] sm:$0xf] }
  0x88   :  { %2875 = vmatmul.bf16.vlgmr.msrb.gmra.mxu0 %v10128_v40  ;;  %v7228_v1 = vld [vmem:[#allocation5 + $0x920] sm:$0xf0]  ;;  %v9205_v63 = vld [vmem:[#allocation5 + $0x1e4] sm:$0xf0] }
  0x89   :  { %2900 = vmatpush.bf16.msrb.mxu2 %v7611_v21  ;;  %2919 = vmatpush.bf16.msra.mxu0 %v6559_v27  ;;  %v9296_v9 = vld [vmem:[#allocation5 + $0x4c4] sm:$0xf]  ;;  %v7231_v10 = vor.u32 %v9432_v0, %v7228_v1 }
  0x8a   :  { %2888 = vmatmul.bf16.vlgmr.msrb.gmra.mxu1 %v10130_v41  ;;  %v6684_v11 = vld [vmem:[#allocation5 + $0x4e0] sm:$0xf0] }
  0x8b   :  { %2932 = vmatpush.bf16.msra.mxu1 %v6815_v28  ;;  %v9360_v12 = vld [vmem:[#allocation5 + $0x6c4] sm:$0xf]  ;;  %v6687_v18 = vor.u32 %v9296_v9, %v6684_v11  ;;  %2961 = vmatpush.bf16.msra.mxu3 %v7231_v10  ;;  %v6307_v9 = vor.u32 %v9205_v63, %v6306_v62 }
  0x8c   :  { %2901 = vmatmul.bf16.vlgmr.msrb.gmra.mxu2 %v10126_v34  ;;  %v6940_v13 = vld [vmem:[#allocation5 + $0x6e0] sm:$0xf0] }
  0x8d   :  { %2945 = vmatpush.bf16.msra.mxu2 %v7071_v29  ;;  %2920 = vmatpush.bf16.msra.mxu0 %v6527_v42  ;;  %v9424_v15 = vld [vmem:[#allocation5 + $0x8c4] sm:$0xf]  ;;  %v6943_v20 = vor.u32 %v9360_v12, %v6940_v13 }
  0x8e   :  { %v7196_v16 = vld [vmem:[#allocation5 + $0x8e0] sm:$0xf0] }
  0x8f   :  { %2933 = vmatpush.bf16.msra.mxu1 %v6783_v43  ;;  %v9224_v21 = vld [vmem:[#allocation5 + $0x284] sm:$0xf]  ;;  %v7199_v24 = vor.u32 %v9424_v15, %v7196_v16  ;;  %v6274_v16 = vld [vmem:[#allocation5 + $0x188] sm:$0xf] }
  0x90   :  { %v6396_v22 = vld [vmem:[#allocation5 + $0x2a0] sm:$0xf0] }
  0x91   :  { %2946 = vmatpush.bf16.msra.mxu2 %v7039_v44  ;;  %2921 = vmatpush.bf16.msra.mxu0 %v6495_v54  ;;  %v9288_v23 = vld [vmem:[#allocation5 + $0x484] sm:$0xf]  ;;  %v6399_v30 = vor.u32 %v9224_v21, %v6396_v22 }
  0x92   :  { %v6652_v25 = vld [vmem:[#allocation5 + $0x4a0] sm:$0xf0]  ;;  %2962 = vmatpush.bf16.msra.mxu3 %v7199_v24 }
  0x93   :  { %2934 = vmatpush.bf16.msra.mxu1 %v6751_v55  ;;  %v9352_v26 = vld [vmem:[#allocation5 + $0x684] sm:$0xf]  ;;  %v6655_v31 = vor.u32 %v9288_v23, %v6652_v25 }
  0x94   :  { %v6908_v27 = vld [vmem:[#allocation5 + $0x6a0] sm:$0xf0] }
  0x95   :  { %2947 = vmatpush.bf16.msra.mxu2 %v7007_v56  ;;  %2922 = vmatpush.bf16.msra.mxu0 %v6463_v2  ;;  %v9416_v28 = vld [vmem:[#allocation5 + $0x884] sm:$0xf]  ;;  %v6911_v32 = vor.u32 %v9352_v26, %v6908_v27  ;;  %v6562_v2 = vld [vmem:[#allocation5 + $0x3c8] sm:$0xf] }
  0x96   :  { %v7164_v29 = vld [vmem:[#allocation5 + $0x8a0] sm:$0xf0] }
  0x97   :  { %2935 = vmatpush.bf16.msra.mxu1 %v6719_v3  ;;  %v9216_v33 = vld [vmem:[#allocation5 + $0x244] sm:$0xf]  ;;  %v7167_v37 = vor.u32 %v9416_v28, %v7164_v29  ;;  %v9269_v3 = vld [vmem:[#allocation5 + $0x3e4] sm:$0xf0] }
  0x98   :  { %v6364_v35 = vld [vmem:[#allocation5 + $0x260] sm:$0xf0]  ;;  %v6563_v13 = vor.u32 %v9269_v3, %v6562_v2  ;;  %v6242_v29 = vld [vmem:[#allocation5 + $0x148] sm:$0xf] }
  0x99   :  { %2948 = vmatpush.bf16.msra.mxu2 %v6975_v4  ;;  %2923 = vmatpush.bf16.msra.mxu0 %v6431_v17  ;;  %v9280_v36 = vld [vmem:[#allocation5 + $0x444] sm:$0xf]  ;;  %v6367_v45 = vor.u32 %v9216_v33, %v6364_v35  ;;  %v9197_v17 = vld [vmem:[#allocation5 + $0x1a4] sm:$0xf0] }
  0x9a   :  { %v6620_v38 = vld [vmem:[#allocation5 + $0x460] sm:$0xf0]  ;;  %2963 = vmatpush.bf16.msra.mxu3 %v7167_v37  ;;  %v6275_v23 = vor.u32 %v9197_v17, %v6274_v16 }
  0x9b   :  { %2936 = vmatpush.bf16.msra.mxu1 %v6687_v18  ;;  %v9344_v39 = vld [vmem:[#allocation5 + $0x644] sm:$0xf]  ;;  %v6623_v48 = vor.u32 %v9280_v36, %v6620_v38  ;;  %v6530_v18 = vld [vmem:[#allocation5 + $0x388] sm:$0xf] }
  0x9c   :  { %v6876_v42 = vld [vmem:[#allocation5 + $0x660] sm:$0xf0] }
  0x9d   :  { %2949 = vmatpush.bf16.msra.mxu2 %v6943_v20  ;;  %v9408_v43 = vld [vmem:[#allocation5 + $0x844] sm:$0xf]  ;;  %2924 = vmatpush.bf16.msra.mxu0 %v6399_v30  ;;  %v6879_v49 = vor.u32 %v9344_v39, %v6876_v42  ;;  %v9261_v20 = vld [vmem:[#allocation5 + $0x3a4] sm:$0xf0] }
  0x9e   :  { %v7132_v44 = vld [vmem:[#allocation5 + $0x860] sm:$0xf0]  ;;  %v6531_v27 = vor.u32 %v9261_v20, %v6530_v18  ;;  %v9189_v30 = vld [vmem:[#allocation5 + $0x164] sm:$0xf0] }
  0x9f   :  { %v9208_v46 = vld [vmem:[#allocation5 + $0x204] sm:$0xf]  ;;  %2937 = vmatpush.bf16.msra.mxu1 %v6655_v31  ;;  %v7135_v53 = vor.u32 %v9408_v43, %v7132_v44  ;;  %v6498_v31 = vld [vmem:[#allocation5 + $0x348] sm:$0xf]  ;;  %v6243_v36 = vor.u32 %v9189_v30, %v6242_v29 }
  0xa0   :  { %v6332_v47 = vld [vmem:[#allocation5 + $0x220] sm:$0xf0]  ;;  %v6210_v44 = vld [vmem:[#allocation5 + $0x108] sm:$0xf] }
  0xa1   :  { %2950 = vmatpush.bf16.msra.mxu2 %v6911_v32  ;;  %v9272_v50 = vld [vmem:[#allocation5 + $0x404] sm:$0xf]  ;;  %2925 = vmatpush.bf16.msra.mxu0 %v6367_v45  ;;  %v6335_v60 = vor.u32 %v9208_v46, %v6332_v47  ;;  %v9253_v32 = vld [vmem:[#allocation5 + $0x364] sm:$0xf0] }
  0xa2   :  { %v6588_v51 = vld [vmem:[#allocation5 + $0x420] sm:$0xf0]  ;;  %2964 = vmatpush.bf16.msra.mxu3 %v7135_v53  ;;  %v6499_v42 = vor.u32 %v9253_v32, %v6498_v31  ;;  %v9181_v45 = vld [vmem:[#allocation5 + $0x124] sm:$0xf0] }
  0xa3   :  { %v9336_v52 = vld [vmem:[#allocation5 + $0x604] sm:$0xf]  ;;  %2938 = vmatpush.bf16.msra.mxu1 %v6623_v48  ;;  %v6591_v0 = vor.u32 %v9272_v50, %v6588_v51  ;;  %v6466_v46 = vld [vmem:[#allocation5 + $0x308] sm:$0xf]  ;;  %v6211_v50 = vor.u32 %v9181_v45, %v6210_v44 }
  0xa4   :  { %v6844_v54 = vld [vmem:[#allocation5 + $0x620] sm:$0xf0]  ;;  %v9245_v47 = vld [vmem:[#allocation5 + $0x324] sm:$0xf0] }
  0xa5   :  { %v9400_v55 = vld [vmem:[#allocation5 + $0x804] sm:$0xf]  ;;  %2951 = vmatpush.bf16.msra.mxu2 %v6879_v49  ;;  %v6847_v1 = vor.u32 %v9336_v52, %v6844_v54  ;;  %2926 = vmatpush.bf16.msra.mxu0 %v6335_v60  ;;  %v6467_v54 = vor.u32 %v9245_v47, %v6466_v46  ;;  %v6114_v20 = vld [vmem:[#allocation5 + $0x48] sm:$0xf] }
  0xa6   :  { %v7100_v56 = vld [vmem:[#allocation5 + $0x820] sm:$0xf0]  ;;  %v6082_v31 = vld [vmem:[#allocation5 + $0x8] sm:$0xf] }
  0xa7   :  { %v9520_v57 = vld [vmem:[#allocation5 + $0xbc4] sm:$0xf]  ;;  %v7103_v4 = vor.u32 %v9400_v55, %v7100_v56  ;;  %2939 = vmatpush.bf16.msra.mxu1 %v6591_v0  ;;  %v6178_v56 = vld [vmem:[#allocation5 + $0xc8] sm:$0xf] }
  0xa8   :  { %v7580_v58 = vld [vmem:[#allocation5 + $0xbe0] sm:$0xf0]  ;;  %2927 = vmatmul.bf16.vlgmr.msra.gmra.mxu0 %v10121_v19  ;;  %v7330_v44 = vld [vmem:[#allocation5 + $0x9c8] sm:$0xf] }
  0xa9   :  { %v9584_v59 = vld [vmem:[#allocation5 + $0xdc4] sm:$0xf]  ;;  %v7583_v5 = vor.u32 %v9520_v57, %v7580_v58  ;;  %2952 = vmatpush.bf16.msra.mxu2 %v6847_v1  ;;  %2965 = vmatpush.bf16.msra.mxu3 %v7103_v4  ;;  %v9173_v57 = vld [vmem:[#allocation5 + $0xe4] sm:$0xf0] }
  0xaa   :  { %v7836_v61 = vld [vmem:[#allocation5 + $0xde0] sm:$0xf0]  ;;  %2940 = vmatmul.bf16.vlgmr.msra.gmra.mxu1 %v10114_v7  ;;  %v6434_v58 = vld [vmem:[#allocation5 + $0x2c8] sm:$0xf]  ;;  %v6179_v62 = vor.u32 %v9173_v57, %v6178_v56 }
  0xab   :  { %v7839_v6 = vor.u32 %v9584_v59, %v7836_v61  ;;  %v9512_v10 = vld [vmem:[#allocation5 + $0xb84] sm:$0xf]  ;;  %2971 = vmatpush.bf16.msrb.mxu0 %v7583_v5  ;;  %v9237_v59 = vld [vmem:[#allocation5 + $0x2e4] sm:$0xf0] }
  0xac   :  { %v7548_v11 = vld [vmem:[#allocation5 + $0xba0] sm:$0xf0]  ;;  %2953 = vmatmul.bf16.vlgmr.msra.gmra.mxu2 %v10116_v8  ;;  %2966 = vmatmul.bf16.vlgmr.msra.gmra.mxu3 %v10128_v40  ;;  %v6435_v2 = vor.u32 %v9237_v59, %v6434_v58  ;;  %v6146_v4 = vld [vmem:[#allocation5 + $0x88] sm:$0xf] }
  0xad   :  { %v9576_v12 = vld [vmem:[#allocation5 + $0xd84] sm:$0xf]  ;;  %v7551_v21 = vor.u32 %v9512_v10, %v7548_v11  ;;  %2984 = vmatpush.bf16.msrb.mxu1 %v7839_v6  ;;  %2997 = vmatpush.bf16.msrb.mxu2 %v6307_v9  ;;  %v9165_v5 = vld [vmem:[#allocation5 + $0xa4] sm:$0xf0] }
  0xae   :  { %v7804_v15 = vld [vmem:[#allocation5 + $0xda0] sm:$0xf0]  ;;  %3010 = vmatpush.bf16.msrb.mxu3 %v6563_v13  ;;  %v6402_v6 = vld [vmem:[#allocation5 + $0x288] sm:$0xf] }
  0xaf   :  { %v7807_v22 = vor.u32 %v9576_v12, %v7804_v15  ;;  %v9504_v24 = vld [vmem:[#allocation5 + $0xb44] sm:$0xf]  ;;  %2972 = vmatpush.bf16.msrb.mxu0 %v7551_v21  ;;  %v9229_v9 = vld [vmem:[#allocation5 + $0x2a4] sm:$0xf0]  ;;  %v6147_v12 = vor.u32 %v9165_v5, %v6146_v4 }
  0xb0   :  { %v7516_v25 = vld [vmem:[#allocation5 + $0xb60] sm:$0xf0]  ;;  %v6403_v17 = vor.u32 %v9229_v9, %v6402_v6  ;;  %v9157_v21 = vld [vmem:[#allocation5 + $0x64] sm:$0xf0] }
  0xb1   :  { %v9568_v26 = vld [vmem:[#allocation5 + $0xd44] sm:$0xf]  ;;  %v7519_v33 = vor.u32 %v9504_v24, %v7516_v25  ;;  %2985 = vmatpush.bf16.msrb.mxu1 %v7807_v22  ;;  %2998 = vmatpush.bf16.msrb.mxu2 %v6275_v23  ;;  %v6370_v22 = vld [vmem:[#allocation5 + $0x248] sm:$0xf] }
  0xb2   :  { %v7772_v28 = vld [vmem:[#allocation5 + $0xd60] sm:$0xf0]  ;;  %3011 = vmatpush.bf16.msrb.mxu3 %v6531_v27  ;;  %v9221_v23 = vld [vmem:[#allocation5 + $0x264] sm:$0xf0] }
  0xb3   :  { %v7775_v35 = vor.u32 %v9568_v26, %v7772_v28  ;;  %v9496_v37 = vld [vmem:[#allocation5 + $0xb04] sm:$0xf]  ;;  %2973 = vmatpush.bf16.msrb.mxu0 %v7519_v33  ;;  %v6115_v28 = vor.u32 %v9157_v21, %v6114_v20  ;;  %v6371_v32 = vor.u32 %v9221_v23, %v6370_v22  ;;  %v9149_v33 = vld [vmem:[#allocation5 + $0x24] sm:$0xf0] }
  0xb4   :  { %v7484_v38 = vld [vmem:[#allocation5 + $0xb20] sm:$0xf0]  ;;  %v9461_v45 = vld [vmem:[#allocation5 + $0x9e4] sm:$0xf0]  ;;  %v6083_v47 = vor.u32 %v9149_v33, %v6082_v31 }
  0xb5   :  { %v9560_v39 = vld [vmem:[#allocation5 + $0xd04] sm:$0xf]  ;;  %v7487_v48 = vor.u32 %v9496_v37, %v7484_v38  ;;  %2986 = vmatpush.bf16.msrb.mxu1 %v7775_v35  ;;  %2999 = vmatpush.bf16.msrb.mxu2 %v6243_v36  ;;  %v6338_v35 = vld [vmem:[#allocation5 + $0x208] sm:$0xf] }
  0xb6   :  { %v7740_v43 = vld [vmem:[#allocation5 + $0xd20] sm:$0xf0]  ;;  %3012 = vmatpush.bf16.msrb.mxu3 %v6499_v42  ;;  %v9213_v36 = vld [vmem:[#allocation5 + $0x224] sm:$0xf0] }
  0xb7   :  { %v7743_v49 = vor.u32 %v9560_v39, %v7740_v43  ;;  %v9488_v51 = vld [vmem:[#allocation5 + $0xac4] sm:$0xf]  ;;  %2974 = vmatpush.bf16.msrb.mxu0 %v7487_v48  ;;  %v6818_v37 = vld [vmem:[#allocation5 + $0x5c8] sm:$0xf] }
  0xb8   :  { %v7452_v52 = vld [vmem:[#allocation5 + $0xae0] sm:$0xf0]  ;;  %v9333_v38 = vld [vmem:[#allocation5 + $0x5e4] sm:$0xf0] }
  0xb9   :  { %v9552_v53 = vld [vmem:[#allocation5 + $0xcc4] sm:$0xf]  ;;  %v7455_v60 = vor.u32 %v9488_v51, %v7452_v52  ;;  %2987 = vmatpush.bf16.msrb.mxu1 %v7743_v49  ;;  %3000 = vmatpush.bf16.msrb.mxu2 %v6211_v50  ;;  %v7074_v39 = vld [vmem:[#allocation5 + $0x7c8] sm:$0xf]  ;;  %v6339_v50 = vor.u32 %v9213_v36, %v6338_v35  ;;  %v6819_v51 = vor.u32 %v9333_v38, %v6818_v37 }
  0xba   :  { %v7708_v55 = vld [vmem:[#allocation5 + $0xce0] sm:$0xf0]  ;;  %3013 = vmatpush.bf16.msrb.mxu3 %v6467_v54  ;;  %v9397_v43 = vld [vmem:[#allocation5 + $0x7e4] sm:$0xf0] }
  0xbb   :  { %v7711_v61 = vor.u32 %v9552_v53, %v7708_v55  ;;  %v9480_v63 = vld [vmem:[#allocation5 + $0xa84] sm:$0xf]  ;;  %2975 = vmatpush.bf16.msrb.mxu0 %v7455_v60  ;;  %v7586_v48 = vld [vmem:[#allocation5 + $0xbc8] sm:$0xf]  ;;  %v7075_v52 = vor.u32 %v9397_v43, %v7074_v39  ;;  %v7331_v53 = vor.u32 %v9461_v45, %v7330_v44 }
  0xbc   :  { %v7420_v0 = vld [vmem:[#allocation5 + $0xaa0] sm:$0xf0]  ;;  %v9525_v49 = vld [vmem:[#allocation5 + $0xbe4] sm:$0xf0] }
  0xbd   :  { %v9544_v1 = vld [vmem:[#allocation5 + $0xc84] sm:$0xf]  ;;  %v7423_v10 = vor.u32 %v9480_v63, %v7420_v0  ;;  %2988 = vmatpush.bf16.msrb.mxu1 %v7711_v61  ;;  %3001 = vmatpush.bf16.msrb.mxu2 %v6179_v62  ;;  %v6786_v54 = vld [vmem:[#allocation5 + $0x588] sm:$0xf]  ;;  %v7587_v57 = vor.u32 %v9525_v49, %v7586_v48 }
  0xbe   :  { %v7676_v3 = vld [vmem:[#allocation5 + $0xca0] sm:$0xf0]  ;;  %3014 = vmatpush.bf16.msrb.mxu3 %v6435_v2  ;;  %v9325_v55 = vld [vmem:[#allocation5 + $0x5a4] sm:$0xf0] }
  0xbf   :  { %v7679_v11 = vor.u32 %v9544_v1, %v7676_v3  ;;  %v9472_v13 = vld [vmem:[#allocation5 + $0xa44] sm:$0xf]  ;;  %2976 = vmatpush.bf16.msrb.mxu0 %v7423_v10  ;;  %v7042_v56 = vld [vmem:[#allocation5 + $0x788] sm:$0xf]  ;;  %v6787_v63 = vor.u32 %v9325_v55, %v6786_v54 }
  0xc0   :  { %v7388_v15 = vld [vmem:[#allocation5 + $0xa60] sm:$0xf0]  ;;  %v9389_v58 = vld [vmem:[#allocation5 + $0x7a4] sm:$0xf0] }
  0xc1   :  { %v9536_v16 = vld [vmem:[#allocation5 + $0xc44] sm:$0xf]  ;;  %v7391_v24 = vor.u32 %v9472_v13, %v7388_v15  ;;  %2989 = vmatpush.bf16.msrb.mxu1 %v7679_v11  ;;  %3002 = vmatpush.bf16.msrb.mxu2 %v6147_v12  ;;  %v7298_v59 = vld [vmem:[#allocation5 + $0x988] sm:$0xf]  ;;  %v7043_v0 = vor.u32 %v9389_v58, %v7042_v56 }
  0xc2   :  { %v7644_v18 = vld [vmem:[#allocation5 + $0xc60] sm:$0xf0]  ;;  %3015 = vmatpush.bf16.msrb.mxu3 %v6403_v17  ;;  %v9453_v60 = vld [vmem:[#allocation5 + $0x9a4] sm:$0xf0] }
  0xc3   :  { %v9464_v25 = vld [vmem:[#allocation5 + $0xa04] sm:$0xf]  ;;  %v7647_v27 = vor.u32 %v9536_v16, %v7644_v18  ;;  %2977 = vmatpush.bf16.msrb.mxu0 %v7391_v24  ;;  %v7554_v61 = vld [vmem:[#allocation5 + $0xb88] sm:$0xf]  ;;  %v7299_v1 = vor.u32 %v9453_v60, %v7298_v59 }
  0xc4   :  { %v7356_v26 = vld [vmem:[#allocation5 + $0xa20] sm:$0xf0]  ;;  %v9517_v62 = vld [vmem:[#allocation5 + $0xba4] sm:$0xf0] }
  0xc5   :  { %v9528_v29 = vld [vmem:[#allocation5 + $0xc04] sm:$0xf]  ;;  %v7359_v42 = vor.u32 %v9464_v25, %v7356_v26  ;;  %2990 = vmatpush.bf16.msrb.mxu1 %v7647_v27  ;;  %3003 = vmatpush.bf16.msrb.mxu2 %v6115_v28  ;;  %v6754_v2 = vld [vmem:[#allocation5 + $0x548] sm:$0xf]  ;;  %v7555_v5 = vor.u32 %v9517_v62, %v7554_v61 }
  0xc6   :  { %v7612_v30 = vld [vmem:[#allocation5 + $0xc20] sm:$0xf0]  ;;  %3016 = vmatpush.bf16.msrb.mxu3 %v6371_v32  ;;  %v9317_v3 = vld [vmem:[#allocation5 + $0x564] sm:$0xf0] }
  0xc7   :  { %v7615_v46 = vor.u32 %v9528_v29, %v7612_v30  ;;  %2978 = vmatpush.bf16.msrb.mxu0 %v7359_v42  ;;  %v7010_v4 = vld [vmem:[#allocation5 + $0x748] sm:$0xf]  ;;  %v6755_v13 = vor.u32 %v9317_v3, %v6754_v2 }
  0xc8   :  { %v9381_v6 = vld [vmem:[#allocation5 + $0x764] sm:$0xf0] }
  0xc9   :  { %2991 = vmatpush.bf16.msrb.mxu1 %v7615_v46  ;;  %3004 = vmatpush.bf16.msrb.mxu2 %v6083_v47  ;;  %v7266_v9 = vld [vmem:[#allocation5 + $0x948] sm:$0xf]  ;;  %v7011_v15 = vor.u32 %v9381_v6, %v7010_v4 }
  0xca   :  { %3017 = vmatpush.bf16.msrb.mxu3 %v6339_v50  ;;  %2979 = vmatmul.bf16.vlgmr.msrb.gmra.mxu0 %v10130_v41  ;;  %v9445_v10 = vld [vmem:[#allocation5 + $0x964] sm:$0xf0] }
  0xcb   :  { %3023 = vmatpush.bf16.msra.mxu0 %v6819_v51  ;;  %v7522_v11 = vld [vmem:[#allocation5 + $0xb48] sm:$0xf]  ;;  %v7267_v16 = vor.u32 %v9445_v10, %v7266_v9 }
  0xcc   :  { %2992 = vmatmul.bf16.vlgmr.msrb.gmra.mxu1 %v10126_v34  ;;  %v9509_v12 = vld [vmem:[#allocation5 + $0xb64] sm:$0xf0]  ;;  %3005 = vmatmul.bf16.vlgmr.msrb.gmra.mxu2 %v10118_v14 }
  0xcd   :  { %3036 = vmatpush.bf16.msra.mxu1 %v7075_v52  ;;  %3049 = vmatpush.bf16.msra.mxu2 %v7331_v53  ;;  %v6722_v17 = vld [vmem:[#allocation5 + $0x508] sm:$0xf]  ;;  %v7523_v21 = vor.u32 %v9509_v12, %v7522_v11 }
  0xce   :  { %3062 = vmatpush.bf16.msra.mxu3 %v7587_v57  ;;  %v9309_v18 = vld [vmem:[#allocation5 + $0x524] sm:$0xf0] }
  0xcf   :  { %3024 = vmatpush.bf16.msra.mxu0 %v6787_v63  ;;  %3018 = vmatmul.bf16.vlgmr.msrb.gmra.mxu3 %v10121_v19  ;;  %v6978_v20 = vld [vmem:[#allocation5 + $0x708] sm:$0xf]  ;;  %v6723_v27 = vor.u32 %v9309_v18, %v6722_v17 }
  0xd0   :  { %v9373_v22 = vld [vmem:[#allocation5 + $0x724] sm:$0xf0] }
  0xd1   :  { %3037 = vmatpush.bf16.msra.mxu1 %v7043_v0  ;;  %3050 = vmatpush.bf16.msra.mxu2 %v7299_v1  ;;  %v7234_v23 = vld [vmem:[#allocation5 + $0x908] sm:$0xf]  ;;  %v6979_v28 = vor.u32 %v9373_v22, %v6978_v20  ;;  %v9201_v20 = vld [vmem:[#allocation5 + $0x1cc] sm:$0xf] }
  0xd2   :  { %3063 = vmatpush.bf16.msra.mxu3 %v7555_v5  ;;  %v9437_v24 = vld [vmem:[#allocation5 + $0x924] sm:$0xf0]  ;;  %v6308_v22 = vld [vmem:[#allocation5 + $0x1e8] sm:$0xf0] }
  0xd3   :  { %v7490_v25 = vld [vmem:[#allocation5 + $0xb08] sm:$0xf]  ;;  %3025 = vmatpush.bf16.msra.mxu0 %v6755_v13  ;;  %v7235_v29 = vor.u32 %v9437_v24, %v7234_v23  ;;  %v9265_v23 = vld [vmem:[#allocation5 + $0x3cc] sm:$0xf] }
  0xd4   :  { %v9501_v26 = vld [vmem:[#allocation5 + $0xb24] sm:$0xf0]  ;;  %v6564_v24 = vld [vmem:[#allocation5 + $0x3e8] sm:$0xf0] }
  0xd5   :  { %3038 = vmatpush.bf16.msra.mxu1 %v7011_v15  ;;  %3051 = vmatpush.bf16.msra.mxu2 %v7267_v16  ;;  %v6690_v30 = vld [vmem:[#allocation5 + $0x4c8] sm:$0xf]  ;;  %v7491_v33 = vor.u32 %v9501_v26, %v7490_v25 }
  0xd6   :  { %v9301_v31 = vld [vmem:[#allocation5 + $0x4e4] sm:$0xf0]  ;;  %3064 = vmatpush.bf16.msra.mxu3 %v7523_v21 }
  0xd7   :  { %v6946_v32 = vld [vmem:[#allocation5 + $0x6c8] sm:$0xf]  ;;  %3026 = vmatpush.bf16.msra.mxu0 %v6723_v27  ;;  %v6691_v42 = vor.u32 %v9301_v31, %v6690_v30  ;;  %v9329_v27 = vld [vmem:[#allocation5 + $0x5cc] sm:$0xf]  ;;  %v6311_v31 = vor.u32 %v9201_v20, %v6308_v22  ;;  %v2824_v22 = vpop.f32.mrf.mxu0 }
  0xd8   :  { %v9365_v35 = vld [vmem:[#allocation5 + $0x6e4] sm:$0xf0]  ;;  %v6692_v20 = vld [vmem:[#allocation5 + $0x4e8] sm:$0xf0] }
  0xd9   :  { %v7202_v36 = vld [vmem:[#allocation5 + $0x8c8] sm:$0xf]  ;;  %3039 = vmatpush.bf16.msra.mxu1 %v6979_v28  ;;  %3052 = vmatpush.bf16.msra.mxu2 %v7235_v29  ;;  %v6947_v43 = vor.u32 %v9365_v35, %v6946_v32  ;;  %v6820_v28 = vld [vmem:[#allocation5 + $0x5e8] sm:$0xf0]  ;;  %v6567_v32 = vor.u32 %v9265_v23, %v6564_v24 }
  0xda   :  { %v9429_v37 = vld [vmem:[#allocation5 + $0x8e4] sm:$0xf0]  ;;  %3065 = vmatpush.bf16.msra.mxu3 %v7491_v33 }
  0xdb   :  { %v7458_v38 = vld [vmem:[#allocation5 + $0xac8] sm:$0xf]  ;;  %v7203_v44 = vor.u32 %v9429_v37, %v7202_v36  ;;  %3027 = vmatpush.bf16.msra.mxu0 %v6691_v42  ;;  %v9193_v36 = vld [vmem:[#allocation5 + $0x18c] sm:$0xf]  ;;  %v6823_v37 = vor.u32 %v9329_v27, %v6820_v28  ;;  %v2837_v28 = vpop.f32.mrf.mxu1 }
  0xdc   :  { %v9493_v39 = vld [vmem:[#allocation5 + $0xae4] sm:$0xf0]  ;;  %v6532_v42 = vld [vmem:[#allocation5 + $0x3a8] sm:$0xf0] }
  0xdd   :  { %v6658_v45 = vld [vmem:[#allocation5 + $0x488] sm:$0xf]  ;;  %v7459_v48 = vor.u32 %v9493_v39, %v7458_v38  ;;  %3040 = vmatpush.bf16.msra.mxu1 %v6947_v43  ;;  %3053 = vmatpush.bf16.msra.mxu2 %v7203_v44  ;;  %v6276_v38 = vld [vmem:[#allocation5 + $0x1a8] sm:$0xf0] }
  0xde   :  { %v9293_v46 = vld [vmem:[#allocation5 + $0x4a4] sm:$0xf0]  ;;  %v9257_v39 = vld [vmem:[#allocation5 + $0x38c] sm:$0xf] }
  0xdf   :  { %v6914_v47 = vld [vmem:[#allocation5 + $0x688] sm:$0xf]  ;;  %v6659_v54 = vor.u32 %v9293_v46, %v6658_v45  ;;  %3066 = vmatpush.bf16.msra.mxu3 %v7459_v48  ;;  %v9321_v43 = vld [vmem:[#allocation5 + $0x58c] sm:$0xf]  ;;  %v6279_v46 = vor.u32 %v9193_v36, %v6276_v38 }
  0xe0   :  { %v9357_v49 = vld [vmem:[#allocation5 + $0x6a4] sm:$0xf0]  ;;  %v6788_v44 = vld [vmem:[#allocation5 + $0x5a8] sm:$0xf0] }
  0xe1   :  { %v7170_v50 = vld [vmem:[#allocation5 + $0x888] sm:$0xf]  ;;  %v6915_v55 = vor.u32 %v9357_v49, %v6914_v47  ;;  %3028 = vmatpush.bf16.msra.mxu0 %v6659_v54  ;;  %v6535_v47 = vor.u32 %v9257_v39, %v6532_v42  ;;  %v6500_v54 = vld [vmem:[#allocation5 + $0x368] sm:$0xf0] }
  0xe2   :  { %v9421_v51 = vld [vmem:[#allocation5 + $0x8a4] sm:$0xf0]  ;;  %v9161_v27 = vld [vmem:[#allocation5 + $0x8c] sm:$0xf] }
  0xe3   :  { %v7426_v52 = vld [vmem:[#allocation5 + $0xa88] sm:$0xf]  ;;  %v7171_v56 = vor.u32 %v9421_v51, %v7170_v50  ;;  %3041 = vmatpush.bf16.msra.mxu1 %v6915_v55  ;;  %v9185_v50 = vld [vmem:[#allocation5 + $0x14c] sm:$0xf]  ;;  %v6791_v51 = vor.u32 %v9321_v43, %v6788_v44 }
  0xe4   :  { %v9485_v53 = vld [vmem:[#allocation5 + $0xaa4] sm:$0xf0]  ;;  %v9313_v55 = vld [vmem:[#allocation5 + $0x54c] sm:$0xf] }
  0xe5   :  { %v6626_v57 = vld [vmem:[#allocation5 + $0x448] sm:$0xf]  ;;  %v7427_v60 = vor.u32 %v9485_v53, %v7426_v52  ;;  %3054 = vmatpush.bf16.msra.mxu2 %v7171_v56  ;;  %v6244_v52 = vld [vmem:[#allocation5 + $0x168] sm:$0xf0] }
  0xe6   :  { %v9285_v58 = vld [vmem:[#allocation5 + $0x464] sm:$0xf0]  ;;  %v9249_v53 = vld [vmem:[#allocation5 + $0x34c] sm:$0xf] }
  0xe7   :  { %v6882_v59 = vld [vmem:[#allocation5 + $0x648] sm:$0xf]  ;;  %v6627_v2 = vor.u32 %v9285_v58, %v6626_v57  ;;  %3067 = vmatpush.bf16.msra.mxu3 %v7427_v60  ;;  %v6756_v56 = vld [vmem:[#allocation5 + $0x568] sm:$0xf0]  ;;  %v6247_v58 = vor.u32 %v9185_v50, %v6244_v52 }
  0xe8   :  { %v9349_v61 = vld [vmem:[#allocation5 + $0x664] sm:$0xf0]  ;;  %v6660_v36 = vld [vmem:[#allocation5 + $0x4a8] sm:$0xf0] }
  0xe9   :  { %v7138_v62 = vld [vmem:[#allocation5 + $0x848] sm:$0xf]  ;;  %v6883_v5 = vor.u32 %v9349_v61, %v6882_v59  ;;  %3029 = vmatpush.bf16.msra.mxu0 %v6627_v2  ;;  %v6503_v59 = vor.u32 %v9249_v53, %v6500_v54  ;;  %v6468_v2 = vld [vmem:[#allocation5 + $0x328] sm:$0xf0] }
  0xea   :  { %v9413_v63 = vld [vmem:[#allocation5 + $0x864] sm:$0xf0]  ;;  %v9153_v44 = vld [vmem:[#allocation5 + $0x4c] sm:$0xf] }
  0xeb   :  { %v7394_v0 = vld [vmem:[#allocation5 + $0xa48] sm:$0xf]  ;;  %v7139_v6 = vor.u32 %v9413_v63, %v7138_v62  ;;  %3042 = vmatpush.bf16.msra.mxu1 %v6883_v5  ;;  %v9177_v62 = vld [vmem:[#allocation5 + $0x10c] sm:$0xf]  ;;  %v6759_v63 = vor.u32 %v9313_v55, %v6756_v56 }
  0xec   :  { %v9477_v1 = vld [vmem:[#allocation5 + $0xa64] sm:$0xf0]  ;;  %v9281_v52 = vld [vmem:[#allocation5 + $0x44c] sm:$0xf] }
  0xed   :  { %v6594_v3 = vld [vmem:[#allocation5 + $0x408] sm:$0xf]  ;;  %v7395_v12 = vor.u32 %v9477_v1, %v7394_v0  ;;  %3055 = vmatpush.bf16.msra.mxu2 %v7139_v6  ;;  %v6212_v0 = vld [vmem:[#allocation5 + $0x128] sm:$0xf0] }
  0xee   :  { %v9277_v4 = vld [vmem:[#allocation5 + $0x424] sm:$0xf0]  ;;  %v9241_v1 = vld [vmem:[#allocation5 + $0x30c] sm:$0xf]  ;;  %v6215_v6 = vor.u32 %v9177_v62, %v6212_v0  ;;  %v2839_v0 = vpop.f32.mrf.mxu1 }
  0xef   :  { %v6850_v9 = vld [vmem:[#allocation5 + $0x608] sm:$0xf]  ;;  %v6595_v21 = vor.u32 %v9277_v4, %v6594_v3  ;;  %3068 = vmatpush.bf16.msra.mxu3 %v7395_v12  ;;  %v9305_v3 = vld [vmem:[#allocation5 + $0x50c] sm:$0xf] }
  0xf0   :  { %v9341_v10 = vld [vmem:[#allocation5 + $0x624] sm:$0xf0]  ;;  %v6724_v4 = vld [vmem:[#allocation5 + $0x528] sm:$0xf0] }
  0xf1   :  { %v7106_v11 = vld [vmem:[#allocation5 + $0x808] sm:$0xf]  ;;  %v6851_v25 = vor.u32 %v9341_v10, %v6850_v9  ;;  %3030 = vmatpush.bf16.msra.mxu0 %v6595_v21  ;;  %v6471_v9 = vor.u32 %v9241_v1, %v6468_v2  ;;  %v9169_v12 = vld [vmem:[#allocation5 + $0xcc] sm:$0xf] }
  0xf2   :  { %v9405_v13 = vld [vmem:[#allocation5 + $0x824] sm:$0xf0]  ;;  %v6628_v53 = vld [vmem:[#allocation5 + $0x468] sm:$0xf0] }
  0xf3   :  { %v7362_v15 = vld [vmem:[#allocation5 + $0xa08] sm:$0xf]  ;;  %v7107_v26 = vor.u32 %v9405_v13, %v7106_v11  ;;  %3043 = vmatpush.bf16.msra.mxu1 %v6851_v25  ;;  %v6727_v13 = vor.u32 %v9305_v3, %v6724_v4  ;;  %v6084_v62 = vld [vmem:[#allocation5 + $0x28] sm:$0xf0]  ;;  %v6631_v1 = vor.u32 %v9281_v52, %v6628_v53 }
  0xf4   :  { %v9469_v16 = vld [vmem:[#allocation5 + $0xa24] sm:$0xf0]  ;;  %3031 = vmatmul.bf16.vlgmr.msra.gmra.mxu0 %v10114_v7  ;;  %v6340_v2 = vld [vmem:[#allocation5 + $0x228] sm:$0xf0] }
  0xf5   :  { %v7842_v17 = vld [vmem:[#allocation5 + $0xdc8] sm:$0xf]  ;;  %v7363_v29 = vor.u32 %v9469_v16, %v7362_v15  ;;  %3056 = vmatpush.bf16.msra.mxu2 %v7107_v26  ;;  %v6180_v15 = vld [vmem:[#allocation5 + $0xe8] sm:$0xf0] }
  0xf6   :  { %v9589_v18 = vld [vmem:[#allocation5 + $0xde4] sm:$0xf0]  ;;  %3044 = vmatmul.bf16.vlgmr.msra.gmra.mxu1 %v10116_v8  ;;  %v9233_v16 = vld [vmem:[#allocation5 + $0x2cc] sm:$0xf]  ;;  %v6183_v23 = vor.u32 %v9169_v12, %v6180_v15 }
  0xf7   :  { %v7843_v30 = vor.u32 %v9589_v18, %v7842_v17  ;;  %v7810_v33 = vld [vmem:[#allocation5 + $0xd88] sm:$0xf]  ;;  %3069 = vmatpush.bf16.msra.mxu3 %v7363_v29  ;;  %3088 = vmatpush.bf16.msrb.mxu1 %v6311_v31  ;;  %v6436_v17 = vld [vmem:[#allocation5 + $0x2e8] sm:$0xf0] }
  0xf8   :  { %v9581_v35 = vld [vmem:[#allocation5 + $0xda4] sm:$0xf0]  ;;  %3057 = vmatmul.bf16.vlgmr.msra.gmra.mxu2 %v10128_v40  ;;  %v9297_v18 = vld [vmem:[#allocation5 + $0x4cc] sm:$0xf]  ;;  %v6439_v24 = vor.u32 %v9233_v16, %v6436_v17 }
  0xf9   :  { %3075 = vmatpush.bf16.msrb.mxu0 %v7843_v30  ;;  %v7811_v45 = vor.u32 %v9581_v35, %v7810_v33  ;;  %3101 = vmatpush.bf16.msrb.mxu2 %v6567_v32  ;;  %v7778_v48 = vld [vmem:[#allocation5 + $0xd48] sm:$0xf]  ;;  %v6695_v29 = vor.u32 %v9297_v18, %v6692_v20  ;;  %v6148_v30 = vld [vmem:[#allocation5 + $0xa8] sm:$0xf0]  ;;  %v2838_v33 = vadd.f32 %v2837_v28, %v2824_v22 }
  0xfa   :  { %v9573_v49 = vld [vmem:[#allocation5 + $0xd64] sm:$0xf0]  ;;  %3070 = vmatmul.bf16.vlgmr.msra.gmra.mxu3 %v10130_v41  ;;  %v9225_v31 = vld [vmem:[#allocation5 + $0x28c] sm:$0xf]  ;;  %v6151_v38 = vor.u32 %v9161_v27, %v6148_v30 }
  0xfb   :  { %3114 = vmatpush.bf16.msrb.mxu3 %v6823_v37  ;;  %v7779_v57 = vor.u32 %v9573_v49, %v7778_v48  ;;  %3089 = vmatpush.bf16.msrb.mxu1 %v6279_v46  ;;  %v7746_v60 = vld [vmem:[#allocation5 + $0xd08] sm:$0xf]  ;;  %v6404_v32 = vld [vmem:[#allocation5 + $0x2a8] sm:$0xf0] }
  0xfc   :  { %v9565_v61 = vld [vmem:[#allocation5 + $0xd24] sm:$0xf0]  ;;  %v9289_v35 = vld [vmem:[#allocation5 + $0x48c] sm:$0xf]  ;;  %v6407_v39 = vor.u32 %v9225_v31, %v6404_v32 }
  0xfd   :  { %3076 = vmatpush.bf16.msrb.mxu0 %v7811_v45  ;;  %3102 = vmatpush.bf16.msrb.mxu2 %v6535_v47  ;;  %v7747_v5 = vor.u32 %v9565_v61, %v7746_v60  ;;  %v7714_v10 = vld [vmem:[#allocation5 + $0xcc8] sm:$0xf]  ;;  %v2850_v45 = vpop.f32.mrf.mxu2  ;;  %v6663_v46 = vor.u32 %v9289_v35, %v6660_v36  ;;  %v6116_v47 = vld [vmem:[#allocation5 + $0x68] sm:$0xf0] }
  0xfe   :  { %v9557_v11 = vld [vmem:[#allocation5 + $0xce4] sm:$0xf0]  ;;  %v9217_v48 = vld [vmem:[#allocation5 + $0x24c] sm:$0xf]  ;;  %v2851_v50 = vadd.f32 %v2850_v45, %v2838_v33 }
  0xff   :  { %3115 = vmatpush.bf16.msrb.mxu3 %v6791_v51  ;;  %3090 = vmatpush.bf16.msrb.mxu1 %v6247_v58  ;;  %v7715_v21 = vor.u32 %v9557_v11, %v7714_v10  ;;  %v7682_v25 = vld [vmem:[#allocation5 + $0xc88] sm:$0xf]  ;;  %v6372_v49 = vld [vmem:[#allocation5 + $0x268] sm:$0xf0]  ;;  %v2863_v51 = vpop.f32.mrf.mxu3 }
 0x100   :  { %v9549_v26 = vld [vmem:[#allocation5 + $0xca4] sm:$0xf0]  ;;  %v10148_v58 = vadd.f32 %v2863_v51, %v2851_v50  ;;  %v6375_v60 = vor.u32 %v9217_v48, %v6372_v49  ;;  %v9145_v61 = vld [vmem:[#allocation5 + $0xc] sm:$0xf] }
 0x101   :  { %3077 = vmatpush.bf16.msrb.mxu0 %v7779_v57  ;;  %3103 = vmatpush.bf16.msrb.mxu2 %v6503_v59  ;;  %v7683_v37 = vor.u32 %v9549_v26, %v7682_v25  ;;  %v7650_v42 = vld [vmem:[#allocation5 + $0xc48] sm:$0xf]  ;;  %v2826_v57 = vpop.f32.mrf.mxu0  ;;  %v6119_v59 = vor.u32 %v9153_v44, %v6116_v47  ;;  %v9273_v3 = vld [vmem:[#allocation5 + $0x40c] sm:$0xf]  ;;  %v6087_v15 = vor.u32 %v9145_v61, %v6084_v62 }
 0x102   :  { %v9541_v43 = vld [vmem:[#allocation5 + $0xc64] sm:$0xf0]  ;;  %v6596_v4 = vld [vmem:[#allocation5 + $0x428] sm:$0xf0] }
 0x103   :  { %3116 = vmatpush.bf16.msrb.mxu3 %v6759_v63  ;;  %3091 = vmatpush.bf16.msrb.mxu1 %v6215_v6  ;;  %v7651_v54 = vor.u32 %v9541_v43, %v7650_v42  ;;  %v7618_v55 = vld [vmem:[#allocation5 + $0xc08] sm:$0xf]  ;;  %v9209_v63 = vld [vmem:[#allocation5 + $0x20c] sm:$0xf] }
 0x104   :  { %v9533_v56 = vld [vmem:[#allocation5 + $0xc24] sm:$0xf0]  ;;  %v7076_v6 = vld [vmem:[#allocation5 + $0x7e8] sm:$0xf0]  ;;  %v6343_v16 = vor.u32 %v9209_v63, %v6340_v2 }
 0x105   :  { %3078 = vmatpush.bf16.msrb.mxu0 %v7747_v5  ;;  %3104 = vmatpush.bf16.msrb.mxu2 %v6471_v9  ;;  %v9393_v5 = vld [vmem:[#allocation5 + $0x7cc] sm:$0xf]  ;;  %v7619_v10 = vor.u32 %v9533_v56, %v7618_v55  ;;  %v2852_v20 = vpop.f32.mrf.mxu2 }
 0x106   :  { %v9457_v9 = vld [vmem:[#allocation5 + $0x9cc] sm:$0xf]  ;;  %v7079_v22 = vor.u32 %v9393_v5, %v7076_v6 }
 0x107   :  { %3117 = vmatpush.bf16.msrb.mxu3 %v6727_v13  ;;  %3092 = vmatpush.bf16.msrb.mxu1 %v6183_v23  ;;  %v7332_v11 = vld [vmem:[#allocation5 + $0x9e8] sm:$0xf0]  ;;  %v2865_v23 = vpop.f32.mrf.mxu3 }
 0x108   :  { %v9521_v12 = vld [vmem:[#allocation5 + $0xbcc] sm:$0xf] }
 0x109   :  { %3079 = vmatpush.bf16.msrb.mxu0 %v7715_v21  ;;  %3105 = vmatpush.bf16.msrb.mxu2 %v6439_v24  ;;  %v7588_v13 = vld [vmem:[#allocation5 + $0xbe8] sm:$0xf0]  ;;  %v6599_v21 = vor.u32 %v9273_v3, %v6596_v4  ;;  %v7335_v24 = vor.u32 %v9457_v9, %v7332_v11  ;;  %v2876_v0 = vpop.f32.mrf.mxu0 }
 0x10a   :  { %v9585_v17 = vld [vmem:[#allocation5 + $0xdcc] sm:$0xf]  ;;  %v7591_v25 = vor.u32 %v9521_v12, %v7588_v13  ;;  %v2877_v4 = vadd.f32 %v2876_v0, %v10148_v58  ;;  %v6314_v0 = vld [vmem:[#allocation5 + $0x1d0] sm:$0xf] }
 0x10b   :  { %3118 = vmatpush.bf16.msrb.mxu3 %v6695_v29  ;;  %3093 = vmatpush.bf16.msrb.mxu1 %v6151_v38  ;;  %v7844_v18 = vld [vmem:[#allocation5 + $0xde8] sm:$0xf0] }
 0x10c   :  { %v9385_v26 = vld [vmem:[#allocation5 + $0x78c] sm:$0xf]  ;;  %v7847_v29 = vor.u32 %v9585_v17, %v7844_v18 }
 0x10d   :  { %3080 = vmatpush.bf16.msrb.mxu0 %v7683_v37  ;;  %3106 = vmatpush.bf16.msrb.mxu2 %v6407_v39  ;;  %v7044_v27 = vld [vmem:[#allocation5 + $0x7a8] sm:$0xf0] }
 0x10e   :  { %v9449_v28 = vld [vmem:[#allocation5 + $0x98c] sm:$0xf]  ;;  %v7047_v36 = vor.u32 %v9385_v26, %v7044_v27 }
 0x10f   :  { %3119 = vmatpush.bf16.msrb.mxu3 %v6663_v46  ;;  %3094 = vmatpush.bf16.msrb.mxu1 %v6119_v59  ;;  %v7300_v30 = vld [vmem:[#allocation5 + $0x9a8] sm:$0xf0] }
 0x110   :  { %v9513_v31 = vld [vmem:[#allocation5 + $0xb8c] sm:$0xf]  ;;  %v7303_v37 = vor.u32 %v9449_v28, %v7300_v30 }
 0x111   :  { %3081 = vmatpush.bf16.msrb.mxu0 %v7651_v54  ;;  %3107 = vmatpush.bf16.msrb.mxu2 %v6375_v60  ;;  %v7556_v32 = vld [vmem:[#allocation5 + $0xba8] sm:$0xf0] }
 0x112   :  { %v9577_v33 = vld [vmem:[#allocation5 + $0xd8c] sm:$0xf]  ;;  %v7559_v38 = vor.u32 %v9513_v31, %v7556_v32  ;;  %v10157_v32 = vpop.f32.mrf.mxu3 }
 0x113   :  { %3120 = vmatpush.bf16.msrb.mxu3 %v6631_v1  ;;  %3095 = vmatpush.bf16.msrb.mxu1 %v6087_v15  ;;  %v7812_v35 = vld [vmem:[#allocation5 + $0xda8] sm:$0xf0]  ;;  %v2889_v1 = vpop.f32.mrf.mxu1 }
 0x114   :  { %v9377_v39 = vld [vmem:[#allocation5 + $0x74c] sm:$0xf]  ;;  %v7815_v44 = vor.u32 %v9577_v33, %v7812_v35  ;;  %v2890_v17 = vadd.f32 %v2889_v1, %v2877_v4  ;;  %v2878_v35 = vpop.f32.mrf.mxu0  ;;  %v9206_v1 = vld [vmem:[#allocation5 + $0x1ec] sm:$0xf0] }
 0x115   :  { %3082 = vmatpush.bf16.msrb.mxu0 %v7619_v10  ;;  %3108 = vmatpush.bf16.msrb.mxu2 %v6343_v16  ;;  %v7012_v42 = vld [vmem:[#allocation5 + $0x768] sm:$0xf0]  ;;  %v9190_v35 = vld [vmem:[#allocation5 + $0x16c] sm:$0xf0] }
 0x116   :  { %v9441_v43 = vld [vmem:[#allocation5 + $0x94c] sm:$0xf]  ;;  %v7015_v50 = vor.u32 %v9377_v39, %v7012_v42  ;;  %3096 = vmatmul.bf16.vlgmr.msrb.gmra.mxu1 %v10118_v14 }
 0x117   :  { %3121 = vmatpush.bf16.msrb.mxu3 %v6599_v21  ;;  %3140 = vmatpush.bf16.msra.mxu1 %v7335_v24  ;;  %v7268_v45 = vld [vmem:[#allocation5 + $0x968] sm:$0xf0] }
 0x118   :  { %3083 = vmatmul.bf16.vlgmr.msrb.gmra.mxu0 %v10126_v34  ;;  %v9505_v46 = vld [vmem:[#allocation5 + $0xb4c] sm:$0xf]  ;;  %3109 = vmatmul.bf16.vlgmr.msrb.gmra.mxu2 %v10121_v19  ;;  %v7271_v51 = vor.u32 %v9441_v43, %v7268_v45 }
 0x119   :  { %3127 = vmatpush.bf16.msra.mxu0 %v7079_v22  ;;  %3153 = vmatpush.bf16.msra.mxu2 %v7591_v25  ;;  %v7524_v47 = vld [vmem:[#allocation5 + $0xb68] sm:$0xf0]  ;;  %v2902_v22 = vpop.f32.mrf.mxu2 }
 0x11a   :  { %v9569_v48 = vld [vmem:[#allocation5 + $0xd4c] sm:$0xf]  ;;  %3122 = vmatmul.bf16.vlgmr.msrb.gmra.mxu3 %v10114_v7  ;;  %v7527_v52 = vor.u32 %v9505_v46, %v7524_v47  ;;  %v10155_v26 = vadd.f32 %v2902_v22, %v2890_v17  ;;  %v6538_v22 = vld [vmem:[#allocation5 + $0x390] sm:$0xf] }
 0x11b   :  { %3166 = vmatpush.bf16.msra.mxu3 %v7847_v29  ;;  %v7780_v49 = vld [vmem:[#allocation5 + $0xd68] sm:$0xf0]  ;;  %3141 = vmatpush.bf16.msra.mxu1 %v7303_v37 }
 0x11c   :  { %v9369_v53 = vld [vmem:[#allocation5 + $0x70c] sm:$0xf]  ;;  %v7783_v56 = vor.u32 %v9569_v48, %v7780_v49  ;;  %vm3543_vm0 = vcmp.gt.f32.partialorder %v10155_v26, 0.0 }
 0x11d   :  { %3128 = vmatpush.bf16.msra.mxu0 %v7047_v36  ;;  %3154 = vmatpush.bf16.msra.mxu2 %v7559_v38  ;;  %v6980_v54 = vld [vmem:[#allocation5 + $0x728] sm:$0xf0]  ;;  %v2891_v36 = vpop.f32.mrf.mxu1 }
 0x11e   :  { %v9433_v55 = vld [vmem:[#allocation5 + $0x90c] sm:$0xf]  ;;  %v6983_v63 = vor.u32 %v9369_v53, %v6980_v54  ;;  %v6506_v36 = vld [vmem:[#allocation5 + $0x350] sm:$0xf] }
 0x11f   :  { %3167 = vmatpush.bf16.msra.mxu3 %v7815_v44  ;;  %v7236_v57 = vld [vmem:[#allocation5 + $0x928] sm:$0xf0]  ;;  %3142 = vmatpush.bf16.msra.mxu1 %v7271_v51 }
 0x120   :  { %v9497_v59 = vld [vmem:[#allocation5 + $0xb0c] sm:$0xf]  ;;  %v7239_v2 = vor.u32 %v9433_v55, %v7236_v57 }
 0x121   :  { %v7492_v60 = vld [vmem:[#allocation5 + $0xb28] sm:$0xf0]  ;;  %3129 = vmatpush.bf16.msra.mxu0 %v7015_v50  ;;  %3155 = vmatpush.bf16.msra.mxu2 %v7527_v52 }
 0x122   :  { %v9561_v61 = vld [vmem:[#allocation5 + $0xd0c] sm:$0xf]  ;;  %v7495_v3 = vor.u32 %v9497_v59, %v7492_v60  ;;  %v2904_v59 = vpop.f32.mrf.mxu2 }
 0x123   :  { %v7748_v62 = vld [vmem:[#allocation5 + $0xd28] sm:$0xf0]  ;;  %3168 = vmatpush.bf16.msra.mxu3 %v7783_v56  ;;  %3143 = vmatpush.bf16.msra.mxu1 %v7239_v2  ;;  %v6570_v2 = vld [vmem:[#allocation5 + $0x3d0] sm:$0xf] }
 0x124   :  { %v9361_v5 = vld [vmem:[#allocation5 + $0x6cc] sm:$0xf]  ;;  %v7751_v10 = vor.u32 %v9561_v61, %v7748_v62 }
 0x125   :  { %v6948_v6 = vld [vmem:[#allocation5 + $0x6e8] sm:$0xf0]  ;;  %3130 = vmatpush.bf16.msra.mxu0 %v6983_v63  ;;  %3156 = vmatpush.bf16.msra.mxu2 %v7495_v3  ;;  %v2917_v3 = vpop.f32.mrf.mxu3  ;;  %v2928_v59 = vpop.f32.mrf.mxu0 }
 0x126   :  { %v9425_v9 = vld [vmem:[#allocation5 + $0x8cc] sm:$0xf]  ;;  %v6951_v18 = vor.u32 %v9361_v5, %v6948_v6  ;;  %v9270_v5 = vld [vmem:[#allocation5 + $0x3ec] sm:$0xf0] }
 0x127   :  { %v7204_v11 = vld [vmem:[#allocation5 + $0x8e8] sm:$0xf0]  ;;  %3169 = vmatpush.bf16.msra.mxu3 %v7751_v10  ;;  %v6826_v6 = vld [vmem:[#allocation5 + $0x5d0] sm:$0xf]  ;;  %v6571_v17 = vor.u32 %v9270_v5, %v6570_v2  ;;  %v2941_v2 = vpop.f32.mrf.mxu1 }
 0x128   :  { %v9489_v12 = vld [vmem:[#allocation5 + $0xacc] sm:$0xf]  ;;  %v7207_v20 = vor.u32 %v9425_v9, %v7204_v11  ;;  %v9334_v9 = vld [vmem:[#allocation5 + $0x5ec] sm:$0xf0] }
 0x129   :  { %v7460_v13 = vld [vmem:[#allocation5 + $0xae8] sm:$0xf0]  ;;  %3131 = vmatpush.bf16.msra.mxu0 %v6951_v18  ;;  %v6827_v18 = vor.u32 %v9334_v9, %v6826_v6  ;;  %v6698_v5 = vld [vmem:[#allocation5 + $0x4d0] sm:$0xf] }
 0x12a   :  { %v9553_v15 = vld [vmem:[#allocation5 + $0xccc] sm:$0xf]  ;;  %v7463_v21 = vor.u32 %v9489_v12, %v7460_v13  ;;  %3144 = vmatpush.bf16.msra.mxu1 %v7207_v20  ;;  %v7082_v12 = vld [vmem:[#allocation5 + $0x7d0] sm:$0xf] }
 0x12b   :  { %v7716_v16 = vld [vmem:[#allocation5 + $0xce8] sm:$0xf0]  ;;  %v9398_v13 = vld [vmem:[#allocation5 + $0x7ec] sm:$0xf0] }
 0x12c   :  { %v9353_v23 = vld [vmem:[#allocation5 + $0x68c] sm:$0xf]  ;;  %v7719_v25 = vor.u32 %v9553_v15, %v7716_v16  ;;  %3157 = vmatpush.bf16.msra.mxu2 %v7463_v21  ;;  %v6315_v16 = vor.u32 %v9206_v1, %v6314_v0  ;;  %v6282_v20 = vld [vmem:[#allocation5 + $0x190] sm:$0xf]  ;;  %v2929_v1 = vadd.f32 %v2928_v59, %v10157_v32 }
 0x12d   :  { %v6916_v58 = vld [vmem:[#allocation5 + $0x6a8] sm:$0xf0]  ;;  %v9198_v21 = vld [vmem:[#allocation5 + $0x1ac] sm:$0xf0] }
 0x12e   :  { %v9417_v24 = vld [vmem:[#allocation5 + $0x88c] sm:$0xf]  ;;  %v6919_v33 = vor.u32 %v9353_v23, %v6916_v58  ;;  %3170 = vmatpush.bf16.msra.mxu3 %v7719_v25  ;;  %v7083_v23 = vor.u32 %v9398_v13, %v7082_v12  ;;  %v9262_v58 = vld [vmem:[#allocation5 + $0x3ac] sm:$0xf0] }
 0x12f   :  { %v7172_v27 = vld [vmem:[#allocation5 + $0x8a8] sm:$0xf0]  ;;  %v9326_v25 = vld [vmem:[#allocation5 + $0x5ac] sm:$0xf0] }
 0x130   :  { %v9481_v28 = vld [vmem:[#allocation5 + $0xa8c] sm:$0xf]  ;;  %v7175_v37 = vor.u32 %v9417_v24, %v7172_v27  ;;  %3132 = vmatpush.bf16.msra.mxu0 %v6919_v33  ;;  %v6794_v24 = vld [vmem:[#allocation5 + $0x590] sm:$0xf] }
 0x131   :  { %v7428_v29 = vld [vmem:[#allocation5 + $0xaa8] sm:$0xf0]  ;;  %v7050_v27 = vld [vmem:[#allocation5 + $0x790] sm:$0xf] }
 0x132   :  { %v9545_v30 = vld [vmem:[#allocation5 + $0xc8c] sm:$0xf]  ;;  %v7431_v38 = vor.u32 %v9481_v28, %v7428_v29  ;;  %3145 = vmatpush.bf16.msra.mxu1 %v7175_v37  ;;  %v9390_v28 = vld [vmem:[#allocation5 + $0x7ac] sm:$0xf0]  ;;  %v6283_v29 = vor.u32 %v9198_v21, %v6282_v20  ;;  %v2954_v20 = vpop.f32.mrf.mxu2 }
 0x133   :  { %v7684_v31 = vld [vmem:[#allocation5 + $0xca8] sm:$0xf0]  ;;  %v6250_v33 = vld [vmem:[#allocation5 + $0x150] sm:$0xf]  ;;  %v7051_v37 = vor.u32 %v9390_v28, %v7050_v27 }
 0x134   :  { %v9345_v39 = vld [vmem:[#allocation5 + $0x64c] sm:$0xf]  ;;  %v7687_v44 = vor.u32 %v9545_v30, %v7684_v31  ;;  %3158 = vmatpush.bf16.msra.mxu2 %v7431_v38  ;;  %v6539_v30 = vor.u32 %v9262_v58, %v6538_v22  ;;  %v6795_v31 = vor.u32 %v9326_v25, %v6794_v24  ;;  %v9254_v38 = vld [vmem:[#allocation5 + $0x36c] sm:$0xf0]  ;;  %v2967_v24 = vpop.f32.mrf.mxu3 }
 0x135   :  { %v6884_v42 = vld [vmem:[#allocation5 + $0x668] sm:$0xf0]  ;;  %v6442_v0 = vld [vmem:[#allocation5 + $0x2d0] sm:$0xf] }
 0x136   :  { %v9409_v43 = vld [vmem:[#allocation5 + $0x84c] sm:$0xf]  ;;  %v6887_v50 = vor.u32 %v9345_v39, %v6884_v42  ;;  %3171 = vmatpush.bf16.msra.mxu3 %v7687_v44  ;;  %v6762_v39 = vld [vmem:[#allocation5 + $0x550] sm:$0xf] }
 0x137   :  { %v7140_v45 = vld [vmem:[#allocation5 + $0x868] sm:$0xf0]  ;;  %v9318_v42 = vld [vmem:[#allocation5 + $0x56c] sm:$0xf0] }
 0x138   :  { %v9473_v46 = vld [vmem:[#allocation5 + $0xa4c] sm:$0xf]  ;;  %v7143_v53 = vor.u32 %v9409_v43, %v7140_v45  ;;  %3133 = vmatpush.bf16.msra.mxu0 %v6887_v50  ;;  %v7018_v43 = vld [vmem:[#allocation5 + $0x750] sm:$0xf]  ;;  %v6251_v45 = vor.u32 %v9190_v35, %v6250_v33 }
 0x139   :  { %v7396_v47 = vld [vmem:[#allocation5 + $0xa68] sm:$0xf0]  ;;  %v9382_v44 = vld [vmem:[#allocation5 + $0x76c] sm:$0xf0] }
 0x13a   :  { %v9537_v48 = vld [vmem:[#allocation5 + $0xc4c] sm:$0xf]  ;;  %v7399_v54 = vor.u32 %v9473_v46, %v7396_v47  ;;  %3146 = vmatpush.bf16.msra.mxu1 %v7143_v53  ;;  %v6507_v46 = vor.u32 %v9254_v38, %v6506_v36  ;;  %v6763_v47 = vor.u32 %v9318_v42, %v6762_v39  ;;  %v6474_v50 = vld [vmem:[#allocation5 + $0x310] sm:$0xf]  ;;  %v2943_v38 = vpop.f32.mrf.mxu1 }
 0x13b   :  { %v7652_v49 = vld [vmem:[#allocation5 + $0xc68] sm:$0xf0]  ;;  %v6730_v53 = vld [vmem:[#allocation5 + $0x510] sm:$0xf]  ;;  %v9186_v38 = vld [vmem:[#allocation5 + $0x154] sm:$0xf] }
 0x13c   :  { %v9337_v51 = vld [vmem:[#allocation5 + $0x60c] sm:$0xf]  ;;  %v7655_v60 = vor.u32 %v9537_v48, %v7652_v49  ;;  %3159 = vmatpush.bf16.msra.mxu2 %v7399_v54  ;;  %v6218_v48 = vld [vmem:[#allocation5 + $0x110] sm:$0xf] }
 0x13d   :  { %v6852_v52 = vld [vmem:[#allocation5 + $0x628] sm:$0xf0]  ;;  %v9182_v49 = vld [vmem:[#allocation5 + $0x12c] sm:$0xf0] }
 0x13e   :  { %v9401_v55 = vld [vmem:[#allocation5 + $0x80c] sm:$0xf]  ;;  %v6855_v4 = vor.u32 %v9337_v51, %v6852_v52  ;;  %3172 = vmatpush.bf16.msra.mxu3 %v7655_v60  ;;  %v7019_v51 = vor.u32 %v9382_v44, %v7018_v43  ;;  %v9246_v52 = vld [vmem:[#allocation5 + $0x32c] sm:$0xf0] }
 0x13f   :  { %v7108_v56 = vld [vmem:[#allocation5 + $0x828] sm:$0xf0]  ;;  %v9310_v54 = vld [vmem:[#allocation5 + $0x52c] sm:$0xf0]  ;;  %v6475_v60 = vor.u32 %v9246_v52, %v6474_v50 }
 0x140   :  { %v9465_v57 = vld [vmem:[#allocation5 + $0xa0c] sm:$0xf]  ;;  %v7111_v10 = vor.u32 %v9401_v55, %v7108_v56  ;;  %3134 = vmatpush.bf16.msra.mxu0 %v6855_v4  ;;  %v6986_v55 = vld [vmem:[#allocation5 + $0x710] sm:$0xf] }
 0x141   :  { %v7364_v61 = vld [vmem:[#allocation5 + $0xa28] sm:$0xf0]  ;;  %v9374_v56 = vld [vmem:[#allocation5 + $0x72c] sm:$0xf0] }
 0x142   :  { %v9529_v62 = vld [vmem:[#allocation5 + $0xc0c] sm:$0xf]  ;;  %v7367_v11 = vor.u32 %v9465_v57, %v7364_v61  ;;  %3147 = vmatpush.bf16.msra.mxu1 %v7111_v10  ;;  %v6219_v57 = vor.u32 %v9182_v49, %v6218_v48  ;;  %v6731_v61 = vor.u32 %v9310_v54, %v6730_v53  ;;  %v6987_v3 = vor.u32 %v9374_v56, %v6986_v55  ;;  %v9238_v4 = vld [vmem:[#allocation5 + $0x2ec] sm:$0xf0]  ;;  %v2956_v55 = vpop.f32.mrf.mxu2 }
 0x143   :  { %v7620_v63 = vld [vmem:[#allocation5 + $0xc28] sm:$0xf0]  ;;  %3135 = vmatmul.bf16.vlgmr.msra.gmra.mxu0 %v10116_v8  ;;  %v9302_v6 = vld [vmem:[#allocation5 + $0x4ec] sm:$0xf0]  ;;  %v6443_v13 = vor.u32 %v9238_v4, %v6442_v0 }
 0x144   :  { %v7623_v15 = vor.u32 %v9529_v62, %v7620_v63  ;;  %3160 = vmatpush.bf16.msra.mxu2 %v7367_v11  ;;  %3179 = vmatpush.bf16.msrb.mxu0 %v6315_v16  ;;  %v6186_v62 = vld [vmem:[#allocation5 + $0xd0] sm:$0xf]  ;;  %v2942_v11 = vadd.f32 %v2941_v2, %v2929_v1 }
 0x145   :  { %3148 = vmatmul.bf16.vlgmr.msra.gmra.mxu1 %v10128_v40  ;;  %v9174_v63 = vld [vmem:[#allocation5 + $0xec] sm:$0xf0] }
 0x146   :  { %3173 = vmatpush.bf16.msra.mxu3 %v7623_v15  ;;  %3192 = vmatpush.bf16.msrb.mxu1 %v6571_v17  ;;  %v6954_v9 = vld [vmem:[#allocation5 + $0x6d0] sm:$0xf]  ;;  %v6187_v12 = vor.u32 %v9174_v63, %v6186_v62  ;;  %v6699_v15 = vor.u32 %v9302_v6, %v6698_v5  ;;  %v2955_v58 = vadd.f32 %v2954_v20, %v2942_v11 }
 0x147   :  { %3161 = vmatmul.bf16.vlgmr.msra.gmra.mxu2 %v10130_v41  ;;  %v9366_v10 = vld [vmem:[#allocation5 + $0x6ec] sm:$0xf0] }
 0x148   :  { %3205 = vmatpush.bf16.msrb.mxu2 %v6827_v18  ;;  %3180 = vmatpush.bf16.msrb.mxu0 %v6283_v29  ;;  %v6154_v16 = vld [vmem:[#allocation5 + $0x90] sm:$0xf]  ;;  %v6955_v32 = vor.u32 %v9366_v10, %v6954_v9  ;;  %v10164_v29 = vadd.f32 %v2967_v24, %v2955_v58  ;;  %v9202_v9 = vld [vmem:[#allocation5 + $0x1d4] sm:$0xf] }
 0x149   :  { %3174 = vmatmul.bf16.vlgmr.msra.gmra.mxu3 %v10126_v34  ;;  %v9166_v17 = vld [vmem:[#allocation5 + $0xac] sm:$0xf0]  ;;  %v6316_v10 = vld [vmem:[#allocation5 + $0x1f0] sm:$0xf0] }
 0x14a   :  { %3218 = vmatpush.bf16.msrb.mxu3 %v7083_v23  ;;  %3193 = vmatpush.bf16.msrb.mxu1 %v6539_v30  ;;  %v6410_v18 = vld [vmem:[#allocation5 + $0x290] sm:$0xf]  ;;  %v6155_v28 = vor.u32 %v9166_v17, %v6154_v16  ;;  %v2930_v30 = vpop.f32.mrf.mxu0  ;;  %v6319_v20 = vor.u32 %v9202_v9, %v6316_v10  ;;  %v6284_v58 = vld [vmem:[#allocation5 + $0x1b0] sm:$0xf0] }
 0x14b   :  { %v9230_v21 = vld [vmem:[#allocation5 + $0x2ac] sm:$0xf0] }
 0x14c   :  { %3206 = vmatpush.bf16.msrb.mxu2 %v6795_v31  ;;  %3181 = vmatpush.bf16.msrb.mxu0 %v6251_v45  ;;  %v6666_v22 = vld [vmem:[#allocation5 + $0x490] sm:$0xf]  ;;  %v6411_v31 = vor.u32 %v9230_v21, %v6410_v18 }
 0x14d   :  { %v9294_v23 = vld [vmem:[#allocation5 + $0x4ac] sm:$0xf0] }
 0x14e   :  { %3219 = vmatpush.bf16.msrb.mxu3 %v7051_v37  ;;  %3194 = vmatpush.bf16.msrb.mxu1 %v6507_v46  ;;  %v6922_v25 = vld [vmem:[#allocation5 + $0x690] sm:$0xf]  ;;  %v6667_v33 = vor.u32 %v9294_v23, %v6666_v22  ;;  %v9194_v23 = vld [vmem:[#allocation5 + $0x194] sm:$0xf] }
 0x14f   :  { %v9358_v27 = vld [vmem:[#allocation5 + $0x6ac] sm:$0xf0] }
 0x150   :  { %3207 = vmatpush.bf16.msrb.mxu2 %v6763_v47  ;;  %3182 = vmatpush.bf16.msrb.mxu0 %v6219_v57  ;;  %v6122_v35 = vld [vmem:[#allocation5 + $0x50] sm:$0xf]  ;;  %v6923_v39 = vor.u32 %v9358_v27, %v6922_v25 }
 0x151   :  { %v9158_v36 = vld [vmem:[#allocation5 + $0x6c] sm:$0xf0] }
 0x152   :  { %3220 = vmatpush.bf16.msrb.mxu3 %v7019_v51  ;;  %3195 = vmatpush.bf16.msrb.mxu1 %v6475_v60  ;;  %v6378_v37 = vld [vmem:[#allocation5 + $0x250] sm:$0xf]  ;;  %v6123_v47 = vor.u32 %v9158_v36, %v6122_v35 }
 0x153   :  { %v9222_v42 = vld [vmem:[#allocation5 + $0x26c] sm:$0xf0] }
 0x154   :  { %3208 = vmatpush.bf16.msrb.mxu2 %v6731_v61  ;;  %3183 = vmatpush.bf16.msrb.mxu0 %v6187_v12  ;;  %v6634_v43 = vld [vmem:[#allocation5 + $0x450] sm:$0xf]  ;;  %v6379_v50 = vor.u32 %v9222_v42, %v6378_v37  ;;  %v2969_v61 = vpop.f32.mrf.mxu3 }
 0x155   :  { %v9286_v44 = vld [vmem:[#allocation5 + $0x46c] sm:$0xf0] }
 0x156   :  { %3221 = vmatpush.bf16.msrb.mxu3 %v6987_v3  ;;  %3196 = vmatpush.bf16.msrb.mxu1 %v6443_v13  ;;  %v6890_v45 = vld [vmem:[#allocation5 + $0x650] sm:$0xf]  ;;  %v6635_v51 = vor.u32 %v9286_v44, %v6634_v43 }
 0x157   :  { %v9350_v46 = vld [vmem:[#allocation5 + $0x66c] sm:$0xf0] }
 0x158   :  { %3209 = vmatpush.bf16.msrb.mxu2 %v6699_v15  ;;  %3184 = vmatpush.bf16.msrb.mxu0 %v6155_v28  ;;  %v6090_v48 = vld [vmem:[#allocation5 + $0x10] sm:$0xf]  ;;  %v6891_v56 = vor.u32 %v9350_v46, %v6890_v45 }
 0x159   :  { %v9150_v49 = vld [vmem:[#allocation5 + $0x2c] sm:$0xf0] }
 0x15a   :  { %3222 = vmatpush.bf16.msrb.mxu3 %v6955_v32  ;;  %3197 = vmatpush.bf16.msrb.mxu1 %v6411_v31  ;;  %v6346_v52 = vld [vmem:[#allocation5 + $0x210] sm:$0xf]  ;;  %v6091_v1 = vor.u32 %v9150_v49, %v6090_v48 }
 0x15b   :  { %v9214_v53 = vld [vmem:[#allocation5 + $0x22c] sm:$0xf0] }
 0x15c   :  { %3210 = vmatpush.bf16.msrb.mxu2 %v6667_v33  ;;  %v6602_v54 = vld [vmem:[#allocation5 + $0x410] sm:$0xf]  ;;  %3185 = vmatpush.bf16.msrb.mxu0 %v6123_v47  ;;  %v6347_v5 = vor.u32 %v9214_v53, %v6346_v52  ;;  %v6287_v33 = vor.u32 %v9194_v23, %v6284_v58  ;;  %v2980_v52 = vpop.f32.mrf.mxu0  ;;  %v9178_v53 = vld [vmem:[#allocation5 + $0x114] sm:$0xf] }
 0x15d   :  { %v9278_v57 = vld [vmem:[#allocation5 + $0x42c] sm:$0xf0]  ;;  %v2981_v55 = vadd.f32 %v2980_v52, %v10164_v29 }
 0x15e   :  { %3223 = vmatpush.bf16.msrb.mxu3 %v6923_v39  ;;  %v6858_v59 = vld [vmem:[#allocation5 + $0x610] sm:$0xf]  ;;  %3198 = vmatpush.bf16.msrb.mxu1 %v6379_v50  ;;  %v6603_v6 = vor.u32 %v9278_v57, %v6602_v54  ;;  %v6252_v39 = vld [vmem:[#allocation5 + $0x170] sm:$0xf0]  ;;  %v2993_v57 = vpop.f32.mrf.mxu1 }
 0x15f   :  { %v9342_v60 = vld [vmem:[#allocation5 + $0x62c] sm:$0xf0]  ;;  %v6255_v48 = vor.u32 %v9186_v38, %v6252_v39  ;;  %v6220_v54 = vld [vmem:[#allocation5 + $0x130] sm:$0xf0] }
 0x160   :  { %v7338_v62 = vld [vmem:[#allocation5 + $0x9d0] sm:$0xf]  ;;  %3211 = vmatpush.bf16.msrb.mxu2 %v6635_v51  ;;  %v6859_v11 = vor.u32 %v9342_v60, %v6858_v59  ;;  %3186 = vmatpush.bf16.msrb.mxu0 %v6091_v1  ;;  %v10171_v1 = vadd.f32 %v2993_v57, %v2981_v55  ;;  %v9154_v39 = vld [vmem:[#allocation5 + $0x54] sm:$0xf] }
 0x161   :  { %v9462_v63 = vld [vmem:[#allocation5 + $0x9ec] sm:$0xf0]  ;;  %v6572_v57 = vld [vmem:[#allocation5 + $0x3f0] sm:$0xf0] }
 0x162   :  { %v7594_v0 = vld [vmem:[#allocation5 + $0xbd0] sm:$0xf]  ;;  %3224 = vmatpush.bf16.msrb.mxu3 %v6891_v56  ;;  %v7339_v12 = vor.u32 %v9462_v63, %v7338_v62  ;;  %3199 = vmatpush.bf16.msrb.mxu1 %v6347_v5  ;;  %v9170_v5 = vld [vmem:[#allocation5 + $0xd4] sm:$0xf]  ;;  %vm3544_vm1 = vcmp.gt.f32.partialorder %v10171_v1, 0.0 }
 0x163   :  { %v9526_v2 = vld [vmem:[#allocation5 + $0xbec] sm:$0xf0]  ;;  %3187 = vmatmul.bf16.vlgmr.msrb.gmra.mxu0 %v10118_v14 }
 0x164   :  { %v7850_v3 = vld [vmem:[#allocation5 + $0xdd0] sm:$0xf]  ;;  %v7595_v13 = vor.u32 %v9526_v2, %v7594_v0  ;;  %3212 = vmatpush.bf16.msrb.mxu2 %v6603_v6  ;;  %3231 = vmatpush.bf16.msra.mxu0 %v7339_v12  ;;  %v6223_v0 = vor.u32 %v9178_v53, %v6220_v54  ;;  %v6188_v6 = vld [vmem:[#allocation5 + $0xf0] sm:$0xf0]  ;;  %v2982_v23 = vpop.f32.mrf.mxu0 }
 0x165   :  { %v9590_v4 = vld [vmem:[#allocation5 + $0xdec] sm:$0xf0]  ;;  %3200 = vmatmul.bf16.vlgmr.msrb.gmra.mxu1 %v10121_v19  ;;  %v9146_v53 = vld [vmem:[#allocation5 + $0x14] sm:$0xf] }
 0x166   :  { %v7851_v15 = vor.u32 %v9590_v4, %v7850_v3  ;;  %v7306_v16 = vld [vmem:[#allocation5 + $0x990] sm:$0xf]  ;;  %3225 = vmatpush.bf16.msrb.mxu3 %v6859_v11  ;;  %3244 = vmatpush.bf16.msra.mxu1 %v7595_v13  ;;  %v6092_v54 = vld [vmem:[#allocation5 + $0x30] sm:$0xf0] }
 0x167   :  { %v9454_v17 = vld [vmem:[#allocation5 + $0x9ac] sm:$0xf0]  ;;  %3213 = vmatmul.bf16.vlgmr.msrb.gmra.mxu2 %v10114_v7 }
 0x168   :  { %v7562_v18 = vld [vmem:[#allocation5 + $0xb90] sm:$0xf]  ;;  %v7307_v24 = vor.u32 %v9454_v17, %v7306_v16  ;;  %3257 = vmatpush.bf16.msra.mxu2 %v7851_v15  ;;  %v6191_v15 = vor.u32 %v9170_v5, %v6188_v6  ;;  %v7340_v5 = vld [vmem:[#allocation5 + $0x9f0] sm:$0xf0]  ;;  %v6095_v6 = vor.u32 %v9146_v53, %v6092_v54 }
 0x169   :  { %v9518_v32 = vld [vmem:[#allocation5 + $0xbac] sm:$0xf0]  ;;  %3226 = vmatmul.bf16.vlgmr.msrb.gmra.mxu3 %v10116_v8 }
 0x16a   :  { %v7818_v21 = vld [vmem:[#allocation5 + $0xd90] sm:$0xf]  ;;  %v7563_v25 = vor.u32 %v9518_v32, %v7562_v18  ;;  %3270 = vmatpush.bf16.msra.mxu3 %v6319_v20  ;;  %3232 = vmatpush.bf16.msra.mxu0 %v7307_v24  ;;  %v3006_v20 = vpop.f32.mrf.mxu2  ;;  %v9162_v32 = vld [vmem:[#allocation5 + $0x94] sm:$0xf] }
 0x16b   :  { %v9582_v22 = vld [vmem:[#allocation5 + $0xdac] sm:$0xf0] }
 0x16c   :  { %v7819_v27 = vor.u32 %v9582_v22, %v7818_v21  ;;  %v7274_v28 = vld [vmem:[#allocation5 + $0x950] sm:$0xf]  ;;  %3245 = vmatpush.bf16.msra.mxu1 %v7563_v25  ;;  %v6156_v21 = vld [vmem:[#allocation5 + $0xb0] sm:$0xf0]  ;;  %v3019_v22 = vpop.f32.mrf.mxu3  ;;  %v2995_v25 = vpop.f32.mrf.mxu1 }
 0x16d   :  { %v9446_v30 = vld [vmem:[#allocation5 + $0x96c] sm:$0xf0]  ;;  %v10173_v24 = vadd.f32 %v3019_v22, %v3006_v20  ;;  %v9450_v20 = vld [vmem:[#allocation5 + $0x994] sm:$0xf] }
 0x16e   :  { %v7530_v31 = vld [vmem:[#allocation5 + $0xb50] sm:$0xf]  ;;  %v7275_v42 = vor.u32 %v9446_v30, %v7274_v28  ;;  %3258 = vmatpush.bf16.msra.mxu2 %v7819_v27  ;;  %3271 = vmatpush.bf16.msra.mxu3 %v6287_v33  ;;  %v6508_v25 = vld [vmem:[#allocation5 + $0x370] sm:$0xf0] }
 0x16f   :  { %v9510_v35 = vld [vmem:[#allocation5 + $0xb6c] sm:$0xf0] }
 0x170   :  { %v7786_v36 = vld [vmem:[#allocation5 + $0xd50] sm:$0xf]  ;;  %v7531_v43 = vor.u32 %v9510_v35, %v7530_v31  ;;  %3233 = vmatpush.bf16.msra.mxu0 %v7275_v42  ;;  %v6159_v35 = vor.u32 %v9162_v32, %v6156_v21  ;;  %v6124_v42 = vld [vmem:[#allocation5 + $0x70] sm:$0xf0] }
 0x171   :  { %v9574_v37 = vld [vmem:[#allocation5 + $0xd6c] sm:$0xf0]  ;;  %v7308_v32 = vld [vmem:[#allocation5 + $0x9b0] sm:$0xf0] }
 0x172   :  { %v7787_v44 = vor.u32 %v9574_v37, %v7786_v36  ;;  %v7242_v45 = vld [vmem:[#allocation5 + $0x910] sm:$0xf]  ;;  %3246 = vmatpush.bf16.msra.mxu1 %v7531_v43  ;;  %3272 = vmatpush.bf16.msra.mxu3 %v6255_v48  ;;  %v3008_v55 = vpop.f32.mrf.mxu2 }
 0x173   :  { %v9438_v46 = vld [vmem:[#allocation5 + $0x92c] sm:$0xf0]  ;;  %v9234_v55 = vld [vmem:[#allocation5 + $0x2d4] sm:$0xf] }
 0x174   :  { %v7498_v47 = vld [vmem:[#allocation5 + $0xb10] sm:$0xf]  ;;  %v7243_v56 = vor.u32 %v9438_v46, %v7242_v45  ;;  %3259 = vmatpush.bf16.msra.mxu2 %v7787_v44 }
 0x175   :  { %v9502_v49 = vld [vmem:[#allocation5 + $0xb2c] sm:$0xf0] }
 0x176   :  { %v7754_v50 = vld [vmem:[#allocation5 + $0xd10] sm:$0xf]  ;;  %v7499_v59 = vor.u32 %v9502_v49, %v7498_v47  ;;  %3234 = vmatpush.bf16.msra.mxu0 %v7243_v56  ;;  %3273 = vmatpush.bf16.msra.mxu3 %v6223_v0  ;;  %v9266_v56 = vld [vmem:[#allocation5 + $0x3d4] sm:$0xf] }
 0x177   :  { %v9566_v51 = vld [vmem:[#allocation5 + $0xd2c] sm:$0xf0]  ;;  %v7084_v0 = vld [vmem:[#allocation5 + $0x7f0] sm:$0xf0] }
 0x178   :  { %v7755_v60 = vor.u32 %v9566_v51, %v7754_v50  ;;  %v7210_v61 = vld [vmem:[#allocation5 + $0x8d0] sm:$0xf]  ;;  %3247 = vmatpush.bf16.msra.mxu1 %v7499_v59  ;;  %v6127_v51 = vor.u32 %v9154_v39, %v6124_v42  ;;  %v9330_v59 = vld [vmem:[#allocation5 + $0x5d4] sm:$0xf] }
 0x179   :  { %v9430_v62 = vld [vmem:[#allocation5 + $0x8ec] sm:$0xf0]  ;;  %v9242_v42 = vld [vmem:[#allocation5 + $0x314] sm:$0xf] }
 0x17a   :  { %v7466_v63 = vld [vmem:[#allocation5 + $0xad0] sm:$0xf]  ;;  %v7211_v29 = vor.u32 %v9430_v62, %v7210_v61  ;;  %3260 = vmatpush.bf16.msra.mxu2 %v7755_v60  ;;  %3274 = vmatpush.bf16.msra.mxu3 %v6191_v15  ;;  %v3021_v60 = vpop.f32.mrf.mxu3  ;;  %v6828_v62 = vld [vmem:[#allocation5 + $0x5f0] sm:$0xf0] }
 0x17b   :  { %v9494_v2 = vld [vmem:[#allocation5 + $0xaec] sm:$0xf0]  ;;  %v3045_v60 = vpop.f32.mrf.mxu1 }
 0x17c   :  { %v7722_v3 = vld [vmem:[#allocation5 + $0xcd0] sm:$0xf]  ;;  %v7467_v9 = vor.u32 %v9494_v2, %v7466_v63  ;;  %3235 = vmatpush.bf16.msra.mxu0 %v7211_v29  ;;  %v9394_v63 = vld [vmem:[#allocation5 + $0x7d4] sm:$0xf]  ;;  %v6575_v29 = vor.u32 %v9266_v56, %v6572_v57 }
 0x17d   :  { %v9558_v4 = vld [vmem:[#allocation5 + $0xcec] sm:$0xf0]  ;;  %v6444_v56 = vld [vmem:[#allocation5 + $0x2f0] sm:$0xf0] }
 0x17e   :  { %v7723_v10 = vor.u32 %v9558_v4, %v7722_v3  ;;  %v7178_v11 = vld [vmem:[#allocation5 + $0x890] sm:$0xf]  ;;  %3248 = vmatpush.bf16.msra.mxu1 %v7467_v9  ;;  %3275 = vmatpush.bf16.msra.mxu3 %v6159_v35  ;;  %v9458_v4 = vld [vmem:[#allocation5 + $0x9d4] sm:$0xf]  ;;  %v6831_v9 = vor.u32 %v9330_v59, %v6828_v62 }
 0x17f   :  { %v9422_v12 = vld [vmem:[#allocation5 + $0x8ac] sm:$0xf0]  ;;  %v7343_v15 = vor.u32 %v9458_v4, %v7340_v5  ;;  %v9442_v35 = vld [vmem:[#allocation5 + $0x954] sm:$0xf]  ;;  %v6447_v5 = vor.u32 %v9234_v55, %v6444_v56 }
 0x180   :  { %v7434_v13 = vld [vmem:[#allocation5 + $0xa90] sm:$0xf]  ;;  %v7179_v58 = vor.u32 %v9422_v12, %v7178_v11  ;;  %3261 = vmatpush.bf16.msra.mxu2 %v7723_v10  ;;  %v7087_v10 = vor.u32 %v9394_v63, %v7084_v0  ;;  %v9258_v11 = vld [vmem:[#allocation5 + $0x394] sm:$0xf] }
 0x181   :  { %v9486_v16 = vld [vmem:[#allocation5 + $0xaac] sm:$0xf0]  ;;  %v6540_v12 = vld [vmem:[#allocation5 + $0x3b0] sm:$0xf0] }
 0x182   :  { %v7690_v17 = vld [vmem:[#allocation5 + $0xc90] sm:$0xf]  ;;  %v7435_v27 = vor.u32 %v9486_v16, %v7434_v13  ;;  %3236 = vmatpush.bf16.msra.mxu0 %v7179_v58  ;;  %3276 = vmatpush.bf16.msra.mxu3 %v6127_v51  ;;  %v9322_v13 = vld [vmem:[#allocation5 + $0x594] sm:$0xf]  ;;  %v6543_v21 = vor.u32 %v9258_v11, %v6540_v12  ;;  %v3058_v12 = vpop.f32.mrf.mxu2 }
 0x183   :  { %v9550_v18 = vld [vmem:[#allocation5 + $0xcac] sm:$0xf0]  ;;  %v6796_v16 = vld [vmem:[#allocation5 + $0x5b0] sm:$0xf0] }
 0x184   :  { %v7691_v28 = vor.u32 %v9550_v18, %v7690_v17  ;;  %v7146_v30 = vld [vmem:[#allocation5 + $0x850] sm:$0xf]  ;;  %3249 = vmatpush.bf16.msra.mxu1 %v7435_v27  ;;  %v9386_v17 = vld [vmem:[#allocation5 + $0x794] sm:$0xf]  ;;  %v6799_v22 = vor.u32 %v9322_v13, %v6796_v16 }
 0x185   :  { %v9414_v31 = vld [vmem:[#allocation5 + $0x86c] sm:$0xf0]  ;;  %v7052_v18 = vld [vmem:[#allocation5 + $0x7b0] sm:$0xf0] }
 0x186   :  { %v7402_v33 = vld [vmem:[#allocation5 + $0xa50] sm:$0xf]  ;;  %v7147_v43 = vor.u32 %v9414_v31, %v7146_v30  ;;  %3262 = vmatpush.bf16.msra.mxu2 %v7691_v28  ;;  %3277 = vmatpush.bf16.msra.mxu3 %v6095_v6  ;;  %v7055_v23 = vor.u32 %v9386_v17, %v7052_v18  ;;  %v9250_v58 = vld [vmem:[#allocation5 + $0x354] sm:$0xf]  ;;  %v7311_v28 = vor.u32 %v9450_v20, %v7308_v32  ;;  %v3071_v18 = vpop.f32.mrf.mxu3 }
 0x187   :  { %v9478_v36 = vld [vmem:[#allocation5 + $0xa6c] sm:$0xf0]  ;;  %v9314_v27 = vld [vmem:[#allocation5 + $0x554] sm:$0xf] }
 0x188   :  { %v7658_v37 = vld [vmem:[#allocation5 + $0xc50] sm:$0xf]  ;;  %v7403_v46 = vor.u32 %v9478_v36, %v7402_v33  ;;  %3237 = vmatpush.bf16.msra.mxu0 %v7147_v43  ;;  %v6764_v30 = vld [vmem:[#allocation5 + $0x570] sm:$0xf0] }
 0x189   :  { %v9542_v38 = vld [vmem:[#allocation5 + $0xc6c] sm:$0xf0]  ;;  %v9378_v31 = vld [vmem:[#allocation5 + $0x754] sm:$0xf]  ;;  %3278 = vmatmul.bf16.vlgmr.msra.gmra.mxu3 %v10118_v14 }
 0x18a   :  { %v7114_v44 = vld [vmem:[#allocation5 + $0x810] sm:$0xf]  ;;  %v7659_v47 = vor.u32 %v9542_v38, %v7658_v37  ;;  %3250 = vmatpush.bf16.msra.mxu1 %v7403_v46  ;;  %3322 = vmatpush.bf16.msrb.mxu3 %v7343_v15  ;;  %v7020_v33 = vld [vmem:[#allocation5 + $0x770] sm:$0xf0]  ;;  %v6511_v37 = vor.u32 %v9250_v58, %v6508_v25  ;;  %v6767_v38 = vor.u32 %v9314_v27, %v6764_v30 }
 0x18b   :  { %v9406_v45 = vld [vmem:[#allocation5 + $0x82c] sm:$0xf0]  ;;  %v7276_v36 = vld [vmem:[#allocation5 + $0x970] sm:$0xf0]  ;;  %v7023_v39 = vor.u32 %v9378_v31, %v7020_v33  ;;  %v3047_v31 = vpop.f32.mrf.mxu1 }
 0x18c   :  { %v7370_v48 = vld [vmem:[#allocation5 + $0xa10] sm:$0xf]  ;;  %v7115_v61 = vor.u32 %v9406_v45, %v7114_v44  ;;  %3263 = vmatpush.bf16.msra.mxu2 %v7659_v47  ;;  %v6476_v43 = vld [vmem:[#allocation5 + $0x330] sm:$0xf0]  ;;  %v7279_v45 = vor.u32 %v9442_v35, %v7276_v36  ;;  %v9191_v31 = vld [vmem:[#allocation5 + $0x174] sm:$0xf0] }
 0x18d   :  { %v9470_v49 = vld [vmem:[#allocation5 + $0xa2c] sm:$0xf0]  ;;  %v9306_v44 = vld [vmem:[#allocation5 + $0x514] sm:$0xf]  ;;  %v6479_v51 = vor.u32 %v9242_v42, %v6476_v43 }
 0x18e   :  { %v7626_v50 = vld [vmem:[#allocation5 + $0xc10] sm:$0xf]  ;;  %v7371_v2 = vor.u32 %v9470_v49, %v7370_v48  ;;  %3238 = vmatpush.bf16.msra.mxu0 %v7115_v61  ;;  %3323 = vmatpush.bf16.msrb.mxu3 %v7311_v28  ;;  %v6732_v46 = vld [vmem:[#allocation5 + $0x530] sm:$0xf0]  ;;  %v3073_v55 = vpop.f32.mrf.mxu3 }
 0x18f   :  { %v9534_v52 = vld [vmem:[#allocation5 + $0xc2c] sm:$0xf0]  ;;  %v9370_v47 = vld [vmem:[#allocation5 + $0x714] sm:$0xf]  ;;  %v6735_v53 = vor.u32 %v9306_v44, %v6732_v46 }
 0x190   :  { %v7627_v3 = vor.u32 %v9534_v52, %v7626_v50  ;;  %3251 = vmatpush.bf16.msra.mxu1 %v7371_v2  ;;  %v6988_v48 = vld [vmem:[#allocation5 + $0x730] sm:$0xf0]  ;;  %v3032_v52 = vpop.f32.mrf.mxu0 }
 0x191   :  { %3239 = vmatmul.bf16.vlgmr.msra.gmra.mxu0 %v10128_v40  ;;  %v9434_v49 = vld [vmem:[#allocation5 + $0x914] sm:$0xf]  ;;  %v6991_v54 = vor.u32 %v9370_v47, %v6988_v48  ;;  %v3033_v59 = vadd.f32 %v3032_v52, %v10173_v24 }
 0x192   :  { %3264 = vmatpush.bf16.msra.mxu2 %v7627_v3  ;;  %3283 = vmatpush.bf16.msrb.mxu0 %v6575_v29  ;;  %v7244_v50 = vld [vmem:[#allocation5 + $0x930] sm:$0xf0] }
 0x193   :  { %3252 = vmatmul.bf16.vlgmr.msra.gmra.mxu1 %v10130_v41  ;;  %v9298_v57 = vld [vmem:[#allocation5 + $0x4d4] sm:$0xf]  ;;  %3324 = vmatpush.bf16.msrb.mxu3 %v7279_v45  ;;  %v7247_v61 = vor.u32 %v9434_v49, %v7244_v50  ;;  %v3046_v4 = vadd.f32 %v3045_v60, %v3033_v59  ;;  %v3060_v50 = vpop.f32.mrf.mxu2 }
 0x194   :  { %3296 = vmatpush.bf16.msrb.mxu1 %v6831_v9  ;;  %v6700_v62 = vld [vmem:[#allocation5 + $0x4f0] sm:$0xf0]  ;;  %v9247_v50 = vld [vmem:[#allocation5 + $0x334] sm:$0xf0] }
 0x195   :  { %3265 = vmatmul.bf16.vlgmr.msra.gmra.mxu2 %v10126_v34  ;;  %v9362_v63 = vld [vmem:[#allocation5 + $0x6d4] sm:$0xf]  ;;  %v6703_v6 = vor.u32 %v9298_v57, %v6700_v62  ;;  %v3059_v17 = vadd.f32 %v3058_v12, %v3046_v4  ;;  %v6322_v62 = vld [vmem:[#allocation5 + $0x1d8] sm:$0xf] }
 0x196   :  { %3309 = vmatpush.bf16.msrb.mxu2 %v7087_v10  ;;  %3284 = vmatpush.bf16.msrb.mxu0 %v6543_v21  ;;  %v6956_v0 = vld [vmem:[#allocation5 + $0x6f0] sm:$0xf0]  ;;  %v9271_v4 = vld [vmem:[#allocation5 + $0x3f4] sm:$0xf0] }
 0x197   :  { %v9426_v2 = vld [vmem:[#allocation5 + $0x8d4] sm:$0xf]  ;;  %v6959_v29 = vor.u32 %v9362_v63, %v6956_v0  ;;  %3325 = vmatpush.bf16.msrb.mxu3 %v7247_v61  ;;  %v9207_v63 = vld [vmem:[#allocation5 + $0x1f4] sm:$0xf0] }
 0x198   :  { %3297 = vmatpush.bf16.msrb.mxu1 %v6799_v22  ;;  %v7212_v3 = vld [vmem:[#allocation5 + $0x8f0] sm:$0xf0]  ;;  %v10180_v22 = vadd.f32 %v3071_v18, %v3059_v17  ;;  %v6546_v17 = vld [vmem:[#allocation5 + $0x398] sm:$0xf] }
 0x199   :  { %v9226_v9 = vld [vmem:[#allocation5 + $0x294] sm:$0xf]  ;;  %v7215_v24 = vor.u32 %v9426_v2, %v7212_v3  ;;  %v6578_v3 = vld [vmem:[#allocation5 + $0x3d8] sm:$0xf] }
 0x19a   :  { %3310 = vmatpush.bf16.msrb.mxu2 %v7055_v23  ;;  %3285 = vmatpush.bf16.msrb.mxu0 %v6511_v37  ;;  %v6412_v10 = vld [vmem:[#allocation5 + $0x2b0] sm:$0xf0]  ;;  %v3034_v23 = vpop.f32.mrf.mxu0  ;;  %v9263_v18 = vld [vmem:[#allocation5 + $0x3b4] sm:$0xf0] }
 0x19b   :  { %v9290_v11 = vld [vmem:[#allocation5 + $0x494] sm:$0xf]  ;;  %v6415_v21 = vor.u32 %v9226_v9, %v6412_v10  ;;  %3326 = vmatpush.bf16.msrb.mxu3 %v7215_v24  ;;  %v6323_v9 = vor.u32 %v9207_v63, %v6322_v62  ;;  %v6579_v24 = vor.u32 %v9271_v4, %v6578_v3  ;;  %v6194_v62 = vld [vmem:[#allocation5 + $0xd8] sm:$0xf] }
 0x19c   :  { %3298 = vmatpush.bf16.msrb.mxu1 %v6767_v38  ;;  %v6668_v13 = vld [vmem:[#allocation5 + $0x4b0] sm:$0xf0]  ;;  %v9175_v63 = vld [vmem:[#allocation5 + $0xf4] sm:$0xf0] }
 0x19d   :  { %v9354_v15 = vld [vmem:[#allocation5 + $0x694] sm:$0xf]  ;;  %v6671_v58 = vor.u32 %v9290_v11, %v6668_v13  ;;  %v6195_v4 = vor.u32 %v9175_v63, %v6194_v62  ;;  %v9463_v62 = vld [vmem:[#allocation5 + $0x9f4] sm:$0xf0] }
 0x19e   :  { %3311 = vmatpush.bf16.msrb.mxu2 %v7023_v39  ;;  %3286 = vmatpush.bf16.msrb.mxu0 %v6479_v51  ;;  %v6924_v16 = vld [vmem:[#allocation5 + $0x6b0] sm:$0xf0] }
 0x19f   :  { %v9418_v20 = vld [vmem:[#allocation5 + $0x894] sm:$0xf]  ;;  %v6927_v25 = vor.u32 %v9354_v15, %v6924_v16  ;;  %v6290_v15 = vld [vmem:[#allocation5 + $0x198] sm:$0xf] }
 0x1a0   :  { %3299 = vmatpush.bf16.msrb.mxu1 %v6735_v53  ;;  %v7180_v32 = vld [vmem:[#allocation5 + $0x8b0] sm:$0xf0]  ;;  %v9199_v16 = vld [vmem:[#allocation5 + $0x1b4] sm:$0xf0] }
 0x1a1   :  { %v9218_v27 = vld [vmem:[#allocation5 + $0x254] sm:$0xf]  ;;  %v7183_v33 = vor.u32 %v9418_v20, %v7180_v32 }
 0x1a2   :  { %3312 = vmatpush.bf16.msrb.mxu2 %v6991_v54  ;;  %3287 = vmatpush.bf16.msrb.mxu0 %v6447_v5  ;;  %v6380_v28 = vld [vmem:[#allocation5 + $0x270] sm:$0xf0] }
 0x1a3   :  { %v9282_v30 = vld [vmem:[#allocation5 + $0x454] sm:$0xf]  ;;  %v6383_v42 = vor.u32 %v9218_v27, %v6380_v28  ;;  %3327 = vmatpush.bf16.msrb.mxu3 %v7183_v33  ;;  %v6547_v27 = vor.u32 %v9263_v18, %v6546_v17  ;;  %v6514_v33 = vld [vmem:[#allocation5 + $0x358] sm:$0xf] }
 0x1a4   :  { %3300 = vmatpush.bf16.msrb.mxu1 %v6703_v6  ;;  %v6636_v35 = vld [vmem:[#allocation5 + $0x470] sm:$0xf0] }
 0x1a5   :  { %v9346_v36 = vld [vmem:[#allocation5 + $0x654] sm:$0xf]  ;;  %v6639_v45 = vor.u32 %v9282_v30, %v6636_v35  ;;  %v6258_v30 = vld [vmem:[#allocation5 + $0x158] sm:$0xf] }
 0x1a6   :  { %3313 = vmatpush.bf16.msrb.mxu2 %v6959_v29  ;;  %v6892_v37 = vld [vmem:[#allocation5 + $0x670] sm:$0xf0]  ;;  %3288 = vmatpush.bf16.msrb.mxu0 %v6415_v21  ;;  %v6291_v21 = vor.u32 %v9199_v16, %v6290_v15  ;;  %v9255_v35 = vld [vmem:[#allocation5 + $0x374] sm:$0xf0] }
 0x1a7   :  { %v9410_v38 = vld [vmem:[#allocation5 + $0x854] sm:$0xf]  ;;  %v6895_v46 = vor.u32 %v9346_v36, %v6892_v37  ;;  %v6418_v15 = vld [vmem:[#allocation5 + $0x298] sm:$0xf] }
 0x1a8   :  { %v7148_v39 = vld [vmem:[#allocation5 + $0x870] sm:$0xf0]  ;;  %3301 = vmatpush.bf16.msrb.mxu1 %v6671_v58  ;;  %v9231_v16 = vld [vmem:[#allocation5 + $0x2b4] sm:$0xf0] }
 0x1a9   :  { %v9210_v43 = vld [vmem:[#allocation5 + $0x214] sm:$0xf]  ;;  %v7151_v51 = vor.u32 %v9410_v38, %v7148_v39  ;;  %v6259_v38 = vor.u32 %v9191_v31, %v6258_v30  ;;  %v6419_v30 = vor.u32 %v9231_v16, %v6418_v15  ;;  %v7570_v15 = vld [vmem:[#allocation5 + $0xb98] sm:$0xf] }
 0x1aa   :  { %v6348_v44 = vld [vmem:[#allocation5 + $0x230] sm:$0xf0]  ;;  %3314 = vmatpush.bf16.msrb.mxu2 %v6927_v25  ;;  %3289 = vmatpush.bf16.msrb.mxu0 %v6383_v42  ;;  %v9519_v16 = vld [vmem:[#allocation5 + $0xbb4] sm:$0xf0] }
 0x1ab   :  { %v9274_v47 = vld [vmem:[#allocation5 + $0x414] sm:$0xf]  ;;  %v6351_v60 = vor.u32 %v9210_v43, %v6348_v44  ;;  %3328 = vmatpush.bf16.msrb.mxu3 %v7151_v51  ;;  %v6515_v44 = vor.u32 %v9255_v35, %v6514_v33  ;;  %v6130_v33 = vld [vmem:[#allocation5 + $0x58] sm:$0xf] }
 0x1ac   :  { %v6604_v48 = vld [vmem:[#allocation5 + $0x430] sm:$0xf0]  ;;  %3302 = vmatpush.bf16.msrb.mxu1 %v6639_v45  ;;  %v9159_v35 = vld [vmem:[#allocation5 + $0x74] sm:$0xf0] }
 0x1ad   :  { %v9338_v49 = vld [vmem:[#allocation5 + $0x614] sm:$0xf]  ;;  %v6607_v0 = vor.u32 %v9274_v47, %v6604_v48  ;;  %v9183_v47 = vld [vmem:[#allocation5 + $0x134] sm:$0xf0]  ;;  %v3084_v48 = vpop.f32.mrf.mxu0 }
 0x1ae   :  { %v6860_v52 = vld [vmem:[#allocation5 + $0x630] sm:$0xf0]  ;;  %3315 = vmatpush.bf16.msrb.mxu2 %v6895_v46  ;;  %3290 = vmatpush.bf16.msrb.mxu0 %v6351_v60  ;;  %v6226_v46 = vld [vmem:[#allocation5 + $0x118] sm:$0xf]  ;;  %v10187_v51 = vadd.f32 %v3084_v48, %v10180_v22 }
 0x1af   :  { %v9402_v53 = vld [vmem:[#allocation5 + $0x814] sm:$0xf]  ;;  %v6863_v2 = vor.u32 %v9338_v49, %v6860_v52  ;;  %v6482_v49 = vld [vmem:[#allocation5 + $0x318] sm:$0xf] }
 0x1b0   :  { %v7116_v54 = vld [vmem:[#allocation5 + $0x830] sm:$0xf0]  ;;  %3303 = vmatpush.bf16.msrb.mxu1 %v6607_v0  ;;  %v6483_v60 = vor.u32 %v9247_v50, %v6482_v49  ;;  %v6450_v0 = vld [vmem:[#allocation5 + $0x2d8] sm:$0xf]  ;;  %vm3545_vm2 = vcmp.gt.f32.partialorder %v10187_v51, 0.0 }
 0x1b1   :  { %v9522_v56 = vld [vmem:[#allocation5 + $0xbd4] sm:$0xf]  ;;  %v7119_v5 = vor.u32 %v9402_v53, %v7116_v54  ;;  %3291 = vmatmul.bf16.vlgmr.msrb.gmra.mxu0 %v10121_v19  ;;  %v6227_v54 = vor.u32 %v9183_v47, %v6226_v46  ;;  %v6098_v47 = vld [vmem:[#allocation5 + $0x18] sm:$0xf] }
 0x1b2   :  { %v7596_v57 = vld [vmem:[#allocation5 + $0xbf0] sm:$0xf0]  ;;  %3316 = vmatpush.bf16.msrb.mxu2 %v6863_v2  ;;  %v9239_v2 = vld [vmem:[#allocation5 + $0x2f4] sm:$0xf0] }
 0x1b3   :  { %v9586_v59 = vld [vmem:[#allocation5 + $0xdd4] sm:$0xf]  ;;  %v7599_v6 = vor.u32 %v9522_v56, %v7596_v57  ;;  %3329 = vmatpush.bf16.msrb.mxu3 %v7119_v5  ;;  %3304 = vmatmul.bf16.vlgmr.msrb.gmra.mxu1 %v10114_v7  ;;  %v9151_v49 = vld [vmem:[#allocation5 + $0x34] sm:$0xf0] }
 0x1b4   :  { %v7852_v61 = vld [vmem:[#allocation5 + $0xdf0] sm:$0xf0]  ;;  %v6354_v50 = vld [vmem:[#allocation5 + $0x218] sm:$0xf] }
 0x1b5   :  { %v7855_v29 = vor.u32 %v9586_v59, %v7852_v61  ;;  %v9514_v10 = vld [vmem:[#allocation5 + $0xb94] sm:$0xf]  ;;  %3335 = vmatpush.bf16.msra.mxu0 %v7599_v6  ;;  %3317 = vmatmul.bf16.vlgmr.msrb.gmra.mxu2 %v10116_v8  ;;  %v3097_v59 = vpop.f32.mrf.mxu1  ;;  %v3086_v18 = vpop.f32.mrf.mxu0 }
 0x1b6   :  { %v7564_v11 = vld [vmem:[#allocation5 + $0xbb0] sm:$0xf0]  ;;  %3361 = vmatpush.bf16.msra.mxu2 %v6323_v9  ;;  %3330 = vmatmul.bf16.vlgmr.msrb.gmra.mxu3 %v10128_v40  ;;  %v6451_v9 = vor.u32 %v9239_v2, %v6450_v0  ;;  %v6099_v0 = vor.u32 %v9151_v49, %v6098_v47  ;;  %v7602_v2 = vld [vmem:[#allocation5 + $0xbd8] sm:$0xf] }
 0x1b7   :  { %v9578_v12 = vld [vmem:[#allocation5 + $0xd94] sm:$0xf]  ;;  %v7567_v20 = vor.u32 %v9514_v10, %v7564_v11  ;;  %3348 = vmatpush.bf16.msra.mxu1 %v7855_v29  ;;  %3374 = vmatpush.bf16.msra.mxu3 %v6579_v24  ;;  %v6162_v11 = vld [vmem:[#allocation5 + $0x98] sm:$0xf]  ;;  %v3110_v24 = vpop.f32.mrf.mxu2 }
 0x1b8   :  { %v7820_v13 = vld [vmem:[#allocation5 + $0xdb0] sm:$0xf0]  ;;  %v3111_v17 = vadd.f32 %v3110_v24, %v3097_v59  ;;  %v7314_v24 = vld [vmem:[#allocation5 + $0x998] sm:$0xf] }
 0x1b9   :  { %v7823_v32 = vor.u32 %v9578_v12, %v7820_v13  ;;  %v9506_v23 = vld [vmem:[#allocation5 + $0xb54] sm:$0xf]  ;;  %3336 = vmatpush.bf16.msra.mxu0 %v7567_v20  ;;  %v9167_v12 = vld [vmem:[#allocation5 + $0xb4] sm:$0xf0]  ;;  %v3123_v13 = vpop.f32.mrf.mxu3 }
 0x1ba   :  { %v7532_v58 = vld [vmem:[#allocation5 + $0xb70] sm:$0xf0]  ;;  %3362 = vmatpush.bf16.msra.mxu2 %v6291_v21  ;;  %v6163_v21 = vor.u32 %v9167_v12, %v6162_v11  ;;  %v9391_v12 = vld [vmem:[#allocation5 + $0x7b4] sm:$0xf0] }
 0x1bb   :  { %v9570_v25 = vld [vmem:[#allocation5 + $0xd54] sm:$0xf]  ;;  %v7535_v36 = vor.u32 %v9506_v23, %v7532_v58  ;;  %3349 = vmatpush.bf16.msra.mxu1 %v7823_v32  ;;  %3375 = vmatpush.bf16.msra.mxu3 %v6547_v27  ;;  %v10189_v27 = vadd.f32 %v3123_v13, %v3111_v17  ;;  %v9455_v13 = vld [vmem:[#allocation5 + $0x9b4] sm:$0xf0] }
 0x1bc   :  { %v7788_v28 = vld [vmem:[#allocation5 + $0xd70] sm:$0xf0]  ;;  %v7506_v47 = vld [vmem:[#allocation5 + $0xb18] sm:$0xf] }
 0x1bd   :  { %v7791_v37 = vor.u32 %v9570_v25, %v7788_v28  ;;  %v9498_v39 = vld [vmem:[#allocation5 + $0xb14] sm:$0xf]  ;;  %3337 = vmatpush.bf16.msra.mxu0 %v7535_v36  ;;  %v3099_v28 = vpop.f32.mrf.mxu1  ;;  %v6386_v36 = vld [vmem:[#allocation5 + $0x258] sm:$0xf] }
 0x1be   :  { %v7500_v42 = vld [vmem:[#allocation5 + $0xb30] sm:$0xf0]  ;;  %3363 = vmatpush.bf16.msra.mxu2 %v6259_v38  ;;  %v7282_v28 = vld [vmem:[#allocation5 + $0x958] sm:$0xf] }
 0x1bf   :  { %v9562_v43 = vld [vmem:[#allocation5 + $0xd14] sm:$0xf]  ;;  %v7503_v52 = vor.u32 %v9498_v39, %v7500_v42  ;;  %3350 = vmatpush.bf16.msra.mxu1 %v7791_v37  ;;  %3376 = vmatpush.bf16.msra.mxu3 %v6515_v44  ;;  %v9223_v37 = vld [vmem:[#allocation5 + $0x274] sm:$0xf0]  ;;  %v6131_v44 = vor.u32 %v9159_v35, %v6130_v33 }
 0x1c0   :  { %v7756_v45 = vld [vmem:[#allocation5 + $0xd30] sm:$0xf0]  ;;  %v6387_v48 = vor.u32 %v9223_v37, %v6386_v36  ;;  %v9511_v33 = vld [vmem:[#allocation5 + $0xb74] sm:$0xf0] }
 0x1c1   :  { %v7759_v53 = vor.u32 %v9562_v43, %v7756_v45  ;;  %v9490_v55 = vld [vmem:[#allocation5 + $0xad4] sm:$0xf]  ;;  %3338 = vmatpush.bf16.msra.mxu0 %v7503_v52  ;;  %v9215_v52 = vld [vmem:[#allocation5 + $0x234] sm:$0xf0] }
 0x1c2   :  { %v7468_v56 = vld [vmem:[#allocation5 + $0xaf0] sm:$0xf0]  ;;  %3364 = vmatpush.bf16.msra.mxu2 %v6227_v54  ;;  %v3125_v54 = vpop.f32.mrf.mxu3 }
 0x1c3   :  { %v9554_v57 = vld [vmem:[#allocation5 + $0xcd4] sm:$0xf]  ;;  %v7471_v3 = vor.u32 %v9490_v55, %v7468_v56  ;;  %3351 = vmatpush.bf16.msra.mxu1 %v7759_v53  ;;  %3377 = vmatpush.bf16.msra.mxu3 %v6483_v60  ;;  %v3112_v53 = vpop.f32.mrf.mxu2  ;;  %v6834_v55 = vld [vmem:[#allocation5 + $0x5d8] sm:$0xf] }
 0x1c4   :  { %v7724_v61 = vld [vmem:[#allocation5 + $0xcf0] sm:$0xf0]  ;;  %v9335_v56 = vld [vmem:[#allocation5 + $0x5f4] sm:$0xf0] }
 0x1c5   :  { %v7727_v22 = vor.u32 %v9554_v57, %v7724_v61  ;;  %v9482_v5 = vld [vmem:[#allocation5 + $0xa94] sm:$0xf]  ;;  %3339 = vmatpush.bf16.msra.mxu0 %v7471_v3  ;;  %v7090_v57 = vld [vmem:[#allocation5 + $0x7d8] sm:$0xf] }
 0x1c6   :  { %v7436_v6 = vld [vmem:[#allocation5 + $0xab0] sm:$0xf0]  ;;  %3365 = vmatpush.bf16.msra.mxu2 %v6195_v4  ;;  %v9399_v60 = vld [vmem:[#allocation5 + $0x7f4] sm:$0xf0]  ;;  %v6835_v4 = vor.u32 %v9335_v56, %v6834_v55 }
 0x1c7   :  { %v9546_v29 = vld [vmem:[#allocation5 + $0xc94] sm:$0xf]  ;;  %v7439_v20 = vor.u32 %v9482_v5, %v7436_v6  ;;  %3352 = vmatpush.bf16.msra.mxu1 %v7727_v22  ;;  %3378 = vmatpush.bf16.msra.mxu3 %v6451_v9  ;;  %v7346_v61 = vld [vmem:[#allocation5 + $0x9d8] sm:$0xf]  ;;  %v6355_v22 = vor.u32 %v9215_v52, %v6354_v50  ;;  %v7091_v5 = vor.u32 %v9399_v60, %v7090_v57  ;;  %v3136_v50 = vpop.f32.mrf.mxu0 }
 0x1c8   :  { %v7692_v10 = vld [vmem:[#allocation5 + $0xcb0] sm:$0xf0]  ;;  %v9527_v3 = vld [vmem:[#allocation5 + $0xbf4] sm:$0xf0]  ;;  %v7347_v6 = vor.u32 %v9463_v62, %v7346_v61  ;;  %v3137_v54 = vadd.f32 %v3136_v50, %v10189_v27 }
 0x1c9   :  { %v7695_v32 = vor.u32 %v9546_v29, %v7692_v10  ;;  %v9474_v23 = vld [vmem:[#allocation5 + $0xa54] sm:$0xf]  ;;  %3340 = vmatpush.bf16.msra.mxu0 %v7439_v20  ;;  %v6802_v29 = vld [vmem:[#allocation5 + $0x598] sm:$0xf]  ;;  %v7603_v11 = vor.u32 %v9527_v3, %v7602_v2  ;;  %v7315_v20 = vor.u32 %v9455_v13, %v7314_v24 }
 0x1ca   :  { %v7404_v58 = vld [vmem:[#allocation5 + $0xa70] sm:$0xf0]  ;;  %3366 = vmatpush.bf16.msra.mxu2 %v6163_v21  ;;  %v9327_v9 = vld [vmem:[#allocation5 + $0x5b4] sm:$0xf0] }
 0x1cb   :  { %v9538_v25 = vld [vmem:[#allocation5 + $0xc54] sm:$0xf]  ;;  %v7407_v38 = vor.u32 %v9474_v23, %v7404_v58  ;;  %3353 = vmatpush.bf16.msra.mxu1 %v7695_v32  ;;  %3379 = vmatpush.bf16.msra.mxu3 %v6419_v30  ;;  %v7058_v10 = vld [vmem:[#allocation5 + $0x798] sm:$0xf]  ;;  %v6803_v17 = vor.u32 %v9327_v9, %v6802_v29  ;;  %v7571_v58 = vor.u32 %v9519_v16, %v7570_v15 }
 0x1cc   :  { %v7660_v31 = vld [vmem:[#allocation5 + $0xc70] sm:$0xf0]  ;;  %v7059_v18 = vor.u32 %v9391_v12, %v7058_v10  ;;  %v6770_v32 = vld [vmem:[#allocation5 + $0x558] sm:$0xf]  ;;  %v3175_v15 = vpop.f32.mrf.mxu3 }
 0x1cd   :  { %v9466_v39 = vld [vmem:[#allocation5 + $0xa14] sm:$0xf]  ;;  %v7663_v43 = vor.u32 %v9538_v25, %v7660_v31  ;;  %3341 = vmatpush.bf16.msra.mxu0 %v7407_v38  ;;  %v9319_v21 = vld [vmem:[#allocation5 + $0x574] sm:$0xf0] }
 0x1ce   :  { %v7372_v42 = vld [vmem:[#allocation5 + $0xa30] sm:$0xf0]  ;;  %3367 = vmatpush.bf16.msra.mxu2 %v6131_v44  ;;  %v7026_v23 = vld [vmem:[#allocation5 + $0x758] sm:$0xf]  ;;  %v6771_v35 = vor.u32 %v9319_v21, %v6770_v32 }
 0x1cf   :  { %v9530_v45 = vld [vmem:[#allocation5 + $0xc14] sm:$0xf]  ;;  %v7375_v59 = vor.u32 %v9466_v39, %v7372_v42  ;;  %3354 = vmatpush.bf16.msra.mxu1 %v7663_v43  ;;  %3380 = vmatpush.bf16.msra.mxu3 %v6387_v48  ;;  %v9383_v25 = vld [vmem:[#allocation5 + $0x774] sm:$0xf0]  ;;  %v3138_v32 = vpop.f32.mrf.mxu0 }
 0x1d0   :  { %v7628_v46 = vld [vmem:[#allocation5 + $0xc30] sm:$0xf0]  ;;  %v9447_v30 = vld [vmem:[#allocation5 + $0x974] sm:$0xf0]  ;;  %v7027_v36 = vor.u32 %v9383_v25, %v7026_v23 }
 0x1d1   :  { %v7631_v63 = vor.u32 %v9530_v45, %v7628_v46  ;;  %3342 = vmatpush.bf16.msra.mxu0 %v7375_v59  ;;  %v7538_v31 = vld [vmem:[#allocation5 + $0xb58] sm:$0xf]  ;;  %v7283_v37 = vor.u32 %v9447_v30, %v7282_v28  ;;  %v3149_v59 = vpop.f32.mrf.mxu1 }
 0x1d2   :  { %3368 = vmatpush.bf16.msra.mxu2 %v6099_v0  ;;  %v6738_v38 = vld [vmem:[#allocation5 + $0x518] sm:$0xf]  ;;  %v7539_v43 = vor.u32 %v9511_v33, %v7538_v31  ;;  %v3150_v3 = vadd.f32 %v3149_v59, %v3137_v54  ;;  %v9203_v59 = vld [vmem:[#allocation5 + $0x1dc] sm:$0xf] }
 0x1d3   :  { %3355 = vmatpush.bf16.msra.mxu1 %v7631_v63  ;;  %3381 = vmatpush.bf16.msra.mxu3 %v6355_v22  ;;  %v9311_v39 = vld [vmem:[#allocation5 + $0x534] sm:$0xf0] }
 0x1d4   :  { %3343 = vmatmul.bf16.vlgmr.msra.gmra.mxu0 %v10130_v41  ;;  %v6994_v42 = vld [vmem:[#allocation5 + $0x718] sm:$0xf]  ;;  %v6739_v49 = vor.u32 %v9311_v39, %v6738_v38 }
 0x1d5   :  { %3387 = vmatpush.bf16.msrb.mxu0 %v6835_v4  ;;  %3369 = vmatmul.bf16.vlgmr.msra.gmra.mxu2 %v10118_v14  ;;  %v9375_v44 = vld [vmem:[#allocation5 + $0x734] sm:$0xf0] }
 0x1d6   :  { %3413 = vmatpush.bf16.msrb.mxu2 %v7347_v6  ;;  %3356 = vmatmul.bf16.vlgmr.msra.gmra.mxu1 %v10126_v34  ;;  %v7250_v45 = vld [vmem:[#allocation5 + $0x918] sm:$0xf]  ;;  %v6995_v52 = vor.u32 %v9375_v44, %v6994_v42  ;;  %v3162_v6 = vpop.f32.mrf.mxu2 }
 0x1d7   :  { %3400 = vmatpush.bf16.msrb.mxu1 %v7091_v5  ;;  %3426 = vmatpush.bf16.msrb.mxu3 %v7603_v11  ;;  %v9439_v46 = vld [vmem:[#allocation5 + $0x934] sm:$0xf0]  ;;  %v3163_v11 = vadd.f32 %v3162_v6, %v3150_v3  ;;  %v9331_v3 = vld [vmem:[#allocation5 + $0x5dc] sm:$0xf] }
 0x1d8   :  { %3382 = vmatmul.bf16.vlgmr.msra.gmra.mxu3 %v10121_v19  ;;  %v9503_v48 = vld [vmem:[#allocation5 + $0xb34] sm:$0xf0]  ;;  %v7251_v53 = vor.u32 %v9439_v46, %v7250_v45 }
 0x1d9   :  { %3388 = vmatpush.bf16.msrb.mxu0 %v6803_v17  ;;  %v6706_v55 = vld [vmem:[#allocation5 + $0x4d8] sm:$0xf]  ;;  %v7507_v60 = vor.u32 %v9503_v48, %v7506_v47  ;;  %v3151_v30 = vpop.f32.mrf.mxu1 }
 0x1da   :  { %3414 = vmatpush.bf16.msrb.mxu2 %v7315_v20  ;;  %v9303_v56 = vld [vmem:[#allocation5 + $0x4f4] sm:$0xf0]  ;;  %v10196_v20 = vadd.f32 %v3175_v15, %v3163_v11  ;;  %v9323_v15 = vld [vmem:[#allocation5 + $0x59c] sm:$0xf] }
 0x1db   :  { %3401 = vmatpush.bf16.msrb.mxu1 %v7059_v18  ;;  %3427 = vmatpush.bf16.msrb.mxu3 %v7571_v58  ;;  %v6962_v57 = vld [vmem:[#allocation5 + $0x6d8] sm:$0xf]  ;;  %v6707_v22 = vor.u32 %v9303_v56, %v6706_v55  ;;  %v3177_v55 = vpop.f32.mrf.mxu3  ;;  %v9251_v30 = vld [vmem:[#allocation5 + $0x35c] sm:$0xf] }
 0x1dc   :  { %v9367_v61 = vld [vmem:[#allocation5 + $0x6f4] sm:$0xf0]  ;;  %vm3546_vm3 = vcmp.gt.f32.partialorder %v10196_v20, 0.0 }
 0x1dd   :  { %3389 = vmatpush.bf16.msrb.mxu0 %v6771_v35  ;;  %v7218_v62 = vld [vmem:[#allocation5 + $0x8d8] sm:$0xf]  ;;  %v6963_v4 = vor.u32 %v9367_v61, %v6962_v57  ;;  %v6324_v61 = vld [vmem:[#allocation5 + $0x1f8] sm:$0xf0] }
 0x1de   :  { %3415 = vmatpush.bf16.msrb.mxu2 %v7283_v37  ;;  %v9431_v63 = vld [vmem:[#allocation5 + $0x8f4] sm:$0xf0]  ;;  %v6327_v6 = vor.u32 %v9203_v59, %v6324_v61  ;;  %v9171_v59 = vld [vmem:[#allocation5 + $0xdc] sm:$0xf] }
 0x1df   :  { %3402 = vmatpush.bf16.msrb.mxu1 %v7027_v36  ;;  %3428 = vmatpush.bf16.msrb.mxu3 %v7539_v43  ;;  %v7474_v0 = vld [vmem:[#allocation5 + $0xad8] sm:$0xf]  ;;  %v7219_v5 = vor.u32 %v9431_v63, %v7218_v62  ;;  %v9267_v62 = vld [vmem:[#allocation5 + $0x3dc] sm:$0xf] }
 0x1e0   :  { %v9495_v2 = vld [vmem:[#allocation5 + $0xaf4] sm:$0xf0]  ;;  %v6580_v63 = vld [vmem:[#allocation5 + $0x3f8] sm:$0xf0] }
 0x1e1   :  { %3390 = vmatpush.bf16.msrb.mxu0 %v6739_v49  ;;  %v6674_v27 = vld [vmem:[#allocation5 + $0x498] sm:$0xf]  ;;  %v7475_v10 = vor.u32 %v9495_v2, %v7474_v0  ;;  %v3164_v49 = vpop.f32.mrf.mxu2 }
 0x1e2   :  { %3416 = vmatpush.bf16.msrb.mxu2 %v7251_v53  ;;  %v9295_v29 = vld [vmem:[#allocation5 + $0x4b4] sm:$0xf0]  ;;  %v6740_v49 = vld [vmem:[#allocation5 + $0x538] sm:$0xf0] }
 0x1e3   :  { %3403 = vmatpush.bf16.msrb.mxu1 %v6995_v52  ;;  %v6930_v9 = vld [vmem:[#allocation5 + $0x698] sm:$0xf]  ;;  %3429 = vmatpush.bf16.msrb.mxu3 %v7507_v60  ;;  %v6675_v18 = vor.u32 %v9295_v29, %v6674_v27  ;;  %v6583_v27 = vor.u32 %v9267_v62, %v6580_v63  ;;  %v6196_v62 = vld [vmem:[#allocation5 + $0xf8] sm:$0xf0] }
 0x1e4   :  { %v9359_v12 = vld [vmem:[#allocation5 + $0x6b4] sm:$0xf0]  ;;  %v9235_v63 = vld [vmem:[#allocation5 + $0x2dc] sm:$0xf] }
 0x1e5   :  { %v7186_v24 = vld [vmem:[#allocation5 + $0x898] sm:$0xf]  ;;  %3391 = vmatpush.bf16.msrb.mxu0 %v6707_v22  ;;  %v6931_v21 = vor.u32 %v9359_v12, %v6930_v9  ;;  %v6836_v22 = vld [vmem:[#allocation5 + $0x5f8] sm:$0xf0] }
 0x1e6   :  { %v9423_v13 = vld [vmem:[#allocation5 + $0x8b4] sm:$0xf0]  ;;  %3417 = vmatpush.bf16.msrb.mxu2 %v7219_v5  ;;  %v6839_v11 = vor.u32 %v9331_v3, %v6836_v22  ;;  %v6292_v12 = vld [vmem:[#allocation5 + $0x1b8] sm:$0xf0] }
 0x1e7   :  { %v7442_v16 = vld [vmem:[#allocation5 + $0xa98] sm:$0xf]  ;;  %3404 = vmatpush.bf16.msrb.mxu1 %v6963_v4  ;;  %v7187_v23 = vor.u32 %v9423_v13, %v7186_v24  ;;  %3430 = vmatpush.bf16.msrb.mxu3 %v7475_v10  ;;  %v9195_v10 = vld [vmem:[#allocation5 + $0x19c] sm:$0xf] }
 0x1e8   :  { %v9487_v17 = vld [vmem:[#allocation5 + $0xab4] sm:$0xf0]  ;;  %v9259_v24 = vld [vmem:[#allocation5 + $0x39c] sm:$0xf] }
 0x1e9   :  { %v6642_v58 = vld [vmem:[#allocation5 + $0x458] sm:$0xf]  ;;  %v7443_v31 = vor.u32 %v9487_v17, %v7442_v16  ;;  %3392 = vmatpush.bf16.msrb.mxu0 %v6675_v18  ;;  %v6548_v13 = vld [vmem:[#allocation5 + $0x3b8] sm:$0xf0]  ;;  %v6295_v18 = vor.u32 %v9195_v10, %v6292_v12 }
 0x1ea   :  { %v9287_v25 = vld [vmem:[#allocation5 + $0x474] sm:$0xf0]  ;;  %3418 = vmatpush.bf16.msrb.mxu2 %v7187_v23  ;;  %v6804_v16 = vld [vmem:[#allocation5 + $0x5b8] sm:$0xf0]  ;;  %v6551_v32 = vor.u32 %v9259_v24, %v6548_v13 }
 0x1eb   :  { %v6898_v28 = vld [vmem:[#allocation5 + $0x658] sm:$0xf]  ;;  %v6643_v39 = vor.u32 %v9287_v25, %v6642_v58  ;;  %3405 = vmatpush.bf16.msrb.mxu1 %v6931_v21  ;;  %3431 = vmatpush.bf16.msrb.mxu3 %v7443_v31  ;;  %v9187_v58 = vld [vmem:[#allocation5 + $0x15c] sm:$0xf]  ;;  %v6807_v25 = vor.u32 %v9323_v15, %v6804_v16 }
 0x1ec   :  { %v9351_v33 = vld [vmem:[#allocation5 + $0x674] sm:$0xf0]  ;;  %v6516_v31 = vld [vmem:[#allocation5 + $0x378] sm:$0xf0] }
 0x1ed   :  { %v7154_v35 = vld [vmem:[#allocation5 + $0x858] sm:$0xf]  ;;  %v6899_v44 = vor.u32 %v9351_v33, %v6898_v28  ;;  %3393 = vmatpush.bf16.msrb.mxu0 %v6643_v39  ;;  %v6260_v28 = vld [vmem:[#allocation5 + $0x178] sm:$0xf0] }
 0x1ee   :  { %v9415_v36 = vld [vmem:[#allocation5 + $0x874] sm:$0xf0]  ;;  %v9315_v33 = vld [vmem:[#allocation5 + $0x55c] sm:$0xf] }
 0x1ef   :  { %v7410_v37 = vld [vmem:[#allocation5 + $0xa58] sm:$0xf]  ;;  %v7155_v45 = vor.u32 %v9415_v36, %v7154_v35  ;;  %3406 = vmatpush.bf16.msrb.mxu1 %v6899_v44  ;;  %v6772_v35 = vld [vmem:[#allocation5 + $0x578] sm:$0xf0] }
 0x1f0   :  { %v9479_v38 = vld [vmem:[#allocation5 + $0xa74] sm:$0xf0]  ;;  %v6775_v44 = vor.u32 %v9315_v33, %v6772_v35  ;;  %v6708_v3 = vld [vmem:[#allocation5 + $0x4f8] sm:$0xf0] }
 0x1f1   :  { %v6610_v42 = vld [vmem:[#allocation5 + $0x418] sm:$0xf]  ;;  %v7411_v50 = vor.u32 %v9479_v38, %v7410_v37  ;;  %3419 = vmatpush.bf16.msrb.mxu2 %v7155_v45  ;;  %v6263_v37 = vor.u32 %v9187_v58, %v6260_v28  ;;  %v6519_v38 = vor.u32 %v9251_v30, %v6516_v31  ;;  %v6228_v45 = vld [vmem:[#allocation5 + $0x138] sm:$0xf0] }
 0x1f2   :  { %v9279_v43 = vld [vmem:[#allocation5 + $0x434] sm:$0xf0]  ;;  %v9227_v12 = vld [vmem:[#allocation5 + $0x29c] sm:$0xf] }
 0x1f3   :  { %v6866_v46 = vld [vmem:[#allocation5 + $0x618] sm:$0xf]  ;;  %v6611_v60 = vor.u32 %v9279_v43, %v6610_v42  ;;  %3432 = vmatpush.bf16.msrb.mxu3 %v7411_v50  ;;  %v9179_v43 = vld [vmem:[#allocation5 + $0x11c] sm:$0xf] }
 0x1f4   :  { %v9343_v47 = vld [vmem:[#allocation5 + $0x634] sm:$0xf0]  ;;  %v6420_v24 = vld [vmem:[#allocation5 + $0x2b8] sm:$0xf0] }
 0x1f5   :  { %v7122_v48 = vld [vmem:[#allocation5 + $0x818] sm:$0xf]  ;;  %v6867_v0 = vor.u32 %v9343_v47, %v6866_v46  ;;  %3394 = vmatpush.bf16.msrb.mxu0 %v6611_v60  ;;  %v9243_v46 = vld [vmem:[#allocation5 + $0x31c] sm:$0xf] }
 0x1f6   :  { %v9407_v52 = vld [vmem:[#allocation5 + $0x834] sm:$0xf0]  ;;  %v6484_v47 = vld [vmem:[#allocation5 + $0x338] sm:$0xf0] }
 0x1f7   :  { %v7378_v53 = vld [vmem:[#allocation5 + $0xa18] sm:$0xf]  ;;  %v7123_v2 = vor.u32 %v9407_v52, %v7122_v48  ;;  %3407 = vmatpush.bf16.msrb.mxu1 %v6867_v0  ;;  %v9307_v48 = vld [vmem:[#allocation5 + $0x51c] sm:$0xf]  ;;  %v3188_v52 = vpop.f32.mrf.mxu0  ;;  %v6487_v55 = vor.u32 %v9243_v46, %v6484_v47 }
 0x1f8   :  { %v9471_v54 = vld [vmem:[#allocation5 + $0xa34] sm:$0xf0]  ;;  %3395 = vmatmul.bf16.vlgmr.msrb.gmra.mxu0 %v10114_v7  ;;  %v6743_v61 = vor.u32 %v9307_v48, %v6740_v49  ;;  %v6452_v0 = vld [vmem:[#allocation5 + $0x2f8] sm:$0xf0] }
 0x1f9   :  { %v7858_v56 = vld [vmem:[#allocation5 + $0xdd8] sm:$0xf]  ;;  %v7379_v4 = vor.u32 %v9471_v54, %v7378_v53  ;;  %3420 = vmatpush.bf16.msrb.mxu2 %v7123_v2  ;;  %v3201_v53 = vpop.f32.mrf.mxu1  ;;  %v6231_v54 = vor.u32 %v9179_v43, %v6228_v45  ;;  %v9299_v2 = vld [vmem:[#allocation5 + $0x4dc] sm:$0xf] }
 0x1fa   :  { %v9591_v57 = vld [vmem:[#allocation5 + $0xdf4] sm:$0xf0]  ;;  %3408 = vmatmul.bf16.vlgmr.msrb.gmra.mxu1 %v10116_v8  ;;  %v3202_v60 = vadd.f32 %v3201_v53, %v3188_v52  ;;  %v6711_v10 = vor.u32 %v9299_v2, %v6708_v3  ;;  %v9291_v15 = vld [vmem:[#allocation5 + $0x49c] sm:$0xf] }
 0x1fb   :  { %v7859_v5 = vor.u32 %v9591_v57, %v7858_v56  ;;  %v7826_v29 = vld [vmem:[#allocation5 + $0xd98] sm:$0xf]  ;;  %3433 = vmatpush.bf16.msrb.mxu3 %v7379_v4  ;;  %3452 = vmatpush.bf16.msra.mxu1 %v6327_v6  ;;  %v6199_v4 = vor.u32 %v9171_v59, %v6196_v62  ;;  %v6676_v16 = vld [vmem:[#allocation5 + $0x4b8] sm:$0xf0] }
 0x1fc   :  { %v9583_v9 = vld [vmem:[#allocation5 + $0xdb4] sm:$0xf0]  ;;  %3421 = vmatmul.bf16.vlgmr.msrb.gmra.mxu2 %v10128_v40  ;;  %v9155_v31 = vld [vmem:[#allocation5 + $0x5c] sm:$0xf]  ;;  %v6679_v33 = vor.u32 %v9291_v15, %v6676_v16 }
 0x1fd   :  { %3439 = vmatpush.bf16.msra.mxu0 %v7859_v5  ;;  %v7827_v17 = vor.u32 %v9583_v9, %v7826_v29  ;;  %3465 = vmatpush.bf16.msra.mxu2 %v6583_v27  ;;  %v7794_v21 = vld [vmem:[#allocation5 + $0xd58] sm:$0xf]  ;;  %v6455_v5 = vor.u32 %v9235_v63, %v6452_v0  ;;  %v9163_v29 = vld [vmem:[#allocation5 + $0x9c] sm:$0xf]  ;;  %v3214_v9 = vpop.f32.mrf.mxu2 }
 0x1fe   :  { %v9575_v23 = vld [vmem:[#allocation5 + $0xd74] sm:$0xf0]  ;;  %3434 = vmatmul.bf16.vlgmr.msrb.gmra.mxu3 %v10130_v41  ;;  %v3215_v13 = vadd.f32 %v3214_v9, %v3202_v60  ;;  %v6132_v35 = vld [vmem:[#allocation5 + $0x78] sm:$0xf0] }
 0x1ff   :  { %3478 = vmatpush.bf16.msra.mxu3 %v6839_v11  ;;  %v7795_v36 = vor.u32 %v9575_v23, %v7794_v21  ;;  %3453 = vmatpush.bf16.msra.mxu1 %v6295_v18  ;;  %v7762_v39 = vld [vmem:[#allocation5 + $0xd18] sm:$0xf]  ;;  %v6164_v11 = vld [vmem:[#allocation5 + $0xb8] sm:$0xf0]  ;;  %v6135_v45 = vor.u32 %v9155_v31, %v6132_v35 }
 0x200   :  { %v9567_v42 = vld [vmem:[#allocation5 + $0xd34] sm:$0xf0]  ;;  %v6167_v58 = vor.u32 %v9163_v29, %v6164_v11  ;;  %v9147_v47 = vld [vmem:[#allocation5 + $0x1c] sm:$0xf] }
 0x201   :  { %3440 = vmatpush.bf16.msra.mxu0 %v7827_v17  ;;  %3466 = vmatpush.bf16.msra.mxu2 %v6551_v32  ;;  %v7763_v50 = vor.u32 %v9567_v42, %v7762_v39  ;;  %v7730_v56 = vld [vmem:[#allocation5 + $0xcd8] sm:$0xf]  ;;  %v3227_v17 = vpop.f32.mrf.mxu3  ;;  %v3190_v32 = vpop.f32.mrf.mxu0  ;;  %v6644_v39 = vld [vmem:[#allocation5 + $0x478] sm:$0xf0] }
 0x202   :  { %v9559_v57 = vld [vmem:[#allocation5 + $0xcf4] sm:$0xf0]  ;;  %v3203_v21 = vpop.f32.mrf.mxu1  ;;  %v10202_v23 = vadd.f32 %v3227_v17, %v3215_v13  ;;  %v6100_v48 = vld [vmem:[#allocation5 + $0x38] sm:$0xf0] }
 0x203   :  { %3479 = vmatpush.bf16.msra.mxu3 %v6807_v25  ;;  %3454 = vmatpush.bf16.msra.mxu1 %v6263_v37  ;;  %v7731_v22 = vor.u32 %v9559_v57, %v7730_v56  ;;  %v7698_v6 = vld [vmem:[#allocation5 + $0xc98] sm:$0xf]  ;;  %v6423_v25 = vor.u32 %v9227_v12, %v6420_v24  ;;  %v6388_v37 = vld [vmem:[#allocation5 + $0x278] sm:$0xf0]  ;;  %v6103_v2 = vor.u32 %v9147_v47, %v6100_v48 }
 0x204   :  { %v9551_v27 = vld [vmem:[#allocation5 + $0xcb4] sm:$0xf0]  ;;  %v9211_v49 = vld [vmem:[#allocation5 + $0x21c] sm:$0xf] }
 0x205   :  { %3441 = vmatpush.bf16.msra.mxu0 %v7795_v36  ;;  %3467 = vmatpush.bf16.msra.mxu2 %v6519_v38  ;;  %v7699_v18 = vor.u32 %v9551_v27, %v7698_v6  ;;  %v7666_v28 = vld [vmem:[#allocation5 + $0xc58] sm:$0xf]  ;;  %v9219_v36 = vld [vmem:[#allocation5 + $0x25c] sm:$0xf] }
 0x206   :  { %v9543_v30 = vld [vmem:[#allocation5 + $0xc74] sm:$0xf0]  ;;  %v9283_v38 = vld [vmem:[#allocation5 + $0x45c] sm:$0xf]  ;;  %v6391_v46 = vor.u32 %v9219_v36, %v6388_v37 }
 0x207   :  { %3480 = vmatpush.bf16.msra.mxu3 %v6775_v44  ;;  %3455 = vmatpush.bf16.msra.mxu1 %v6231_v54  ;;  %v7667_v42 = vor.u32 %v9543_v30, %v7666_v28  ;;  %v7634_v43 = vld [vmem:[#allocation5 + $0xc18] sm:$0xf]  ;;  %v6647_v52 = vor.u32 %v9283_v38, %v6644_v39  ;;  %v6356_v53 = vld [vmem:[#allocation5 + $0x238] sm:$0xf0] }
 0x208   :  { %v9535_v44 = vld [vmem:[#allocation5 + $0xc34] sm:$0xf0]  ;;  %v9275_v54 = vld [vmem:[#allocation5 + $0x41c] sm:$0xf]  ;;  %v6359_v3 = vor.u32 %v9211_v49, %v6356_v53 }
 0x209   :  { %3442 = vmatpush.bf16.msra.mxu0 %v7763_v50  ;;  %3468 = vmatpush.bf16.msra.mxu2 %v6487_v55  ;;  %v3216_v50 = vpop.f32.mrf.mxu2  ;;  %v6612_v55 = vld [vmem:[#allocation5 + $0x438] sm:$0xf0]  ;;  %v3229_v60 = vpop.f32.mrf.mxu3 }
 0x20a   :  { %v9395_v56 = vld [vmem:[#allocation5 + $0x7dc] sm:$0xf] }
 0x20b   :  { %3481 = vmatpush.bf16.msra.mxu3 %v6743_v61  ;;  %3456 = vmatpush.bf16.msra.mxu1 %v6199_v4  ;;  %v7092_v57 = vld [vmem:[#allocation5 + $0x7f8] sm:$0xf0]  ;;  %v7635_v61 = vor.u32 %v9535_v44, %v7634_v43 }
 0x20c   :  { %v9459_v59 = vld [vmem:[#allocation5 + $0x9dc] sm:$0xf]  ;;  %v7095_v6 = vor.u32 %v9395_v56, %v7092_v57 }
 0x20d   :  { %3443 = vmatpush.bf16.msra.mxu0 %v7731_v22  ;;  %3469 = vmatpush.bf16.msra.mxu2 %v6455_v5  ;;  %v7348_v62 = vld [vmem:[#allocation5 + $0x9f8] sm:$0xf0]  ;;  %v6615_v5 = vor.u32 %v9275_v54, %v6612_v55 }
 0x20e   :  { %v9523_v63 = vld [vmem:[#allocation5 + $0xbdc] sm:$0xf]  ;;  %v7351_v27 = vor.u32 %v9459_v59, %v7348_v62 }
 0x20f   :  { %3482 = vmatpush.bf16.msra.mxu3 %v6711_v10  ;;  %3457 = vmatpush.bf16.msra.mxu1 %v6167_v58  ;;  %v7604_v0 = vld [vmem:[#allocation5 + $0xbf8] sm:$0xf0] }
 0x210   :  { %v9587_v22 = vld [vmem:[#allocation5 + $0xddc] sm:$0xf]  ;;  %v7607_v29 = vor.u32 %v9523_v63, %v7604_v0  ;;  %v3253_v53 = vpop.f32.mrf.mxu1 }
 0x211   :  { %3444 = vmatpush.bf16.msra.mxu0 %v7699_v18  ;;  %3470 = vmatpush.bf16.msra.mxu2 %v6423_v25  ;;  %v7860_v4 = vld [vmem:[#allocation5 + $0xdf8] sm:$0xf0] }
 0x212   :  { %v9387_v9 = vld [vmem:[#allocation5 + $0x79c] sm:$0xf]  ;;  %v7863_v12 = vor.u32 %v9587_v22, %v7860_v4 }
 0x213   :  { %3483 = vmatpush.bf16.msra.mxu3 %v6679_v33  ;;  %3458 = vmatpush.bf16.msra.mxu1 %v6135_v45  ;;  %v7060_v10 = vld [vmem:[#allocation5 + $0x7b8] sm:$0xf0] }
 0x214   :  { %v9451_v11 = vld [vmem:[#allocation5 + $0x99c] sm:$0xf]  ;;  %v7063_v18 = vor.u32 %v9387_v9, %v7060_v10 }
 0x215   :  { %3445 = vmatpush.bf16.msra.mxu0 %v7667_v42  ;;  %3471 = vmatpush.bf16.msra.mxu2 %v6391_v46  ;;  %v7316_v24 = vld [vmem:[#allocation5 + $0x9b8] sm:$0xf0] }
 0x216   :  { %v9515_v13 = vld [vmem:[#allocation5 + $0xb9c] sm:$0xf]  ;;  %v7319_v32 = vor.u32 %v9451_v11, %v7316_v24 }
 0x217   :  { %3484 = vmatpush.bf16.msra.mxu3 %v6647_v52  ;;  %v7572_v15 = vld [vmem:[#allocation5 + $0xbb8] sm:$0xf0]  ;;  %3459 = vmatpush.bf16.msra.mxu1 %v6103_v2  ;;  %v3240_v52 = vpop.f32.mrf.mxu0 }
 0x218   :  { %v9579_v16 = vld [vmem:[#allocation5 + $0xd9c] sm:$0xf]  ;;  %v7575_v21 = vor.u32 %v9515_v13, %v7572_v15  ;;  %v3241_v55 = vadd.f32 %v3240_v52, %v10202_v23 }
 0x219   :  { %3446 = vmatpush.bf16.msra.mxu0 %v7635_v61  ;;  %3472 = vmatpush.bf16.msra.mxu2 %v6359_v3  ;;  %v7828_v17 = vld [vmem:[#allocation5 + $0xdb8] sm:$0xf0] }
 0x21a   :  { %v9379_v58 = vld [vmem:[#allocation5 + $0x75c] sm:$0xf]  ;;  %v7831_v30 = vor.u32 %v9579_v16, %v7828_v17  ;;  %3460 = vmatmul.bf16.vlgmr.msra.gmra.mxu1 %v10118_v14  ;;  %v3254_v3 = vadd.f32 %v3253_v53, %v3241_v55  ;;  %v10211_v16 = vpop.f32.mrf.mxu3  ;;  %v7978_v53 = vld [vmem:[#allocation7 + $0xe0] sm:$0xf] }
 0x21b   :  { %3485 = vmatpush.bf16.msra.mxu3 %v6615_v5  ;;  %3504 = vmatpush.bf16.msrb.mxu1 %v7351_v27  ;;  %v7028_v25 = vld [vmem:[#allocation5 + $0x778] sm:$0xf0] }
 0x21c   :  { %v9443_v28 = vld [vmem:[#allocation5 + $0x95c] sm:$0xf]  ;;  %3447 = vmatmul.bf16.vlgmr.msra.gmra.mxu0 %v10126_v34  ;;  %3473 = vmatmul.bf16.vlgmr.msra.gmra.mxu2 %v10121_v19  ;;  %v7031_v38 = vor.u32 %v9379_v58, %v7028_v25 }
 0x21d   :  { %3491 = vmatpush.bf16.msrb.mxu0 %v7095_v6  ;;  %3517 = vmatpush.bf16.msrb.mxu2 %v7607_v29  ;;  %v7284_v31 = vld [vmem:[#allocation5 + $0x978] sm:$0xf0]  ;;  %v3266_v6 = vpop.f32.mrf.mxu2 }
 0x21e   :  { %v9507_v33 = vld [vmem:[#allocation5 + $0xb5c] sm:$0xf]  ;;  %3486 = vmatmul.bf16.vlgmr.msra.gmra.mxu3 %v10114_v7  ;;  %v7287_v39 = vor.u32 %v9443_v28, %v7284_v31  ;;  %v10209_v10 = vadd.f32 %v3266_v6, %v3254_v3  ;;  %v9618_v6 = vld [vmem:[#allocation7 + $0xcc] sm:$0xf0] }
 0x21f   :  { %3530 = vmatpush.bf16.msrb.mxu3 %v7863_v12  ;;  %v7540_v35 = vld [vmem:[#allocation5 + $0xb78] sm:$0xf0]  ;;  %3505 = vmatpush.bf16.msrb.mxu1 %v7319_v32  ;;  %v3255_v32 = vpop.f32.mrf.mxu1 }
 0x220   :  { %v9571_v36 = vld [vmem:[#allocation5 + $0xd5c] sm:$0xf]  ;;  %v7543_v42 = vor.u32 %v9507_v33, %v7540_v35  ;;  %v9614_v32 = vld [vmem:[#allocation7 + $0xac] sm:$0xf0]  ;;  %vm3547_vm4 = vcmp.gt.f32.partialorder %v10209_v10, 0.0 }
 0x221   :  { %v7796_v37 = vld [vmem:[#allocation5 + $0xd78] sm:$0xf0]  ;;  %3492 = vmatpush.bf16.msrb.mxu0 %v7063_v18  ;;  %3518 = vmatpush.bf16.msrb.mxu2 %v7575_v21  ;;  %v3242_v18 = vpop.f32.mrf.mxu0 }
 0x222   :  { %v9371_v43 = vld [vmem:[#allocation5 + $0x71c] sm:$0xf]  ;;  %v7799_v46 = vor.u32 %v9571_v36, %v7796_v37  ;;  %v3281_v55 = vpop.f32.mrf.mxu3  ;;  %v7946_v18 = vld [vmem:[#allocation7 + $0xa0] sm:$0xf] }
 0x223   :  { %v6996_v44 = vld [vmem:[#allocation5 + $0x738] sm:$0xf0]  ;;  %3531 = vmatpush.bf16.msrb.mxu3 %v7831_v30  ;;  %3506 = vmatpush.bf16.msrb.mxu1 %v7287_v39  ;;  %v8298_v55 = vld [vmem:[#allocation7 + $0x360] sm:$0xf] }
 0x224   :  { %v9435_v45 = vld [vmem:[#allocation5 + $0x91c] sm:$0xf]  ;;  %v6999_v7 = vor.u32 %v9371_v43, %v6996_v44 }
 0x225   :  { %v7252_v47 = vld [vmem:[#allocation5 + $0x938] sm:$0xf0]  ;;  %3493 = vmatpush.bf16.msrb.mxu0 %v7031_v38  ;;  %3519 = vmatpush.bf16.msrb.mxu2 %v7543_v42 }
 0x226   :  { %v9499_v48 = vld [vmem:[#allocation5 + $0xb1c] sm:$0xf]  ;;  %v7255_v14 = vor.u32 %v9435_v45, %v7252_v47 }
 0x227   :  { %v7508_v19 = vld [vmem:[#allocation5 + $0xb38] sm:$0xf0]  ;;  %3532 = vmatpush.bf16.msrb.mxu3 %v7799_v46 }
 0x228   :  { %v9563_v49 = vld [vmem:[#allocation5 + $0xd1c] sm:$0xf]  ;;  %v7511_v54 = vor.u32 %v9499_v48, %v7508_v19  ;;  %3507 = vmatpush.bf16.msrb.mxu1 %v7255_v14  ;;  %v3268_v19 = vpop.f32.mrf.mxu2  ;;  %v9622_v14 = vld [vmem:[#allocation7 + $0xec] sm:$0xf0] }
 0x229   :  { %v7764_v50 = vld [vmem:[#allocation5 + $0xd38] sm:$0xf0]  ;;  %3494 = vmatpush.bf16.msrb.mxu0 %v6999_v7  ;;  %v7979_v3 = vor.u32 %v9622_v14, %v7978_v53  ;;  %v7914_v19 = vld [vmem:[#allocation7 + $0x60] sm:$0xf]  ;;  %v9638_v53 = vld [vmem:[#allocation7 + $0x16c] sm:$0xf0] }
 0x22a   :  { %v9363_v56 = vld [vmem:[#allocation5 + $0x6dc] sm:$0xf]  ;;  %v7767_v60 = vor.u32 %v9563_v49, %v7764_v50  ;;  %3520 = vmatpush.bf16.msrb.mxu2 %v7511_v54  ;;  %v8106_v54 = vld [vmem:[#allocation7 + $0x1e0] sm:$0xf] }
 0x22b   :  { %v6964_v57 = vld [vmem:[#allocation5 + $0x6f8] sm:$0xf0]  ;;  %v8170_v14 = vld [vmem:[#allocation7 + $0x260] sm:$0xf] }
 0x22c   :  { %v9427_v59 = vld [vmem:[#allocation5 + $0x8dc] sm:$0xf]  ;;  %v6967_v22 = vor.u32 %v9363_v56, %v6964_v57  ;;  %3533 = vmatpush.bf16.msrb.mxu3 %v7767_v60  ;;  %v9654_v57 = vld [vmem:[#allocation7 + $0x1ec] sm:$0xf0] }
 0x22d   :  { %v7220_v61 = vld [vmem:[#allocation5 + $0x8f8] sm:$0xf0]  ;;  %v9686_v60 = vld [vmem:[#allocation7 + $0x2ec] sm:$0xf0] }
 0x22e   :  { %v9491_v62 = vld [vmem:[#allocation5 + $0xadc] sm:$0xf]  ;;  %v7223_v4 = vor.u32 %v9427_v59, %v7220_v61  ;;  %3495 = vmatpush.bf16.msrb.mxu0 %v6967_v22  ;;  %v8234_v59 = vld [vmem:[#allocation7 + $0x2e0] sm:$0xf]  ;;  %v8107_v22 = vor.u32 %v9654_v57, %v8106_v54  ;;  %v9670_v54 = vld [vmem:[#allocation7 + $0x26c] sm:$0xf0] }
 0x22f   :  { %v7476_v63 = vld [vmem:[#allocation5 + $0xaf8] sm:$0xf0] }
 0x230   :  { %v9555_v0 = vld [vmem:[#allocation5 + $0xcdc] sm:$0xf]  ;;  %v7479_v5 = vor.u32 %v9491_v62, %v7476_v63  ;;  %3508 = vmatpush.bf16.msrb.mxu1 %v7223_v4  ;;  %v8362_v63 = vld [vmem:[#allocation7 + $0x3e0] sm:$0xf]  ;;  %v8235_v4 = vor.u32 %v9686_v60, %v8234_v59  ;;  %v8171_v60 = vor.u32 %v9670_v54, %v8170_v14 }
 0x231   :  { %v7732_v2 = vld [vmem:[#allocation5 + $0xcf8] sm:$0xf0] }
 0x232   :  { %v9355_v27 = vld [vmem:[#allocation5 + $0x69c] sm:$0xf]  ;;  %v7735_v9 = vor.u32 %v9555_v0, %v7732_v2  ;;  %3521 = vmatpush.bf16.msrb.mxu2 %v7479_v5  ;;  %v9718_v0 = vld [vmem:[#allocation7 + $0x3ec] sm:$0xf0]  ;;  %v7962_v5 = vld [vmem:[#allocation7 + $0xc0] sm:$0xf] }
 0x233   :  { %v6932_v23 = vld [vmem:[#allocation5 + $0x6b8] sm:$0xf0] }
 0x234   :  { %v9419_v29 = vld [vmem:[#allocation5 + $0x89c] sm:$0xf]  ;;  %v6935_v17 = vor.u32 %v9355_v27, %v6932_v23  ;;  %3534 = vmatpush.bf16.msrb.mxu3 %v7735_v9  ;;  %v8090_v27 = vld [vmem:[#allocation7 + $0x1c0] sm:$0xf]  ;;  %v8363_v23 = vor.u32 %v9718_v0, %v8362_v63 }
 0x235   :  { %v7188_v11 = vld [vmem:[#allocation5 + $0x8b8] sm:$0xf0]  ;;  %v8218_v9 = vld [vmem:[#allocation7 + $0x2c0] sm:$0xf] }
 0x236   :  { %v9483_v12 = vld [vmem:[#allocation5 + $0xa9c] sm:$0xf]  ;;  %v7191_v21 = vor.u32 %v9419_v29, %v7188_v11  ;;  %3496 = vmatpush.bf16.msrb.mxu0 %v6935_v17  ;;  %v9650_v29 = vld [vmem:[#allocation7 + $0x1cc] sm:$0xf0]  ;;  %v8026_v63 = vld [vmem:[#allocation7 + $0x140] sm:$0xf] }
 0x237   :  { %v7444_v24 = vld [vmem:[#allocation5 + $0xab8] sm:$0xf0]  ;;  %v9682_v11 = vld [vmem:[#allocation7 + $0x2cc] sm:$0xf0] }
 0x238   :  { %v9547_v13 = vld [vmem:[#allocation5 + $0xc9c] sm:$0xf]  ;;  %v7447_v58 = vor.u32 %v9483_v12, %v7444_v24  ;;  %3509 = vmatpush.bf16.msrb.mxu1 %v7191_v21  ;;  %v8346_v12 = vld [vmem:[#allocation7 + $0x3c0] sm:$0xf]  ;;  %v9714_v24 = vld [vmem:[#allocation7 + $0x3cc] sm:$0xf0]  ;;  %v8219_v17 = vor.u32 %v9682_v11, %v8218_v9  ;;  %v10221_v0 = vpop.f32.mrf.mxu2 }
 0x239   :  { %v7700_v15 = vld [vmem:[#allocation5 + $0xcb8] sm:$0xf0]  ;;  %v8074_v21 = vld [vmem:[#allocation7 + $0x1a0] sm:$0xf] }
 0x23a   :  { %v9347_v25 = vld [vmem:[#allocation5 + $0x65c] sm:$0xf]  ;;  %v7703_v31 = vor.u32 %v9547_v13, %v7700_v15  ;;  %3522 = vmatpush.bf16.msrb.mxu2 %v7447_v58  ;;  %v7963_v13 = vor.u32 %v9618_v6, %v7962_v5  ;;  %v8091_v15 = vor.u32 %v9650_v29, %v8090_v27  ;;  %v8347_v58 = vor.u32 %v9714_v24, %v8346_v12  ;;  %v10223_v5 = vpop.f32.mrf.mxu3  ;;  %v8282_v6 = vld [vmem:[#allocation7 + $0x340] sm:$0xf]  ;;  %v9698_v27 = vld [vmem:[#allocation7 + $0x34c] sm:$0xf0] }
 0x23b   :  { %v6900_v28 = vld [vmem:[#allocation5 + $0x678] sm:$0xf0]  ;;  %v7882_v24 = vld [vmem:[#allocation7 + $0x20] sm:$0xf] }
 0x23c   :  { %v9411_v30 = vld [vmem:[#allocation5 + $0x85c] sm:$0xf]  ;;  %v6903_v39 = vor.u32 %v9347_v25, %v6900_v28  ;;  %3535 = vmatpush.bf16.msrb.mxu3 %v7703_v31  ;;  %v9646_v25 = vld [vmem:[#allocation7 + $0x1ac] sm:$0xf0]  ;;  %v8202_v28 = vld [vmem:[#allocation7 + $0x2a0] sm:$0xf] }
 0x23d   :  { %v7156_v33 = vld [vmem:[#allocation5 + $0x878] sm:$0xf0]  ;;  %v8330_v31 = vld [vmem:[#allocation7 + $0x3a0] sm:$0xf] }
 0x23e   :  { %v9475_v35 = vld [vmem:[#allocation5 + $0xa5c] sm:$0xf]  ;;  %v7159_v44 = vor.u32 %v9411_v30, %v7156_v33  ;;  %3497 = vmatpush.bf16.msrb.mxu0 %v6903_v39  ;;  %v9678_v30 = vld [vmem:[#allocation7 + $0x2ac] sm:$0xf0]  ;;  %v8058_v39 = vld [vmem:[#allocation7 + $0x180] sm:$0xf] }
 0x23f   :  { %v7412_v36 = vld [vmem:[#allocation5 + $0xa78] sm:$0xf0]  ;;  %v9710_v33 = vld [vmem:[#allocation7 + $0x3ac] sm:$0xf0] }
 0x240   :  { %v9539_v37 = vld [vmem:[#allocation5 + $0xc5c] sm:$0xf]  ;;  %v7415_v45 = vor.u32 %v9475_v35, %v7412_v36  ;;  %3510 = vmatpush.bf16.msrb.mxu1 %v7159_v44  ;;  %v7947_v35 = vor.u32 %v9614_v32, %v7946_v18  ;;  %v8075_v36 = vor.u32 %v9646_v25, %v8074_v21  ;;  %v8186_v44 = vld [vmem:[#allocation7 + $0x280] sm:$0xf]  ;;  %v8283_v18 = vor.u32 %v9698_v27, %v8282_v6  ;;  %v9630_v32 = vld [vmem:[#allocation7 + $0x12c] sm:$0xf0] }
 0x241   :  { %v7668_v38 = vld [vmem:[#allocation5 + $0xc78] sm:$0xf0]  ;;  %v8138_v21 = vld [vmem:[#allocation7 + $0x220] sm:$0xf]  ;;  %v3552_v25 = vmul.f32 0.2, %v10171_v1 }
 0x242   :  { %v9339_v42 = vld [vmem:[#allocation5 + $0x61c] sm:$0xf]  ;;  %v7671_v49 = vor.u32 %v9539_v37, %v7668_v38  ;;  %3523 = vmatpush.bf16.msrb.mxu2 %v7415_v45  ;;  %v8203_v37 = vor.u32 %v9678_v30, %v8202_v28  ;;  %v7930_v38 = vld [vmem:[#allocation7 + $0x80] sm:$0xf]  ;;  %v9694_v30 = vld [vmem:[#allocation7 + $0x32c] sm:$0xf0] }
 0x243   :  { %v6868_v43 = vld [vmem:[#allocation5 + $0x638] sm:$0xf0]  ;;  %v8314_v45 = vld [vmem:[#allocation7 + $0x380] sm:$0xf] }
 0x244   :  { %v9403_v46 = vld [vmem:[#allocation5 + $0x81c] sm:$0xf]  ;;  %v6871_v56 = vor.u32 %v9339_v42, %v6868_v43  ;;  %3536 = vmatpush.bf16.msrb.mxu3 %v7671_v49  ;;  %v8331_v42 = vor.u32 %v9710_v33, %v8330_v31  ;;  %v9642_v43 = vld [vmem:[#allocation7 + $0x18c] sm:$0xf0]  ;;  %v8266_v28 = vld [vmem:[#allocation7 + $0x320] sm:$0xf] }
 0x245   :  { %v7124_v47 = vld [vmem:[#allocation5 + $0x838] sm:$0xf0]  ;;  %v9606_v49 = vld [vmem:[#allocation7 + $0x6c] sm:$0xf0]  ;;  %v3553_v31 = vmul.f32 0.2, %v10187_v51 }
 0x246   :  { %v9467_v48 = vld [vmem:[#allocation5 + $0xa1c] sm:$0xf]  ;;  %v7127_v61 = vor.u32 %v9403_v46, %v7124_v47  ;;  %3498 = vmatpush.bf16.msrb.mxu0 %v6871_v56  ;;  %v10217_v47 = vpop.f32.mrf.mxu0  ;;  %v9702_v56 = vld [vmem:[#allocation7 + $0x36c] sm:$0xf0]  ;;  %v7915_v57 = vor.u32 %v9606_v49, %v7914_v19  ;;  %v3554_v19 = vmul.f32 0.2, %v10196_v20 }
 0x247   :  { %v7380_v50 = vld [vmem:[#allocation5 + $0xa38] sm:$0xf0] }
 0x248   :  { %v9531_v7 = vld [vmem:[#allocation5 + $0xc1c] sm:$0xf]  ;;  %v7383_v62 = vor.u32 %v9467_v48, %v7380_v50  ;;  %3511 = vmatpush.bf16.msrb.mxu1 %v7127_v61  ;;  %v8042_v50 = vld [vmem:[#allocation7 + $0x160] sm:$0xf] }
 0x249   :  { %v7636_v52 = vld [vmem:[#allocation5 + $0xc38] sm:$0xf0]  ;;  %3499 = vmatmul.bf16.vlgmr.msrb.gmra.mxu0 %v10116_v8  ;;  %v9610_v8 = vld [vmem:[#allocation7 + $0x8c] sm:$0xf0]  ;;  %v8043_v59 = vor.u32 %v9638_v53, %v8042_v50  ;;  %v7898_v61 = vld [vmem:[#allocation7 + $0x40] sm:$0xf] }
 0x24a   :  { %v7639_v2 = vor.u32 %v9531_v7, %v7636_v52  ;;  %3524 = vmatpush.bf16.msrb.mxu2 %v7383_v62  ;;  %5111 = vmatpush.bf16.msra.mxu0 %v7979_v3  ;;  %v7931_v46 = vor.u32 %v9610_v8, %v7930_v38  ;;  %v10219_v7 = vpop.f32.mrf.mxu1  ;;  %v9602_v62 = vld [vmem:[#allocation7 + $0x4c] sm:$0xf0]  ;;  %v7994_v8 = vld [vmem:[#allocation7 + $0x100] sm:$0xf] }
 0x24b   :  { %3512 = vmatmul.bf16.vlgmr.msrb.gmra.mxu1 %v10128_v40  ;;  %v9674_v40 = vld [vmem:[#allocation7 + $0x28c] sm:$0xf0]  ;;  %v7899_v29 = vor.u32 %v9602_v62, %v7898_v61  ;;  %v8618_v50 = vld [vmem:[#allocation7 + $0x5e0] sm:$0xf]  ;;  %v3561_v61 = vsel %vm3545_vm2, %v10187_v51, %v3553_v31 }
 0x24c   :  { %3537 = vmatpush.bf16.msrb.mxu3 %v7639_v2  ;;  %5124 = vmatpush.bf16.msra.mxu1 %v8107_v22  ;;  %v8187_v48 = vor.u32 %v9674_v40, %v8186_v44  ;;  %v8299_v2 = vor.u32 %v9702_v56, %v8298_v55  ;;  %v9634_v3 = vld [vmem:[#allocation7 + $0x14c] sm:$0xf0]  ;;  %v8154_v22 = vld [vmem:[#allocation7 + $0x240] sm:$0xf]  ;;  %v10249_v27 = vpack.c.bf16 %v3561_v61, %v3561_v61 }
 0x24d   :  { %3525 = vmatmul.bf16.vlgmr.msrb.gmra.mxu2 %v10130_v41  ;;  %v9706_v41 = vld [vmem:[#allocation7 + $0x38c] sm:$0xf0]  ;;  %v8027_v11 = vor.u32 %v9634_v3, %v8026_v63  ;;  %v8122_v44 = vld [vmem:[#allocation7 + $0x200] sm:$0xf] }
 0x24e   :  { %5137 = vmatpush.bf16.msra.mxu2 %v8235_v4  ;;  %5112 = vmatpush.bf16.msra.mxu0 %v7963_v13  ;;  %v8315_v52 = vor.u32 %v9706_v41, %v8314_v45  ;;  %v9666_v4 = vld [vmem:[#allocation7 + $0x24c] sm:$0xf0]  ;;  %v3294_v9 = vpop.f32.mrf.mxu0  ;;  %v8250_v45 = vld [vmem:[#allocation7 + $0x300] sm:$0xf]  ;;  %v3333_v41 = vpop.f32.mrf.mxu3 }
 0x24f   :  { %3538 = vmatmul.bf16.vlgmr.msrb.gmra.mxu3 %v10126_v34  ;;  %v8059_v34 = vor.u32 %v9642_v43, %v8058_v39  ;;  %v8155_v12 = vor.u32 %v9666_v4, %v8154_v22  ;;  %v9598_v13 = vld [vmem:[#allocation7 + $0x2c] sm:$0xf0]  ;;  %v8267_v43 = vor.u32 %v9694_v30, %v8266_v28  ;;  %v8474_v63 = vld [vmem:[#allocation7 + $0x4c0] sm:$0xf] }
 0x250   :  { %5150 = vmatpush.bf16.msra.mxu3 %v8363_v23  ;;  %5125 = vmatpush.bf16.msra.mxu1 %v8091_v15  ;;  %v3551_v23 = vmul.f32 0.2, %v10155_v26  ;;  %v8010_v15 = vld [vmem:[#allocation7 + $0x120] sm:$0xf]  ;;  %v7883_v33 = vor.u32 %v9598_v13, %v7882_v24  ;;  %v9594_v38 = vld [vmem:[#allocation7 + $0xc] sm:$0xf0] }
 0x251   :  { %v9626_v39 = vld [vmem:[#allocation7 + $0x10c] sm:$0xf0]  ;;  %v8602_v3 = vld [vmem:[#allocation7 + $0x5c0] sm:$0xf] }
 0x252   :  { %5138 = vmatpush.bf16.msra.mxu2 %v8219_v17  ;;  %5113 = vmatpush.bf16.msra.mxu0 %v7947_v35  ;;  %v3307_v17 = vpop.f32.mrf.mxu1  ;;  %v7866_v35 = vld [vmem:[#allocation7] sm:$0xf]  ;;  %v9658_v40 = vld [vmem:[#allocation7 + $0x20c] sm:$0xf0]  ;;  %v7995_v53 = vor.u32 %v9626_v39, %v7994_v8  ;;  %v3559_v54 = vsel %vm3543_vm0, %v10155_v26, %v3551_v23  ;;  %v3562_v26 = vsel %vm3546_vm3, %v10196_v20, %v3554_v19 }
 0x253   :  { %v7867_v49 = vor.u32 %v9594_v38, %v7866_v35  ;;  %v8123_v14 = vor.u32 %v9658_v40, %v8122_v44  ;;  %v9778_v22 = vld [vmem:[#allocation7 + $0x5cc] sm:$0xf0]  ;;  %v10245_v4 = vpack.c.bf16 %v3559_v54, %v3559_v54  ;;  %v8730_v23 = vld [vmem:[#allocation7 + $0x6c0] sm:$0xf]  ;;  %v10251_v9 = vpack.c.bf16 %v3562_v26, %v3562_v26 }
 0x254   :  { %5151 = vmatpush.bf16.msra.mxu3 %v8347_v58  ;;  %5126 = vmatpush.bf16.msra.mxu1 %v8075_v36  ;;  %v9662_v58 = vld [vmem:[#allocation7 + $0x22c] sm:$0xf0]  ;;  %v8011_v36 = vor.u32 %v9630_v32, %v8010_v15  ;;  %v3293_v20 = vadd.f32 %v10217_v47, %v10211_v16  ;;  %v8586_v13 = vld [vmem:[#allocation7 + $0x5a0] sm:$0xf]  ;;  %v3555_v26 = vmul.f32 0.2, %v10209_v10 }
 0x255   :  { %v9742_v24 = vld [vmem:[#allocation7 + $0x4ac] sm:$0xf0]  ;;  %v8714_v32 = vld [vmem:[#allocation7 + $0x6a0] sm:$0xf] }
 0x256   :  { %5139 = vmatpush.bf16.msra.mxu2 %v8203_v37  ;;  %5114 = vmatpush.bf16.msra.mxu0 %v7931_v46  ;;  %v8139_v37 = vor.u32 %v9662_v58, %v8138_v21  ;;  %v9690_v46 = vld [vmem:[#allocation7 + $0x30c] sm:$0xf0]  ;;  %v3306_v47 = vadd.f32 %v10219_v7, %v3293_v20  ;;  %v8442_v58 = vld [vmem:[#allocation7 + $0x480] sm:$0xf]  ;;  %v3344_v31 = vpop.f32.mrf.mxu0 }
 0x257   :  { %v8251_v55 = vor.u32 %v9690_v46, %v8250_v45  ;;  %v9774_v15 = vld [vmem:[#allocation7 + $0x5ac] sm:$0xf0]  ;;  %v8570_v28 = vld [vmem:[#allocation7 + $0x580] sm:$0xf] }
 0x258   :  { %5152 = vmatpush.bf16.msra.mxu3 %v8331_v42  ;;  %5127 = vmatpush.bf16.msra.mxu1 %v8059_v34  ;;  %v3320_v42 = vpop.f32.mrf.mxu2  ;;  %v8490_v34 = vld [vmem:[#allocation7 + $0x4e0] sm:$0xf]  ;;  %v9806_v16 = vld [vmem:[#allocation7 + $0x6ac] sm:$0xf0]  ;;  %v8587_v21 = vor.u32 %v9774_v15, %v8586_v13  ;;  %v3319_v8 = vadd.f32 %v10221_v0, %v3306_v47  ;;  %v9620_v13 = vld [vmem:[#allocation7 + $0xe4] sm:$0xf] }
 0x259   :  { %v9770_v30 = vld [vmem:[#allocation7 + $0x58c] sm:$0xf0]  ;;  %v8426_v42 = vld [vmem:[#allocation7 + $0x460] sm:$0xf]  ;;  %v7980_v15 = vld [vmem:[#allocation7 + $0xf0] sm:$0xf0] }
 0x25a   :  { %5140 = vmatpush.bf16.msra.mxu2 %v8187_v48  ;;  %5115 = vmatpush.bf16.msra.mxu0 %v7915_v57  ;;  %v9750_v48 = vld [vmem:[#allocation7 + $0x4ec] sm:$0xf0]  ;;  %v8746_v57 = vld [vmem:[#allocation7 + $0x6e0] sm:$0xf]  ;;  %v8571_v39 = vor.u32 %v9770_v30, %v8570_v28  ;;  %v9652_v47 = vld [vmem:[#allocation7 + $0x1e4] sm:$0xf] }
 0x25b   :  { %v8491_v56 = vor.u32 %v9750_v48, %v8490_v34  ;;  %v9802_v38 = vld [vmem:[#allocation7 + $0x68c] sm:$0xf0]  ;;  %v8682_v41 = vld [vmem:[#allocation7 + $0x660] sm:$0xf]  ;;  %v3332_v34 = vadd.f32 %v10223_v5, %v3319_v8  ;;  %v10264_v54 = vpop.f32.mrf.mxu3  ;;  %v8236_v8 = vld [vmem:[#allocation7 + $0x2f0] sm:$0xf0] }
 0x25c   :  { %5153 = vmatpush.bf16.msra.mxu3 %v8315_v52  ;;  %5128 = vmatpush.bf16.msra.mxu1 %v8043_v59  ;;  %v9782_v52 = vld [vmem:[#allocation7 + $0x5ec] sm:$0xf0]  ;;  %v8410_v19 = vld [vmem:[#allocation7 + $0x440] sm:$0xf] }
 0x25d   :  { %v9814_v59 = vld [vmem:[#allocation7 + $0x6ec] sm:$0xf0]  ;;  %v8619_v62 = vor.u32 %v9782_v52, %v8618_v50  ;;  %v8538_v50 = vld [vmem:[#allocation7 + $0x540] sm:$0xf] }
 0x25e   :  { %5141 = vmatpush.bf16.msra.mxu2 %v8171_v60  ;;  %5116 = vmatpush.bf16.msra.mxu0 %v7899_v29  ;;  %v3560_v60 = vsel %vm3544_vm1, %v10171_v1, %v3552_v25  ;;  %v8747_v6 = vor.u32 %v9814_v59, %v8746_v57  ;;  %v9810_v29 = vld [vmem:[#allocation7 + $0x6cc] sm:$0xf0]  ;;  %v8666_v57 = vld [vmem:[#allocation7 + $0x640] sm:$0xf] }
 0x25f   :  { %v10247_v1 = vpack.c.bf16 %v3560_v60, %v3560_v60  ;;  %v8731_v17 = vor.u32 %v9810_v29, %v8730_v23  ;;  %v9738_v25 = vld [vmem:[#allocation7 + $0x48c] sm:$0xf0]  ;;  %v8394_v61 = vld [vmem:[#allocation7 + $0x420] sm:$0xf] }
 0x260   :  { %5154 = vmatpush.bf16.msra.mxu3 %v8299_v2  ;;  %5129 = vmatpush.bf16.msra.mxu1 %v8027_v11  ;;  %v9746_v2 = vld [vmem:[#allocation7 + $0x4cc] sm:$0xf0]  ;;  %v8603_v11 = vor.u32 %v9778_v22, %v8602_v3  ;;  %v8443_v35 = vor.u32 %v9738_v25, %v8442_v58  ;;  %v10262_v52 = vpop.f32.mrf.mxu2  ;;  %v8378_v22 = vld [vmem:[#allocation7 + $0x400] sm:$0xf] }
 0x261   :  { %v8475_v51 = vor.u32 %v9746_v2, %v8474_v63  ;;  %v9734_v7 = vld [vmem:[#allocation7 + $0x46c] sm:$0xf0]  ;;  %v8522_v63 = vld [vmem:[#allocation7 + $0x520] sm:$0xf] }
 0x262   :  { %5142 = vmatpush.bf16.msra.mxu2 %v8155_v12  ;;  %5117 = vmatpush.bf16.msra.mxu0 %v7883_v33  ;;  %v8458_v12 = vld [vmem:[#allocation7 + $0x4a0] sm:$0xf]  ;;  %v8715_v33 = vor.u32 %v9806_v16, %v8714_v32  ;;  %v9766_v44 = vld [vmem:[#allocation7 + $0x56c] sm:$0xf0]  ;;  %v8427_v45 = vor.u32 %v9734_v7, %v8426_v42  ;;  %v7964_v7 = vld [vmem:[#allocation7 + $0xd0] sm:$0xf0] }
 0x263   :  { %v9798_v46 = vld [vmem:[#allocation7 + $0x66c] sm:$0xf0]  ;;  %v8650_v29 = vld [vmem:[#allocation7 + $0x620] sm:$0xf]  ;;  %v3385_v25 = vpop.f32.mrf.mxu3 }
 0x264   :  { %5155 = vmatpush.bf16.msra.mxu3 %v8283_v18  ;;  %5130 = vmatpush.bf16.msra.mxu1 %v8011_v36  ;;  %v8459_v18 = vor.u32 %v9742_v24, %v8458_v12  ;;  %v3357_v36 = vpop.f32.mrf.mxu1  ;;  %v9762_v0 = vld [vmem:[#allocation7 + $0x54c] sm:$0xf0]  ;;  %v8506_v12 = vld [vmem:[#allocation7 + $0x500] sm:$0xf] }
 0x265   :  { %v9794_v59 = vld [vmem:[#allocation7 + $0x64c] sm:$0xf0]  ;;  %v8539_v5 = vor.u32 %v9762_v0, %v8538_v50  ;;  %v9612_v50 = vld [vmem:[#allocation7 + $0xa4] sm:$0xf]  ;;  %v8220_v0 = vld [vmem:[#allocation7 + $0x2d0] sm:$0xf0] }
 0x266   :  { %5143 = vmatpush.bf16.msra.mxu2 %v8139_v37  ;;  %5118 = vmatpush.bf16.msra.mxu0 %v7867_v49  ;;  %v8698_v37 = vld [vmem:[#allocation7 + $0x680] sm:$0xf]  ;;  %v9730_v49 = vld [vmem:[#allocation7 + $0x44c] sm:$0xf0] }
 0x267   :  { %v8699_v40 = vor.u32 %v9802_v38, %v8698_v37  ;;  %v9758_v2 = vld [vmem:[#allocation7 + $0x52c] sm:$0xf0]  ;;  %v9616_v37 = vld [vmem:[#allocation7 + $0xc4] sm:$0xf] }
 0x268   :  { %5156 = vmatpush.bf16.msra.mxu3 %v8267_v43  ;;  %5131 = vmatpush.bf16.msra.mxu1 %v7995_v53  ;;  %v8554_v43 = vld [vmem:[#allocation7 + $0x560] sm:$0xf]  ;;  %v3345_v53 = vadd.f32 %v3344_v31, %v3332_v34  ;;  %v9722_v23 = vld [vmem:[#allocation7 + $0x40c] sm:$0xf0]  ;;  %v9684_v38 = vld [vmem:[#allocation7 + $0x2e4] sm:$0xf] }
 0x269   :  { %5119 = vmatmul.bf16.vlgmr.msra.gmra.mxu0 %v10245_v4  ;;  %v8555_v48 = vor.u32 %v9766_v44, %v8554_v43  ;;  %v9790_v20 = vld [vmem:[#allocation7 + $0x62c] sm:$0xf0]  ;;  %v8379_v30 = vor.u32 %v9722_v23, %v8378_v22  ;;  %v8634_v31 = vld [vmem:[#allocation7 + $0x600] sm:$0xf]  ;;  %v7932_v22 = vld [vmem:[#allocation7 + $0x90] sm:$0xf0] }
 0x26a   :  { %5144 = vmatpush.bf16.msra.mxu2 %v8123_v14  ;;  %5163 = vmatpush.bf16.msrb.mxu0 %v8491_v56  ;;  %v8683_v14 = vor.u32 %v9798_v46, %v8682_v41  ;;  %v8411_v56 = vor.u32 %v9730_v49, %v8410_v19  ;;  %v3358_v3 = vadd.f32 %v3357_v36, %v3345_v53  ;;  %v9754_v24 = vld [vmem:[#allocation7 + $0x50c] sm:$0xf0]  ;;  %v8858_v43 = vld [vmem:[#allocation7 + $0x7c0] sm:$0xf]  ;;  %v8092_v41 = vld [vmem:[#allocation7 + $0x1d0] sm:$0xf0] }
 0x26b   :  { %5132 = vmatmul.bf16.vlgmr.msra.gmra.mxu1 %v10247_v1  ;;  %v9846_v32 = vld [vmem:[#allocation7 + $0x7ec] sm:$0xf0]  ;;  %v8651_v58 = vor.u32 %v9790_v20, %v8650_v29  ;;  %v7983_v36 = vor.u32 %v9620_v13, %v7980_v15  ;;  %v7967_v49 = vor.u32 %v9616_v37, %v7964_v7  ;;  %v9640_v23 = vld [vmem:[#allocation7 + $0x184] sm:$0xf]  ;;  %v8060_v29 = vld [vmem:[#allocation7 + $0x190] sm:$0xf0] }
 0x26c   :  { %5157 = vmatpush.bf16.msra.mxu3 %v8251_v55  ;;  %5176 = vmatpush.bf16.msrb.mxu1 %v8619_v62  ;;  %v3346_v55 = vpop.f32.mrf.mxu0  ;;  %v3359_v60 = vpop.f32.mrf.mxu1  ;;  %v9726_v62 = vld [vmem:[#allocation7 + $0x42c] sm:$0xf0]  ;;  %v3556_v16 = vmul.f32 0.2, %v3358_v3  ;;  %vm3548_vm5 = vcmp.gt.f32.partialorder %v3358_v3, 0.0 }
 0x26d   :  { %5145 = vmatmul.bf16.vlgmr.msra.gmra.mxu2 %v10249_v27  ;;  %v9842_v44 = vld [vmem:[#allocation7 + $0x7cc] sm:$0xf0]  ;;  %v7948_v55 = vld [vmem:[#allocation7 + $0xb0] sm:$0xf0]  ;;  %v9672_v13 = vld [vmem:[#allocation7 + $0x284] sm:$0xf] }
 0x26e   :  { %5189 = vmatpush.bf16.msrb.mxu2 %v8747_v6  ;;  %5164 = vmatpush.bf16.msrb.mxu0 %v8475_v51  ;;  %v8667_v6 = vor.u32 %v9794_v59, %v8666_v57  ;;  %v8395_v51 = vor.u32 %v9726_v62, %v8394_v61  ;;  %v8859_v34 = vor.u32 %v9842_v44, %v8858_v43  ;;  %v9838_v57 = vld [vmem:[#allocation7 + $0x7ac] sm:$0xf0]  ;;  %v9644_v59 = vld [vmem:[#allocation7 + $0x1a4] sm:$0xf]  ;;  %v8076_v60 = vld [vmem:[#allocation7 + $0x1b0] sm:$0xf0] }
 0x26f   :  { %5158 = vmatmul.bf16.vlgmr.msra.gmra.mxu3 %v10251_v9  ;;  %v7951_v62 = vor.u32 %v9612_v50, %v7948_v55  ;;  %v8188_v15 = vld [vmem:[#allocation7 + $0x290] sm:$0xf0]  ;;  %v9628_v55 = vld [vmem:[#allocation7 + $0x124] sm:$0xf] }
 0x270   :  { %5177 = vmatpush.bf16.msrb.mxu1 %v8603_v11  ;;  %v8523_v11 = vor.u32 %v9758_v2, %v8522_v63  ;;  %v9608_v63 = vld [vmem:[#allocation7 + $0x84] sm:$0xf]  ;;  %v8028_v7 = vld [vmem:[#allocation7 + $0x150] sm:$0xf0] }
 0x271   :  { %v9676_v2 = vld [vmem:[#allocation7 + $0x2a4] sm:$0xf]  ;;  %v7884_v50 = vld [vmem:[#allocation7 + $0x30] sm:$0xf0] }
 0x272   :  { %5190 = vmatpush.bf16.msrb.mxu2 %v8731_v17  ;;  %5165 = vmatpush.bf16.msrb.mxu0 %v8459_v18  ;;  %v3372_v17 = vpop.f32.mrf.mxu2  ;;  %v8874_v18 = vld [vmem:[#allocation7 + $0x7e0] sm:$0xf] }
 0x273   :  { %v8875_v28 = vor.u32 %v9846_v32, %v8874_v18  ;;  %v8063_v17 = vor.u32 %v9640_v23, %v8060_v29  ;;  %v7916_v18 = vld [vmem:[#allocation7 + $0x70] sm:$0xf0]  ;;  %v8762_v23 = vld [vmem:[#allocation7 + $0x700] sm:$0xf]  ;;  %v9818_v29 = vld [vmem:[#allocation7 + $0x70c] sm:$0xf0] }
 0x274   :  { %5178 = vmatpush.bf16.msrb.mxu1 %v8587_v21  ;;  %v8108_v21 = vld [vmem:[#allocation7 + $0x1f0] sm:$0xf0] }
 0x275   :  { %5202 = vmatpush.bf16.msrb.mxu3 %v8875_v28  ;;  %v8111_v42 = vor.u32 %v9652_v47, %v8108_v21  ;;  %v10278_v32 = vpop.f32.mrf.mxu0  ;;  %v9830_v47 = vld [vmem:[#allocation7 + $0x76c] sm:$0xf0]  ;;  %v9636_v21 = vld [vmem:[#allocation7 + $0x164] sm:$0xf] }
 0x276   :  { %5191 = vmatpush.bf16.msrb.mxu2 %v8715_v33  ;;  %5166 = vmatpush.bf16.msrb.mxu0 %v8443_v35  ;;  %v9786_v33 = vld [vmem:[#allocation7 + $0x60c] sm:$0xf0]  ;;  %v8507_v35 = vor.u32 %v9754_v24, %v8506_v12  ;;  %v7935_v12 = vor.u32 %v9608_v63, %v7932_v22  ;;  %v9604_v24 = vld [vmem:[#allocation7 + $0x64] sm:$0xf]  ;;  %v3384_v22 = vadd.f32 %v10264_v54, %v10262_v52  ;;  %v8124_v54 = vld [vmem:[#allocation7 + $0x210] sm:$0xf0] }
 0x277   :  { %v8635_v46 = vor.u32 %v9786_v33, %v8634_v31  ;;  %v10280_v25 = vpop.f32.mrf.mxu1  ;;  %v7919_v31 = vor.u32 %v9604_v24, %v7916_v18  ;;  %v9600_v33 = vld [vmem:[#allocation7 + $0x44] sm:$0xf] }
 0x278   :  { %5179 = vmatpush.bf16.msrb.mxu1 %v8571_v39  ;;  %v3563_v39 = vsel %vm3547_vm4, %v10209_v10, %v3555_v26  ;;  %v9680_v10 = vld [vmem:[#allocation7 + $0x2c4] sm:$0xf]  ;;  %v8204_v26 = vld [vmem:[#allocation7 + $0x2b0] sm:$0xf0] }
 0x279   :  { %v10272_v19 = vpack.c.bf16 %v3563_v39, %v3563_v39  ;;  %5203 = vmatpush.bf16.msrb.mxu3 %v8859_v34  ;;  %v8223_v61 = vor.u32 %v9680_v10, %v8220_v0  ;;  %v9826_v39 = vld [vmem:[#allocation7 + $0x74c] sm:$0xf0]  ;;  %v9664_v34 = vld [vmem:[#allocation7 + $0x244] sm:$0xf]  ;;  %v8778_v0 = vld [vmem:[#allocation7 + $0x720] sm:$0xf] }
 0x27a   :  { %5192 = vmatpush.bf16.msrb.mxu2 %v8699_v40  ;;  %5167 = vmatpush.bf16.msrb.mxu0 %v8427_v45  ;;  %v3564_v40 = vsel %vm3548_vm5, %v3358_v3, %v3556_v16  ;;  %v9648_v45 = vld [vmem:[#allocation7 + $0x1c4] sm:$0xf]  ;;  %v8079_v3 = vor.u32 %v9644_v59, %v8076_v60  ;;  %v8810_v16 = vld [vmem:[#allocation7 + $0x760] sm:$0xf] }
 0x27b   :  { %v10274_v53 = vpack.c.bf16 %v3564_v40, %v3564_v40  ;;  %v8811_v28 = vor.u32 %v9830_v47, %v8810_v16  ;;  %v9592_v60 = vld [vmem:[#allocation7 + $0x4] sm:$0xf] }
 0x27c   :  { %5180 = vmatpush.bf16.msrb.mxu1 %v8555_v48  ;;  %v8239_v48 = vor.u32 %v9684_v38, %v8236_v8  ;;  %v7900_v38 = vld [vmem:[#allocation7 + $0x50] sm:$0xf0]  ;;  %v8794_v8 = vld [vmem:[#allocation7 + $0x740] sm:$0xf]  ;;  %v9624_v63 = vld [vmem:[#allocation7 + $0x104] sm:$0xf] }
 0x27d   :  { %v8795_v44 = vor.u32 %v9826_v39, %v8794_v8  ;;  %v3398_v10 = vpop.f32.mrf.mxu0  ;;  %v9716_v24 = vld [vmem:[#allocation7 + $0x3e4] sm:$0xf]  ;;  %v8604_v8 = vld [vmem:[#allocation7 + $0x5d0] sm:$0xf0] }
 0x27e   :  { %5193 = vmatpush.bf16.msrb.mxu2 %v8683_v14  ;;  %5168 = vmatpush.bf16.msrb.mxu0 %v8411_v56  ;;  %v8095_v14 = vor.u32 %v9648_v45, %v8092_v41  ;;  %v8842_v56 = vld [vmem:[#allocation7 + $0x7a0] sm:$0xf]  ;;  %v7903_v41 = vor.u32 %v9600_v33, %v7900_v38  ;;  %v9656_v52 = vld [vmem:[#allocation7 + $0x204] sm:$0xf] }
 0x27f   :  { %v10282_v43 = vpop.f32.mrf.mxu2  ;;  %v9776_v38 = vld [vmem:[#allocation7 + $0x5c4] sm:$0xf]  ;;  %v8127_v39 = vor.u32 %v9656_v52, %v8124_v54  ;;  %v8540_v54 = vld [vmem:[#allocation7 + $0x550] sm:$0xf0] }
 0x280   :  { %5181 = vmatpush.bf16.msrb.mxu1 %v8539_v5  ;;  %v8843_v5 = vor.u32 %v9838_v57, %v8842_v56  ;;  %v8012_v56 = vld [vmem:[#allocation7 + $0x130] sm:$0xf0]  ;;  %v3411_v57 = vpop.f32.mrf.mxu1  ;;  %v9760_v52 = vld [vmem:[#allocation7 + $0x544] sm:$0xf] }
 0x281   :  { %v10284_v40 = vpop.f32.mrf.mxu3  ;;  %v8316_v57 = vld [vmem:[#allocation7 + $0x390] sm:$0xf0] }
 0x282   :  { %5194 = vmatpush.bf16.msrb.mxu2 %v8667_v6  ;;  %5169 = vmatpush.bf16.msrb.mxu0 %v8395_v51  ;;  %v8826_v6 = vld [vmem:[#allocation7 + $0x780] sm:$0xf]  ;;  %v9834_v51 = vld [vmem:[#allocation7 + $0x78c] sm:$0xf0] }
 0x283   :  { %5204 = vmatpush.bf16.msrb.mxu3 %v8843_v5  ;;  %v8827_v20 = vor.u32 %v9834_v51, %v8826_v6  ;;  %v7868_v5 = vld [vmem:[#allocation7 + $0x10] sm:$0xf0]  ;;  %v8015_v6 = vor.u32 %v9628_v55, %v8012_v56  ;;  %v9748_v51 = vld [vmem:[#allocation7 + $0x4e4] sm:$0xf] }
 0x284   :  { %5182 = vmatpush.bf16.msrb.mxu1 %v8523_v11  ;;  %v8207_v11 = vor.u32 %v9676_v2, %v8204_v26  ;;  %v7996_v2 = vld [vmem:[#allocation7 + $0x110] sm:$0xf0]  ;;  %v9660_v26 = vld [vmem:[#allocation7 + $0x224] sm:$0xf] }
 0x285   :  { %v8444_v55 = vld [vmem:[#allocation7 + $0x490] sm:$0xf0]  ;;  %v9704_v56 = vld [vmem:[#allocation7 + $0x384] sm:$0xf] }
 0x286   :  { %5195 = vmatpush.bf16.msrb.mxu2 %v8651_v58  ;;  %5170 = vmatpush.bf16.msrb.mxu0 %v8379_v30  ;;  %v8044_v58 = vld [vmem:[#allocation7 + $0x170] sm:$0xf0]  ;;  %v8191_v30 = vor.u32 %v9672_v13, %v8188_v15  ;;  %v9780_v15 = vld [vmem:[#allocation7 + $0x5e4] sm:$0xf] }
 0x287   :  { %5205 = vmatpush.bf16.msrb.mxu3 %v8827_v20  ;;  %v8047_v37 = vor.u32 %v9636_v21, %v8044_v58  ;;  %v8492_v20 = vld [vmem:[#allocation7 + $0x4f0] sm:$0xf0]  ;;  %v7871_v21 = vor.u32 %v9592_v60, %v7868_v5  ;;  %v3397_v58 = vadd.f32 %v10278_v32, %v3384_v22  ;;  %v8319_v5 = vor.u32 %v9704_v56, %v8316_v57 }
 0x288   :  { %5183 = vmatpush.bf16.msrb.mxu1 %v8507_v35  ;;  %v9668_v35 = vld [vmem:[#allocation7 + $0x264] sm:$0xf]  ;;  %v8364_v13 = vld [vmem:[#allocation7 + $0x3f0] sm:$0xf0] }
 0x289   :  { %5171 = vmatmul.bf16.vlgmr.msrb.gmra.mxu0 %v10272_v19  ;;  %v3437_v16 = vpop.f32.mrf.mxu3  ;;  %v8367_v47 = vor.u32 %v9716_v24, %v8364_v13  ;;  %v8572_v60 = vld [vmem:[#allocation7 + $0x590] sm:$0xf0]  ;;  %v9728_v13 = vld [vmem:[#allocation7 + $0x444] sm:$0xf] }
 0x28a   :  { %5215 = vmatpush.bf16.msra.mxu0 %v7983_v36  ;;  %5196 = vmatpush.bf16.msrb.mxu2 %v8635_v46  ;;  %v8172_v36 = vld [vmem:[#allocation7 + $0x270] sm:$0xf0]  ;;  %v9596_v46 = vld [vmem:[#allocation7 + $0x24] sm:$0xf] }
 0x28b   :  { %5184 = vmatmul.bf16.vlgmr.msrb.gmra.mxu1 %v10274_v53  ;;  %5206 = vmatpush.bf16.msrb.mxu3 %v8811_v28  ;;  %v8175_v45 = vor.u32 %v9668_v35, %v8172_v36  ;;  %v7999_v28 = vor.u32 %v9624_v63, %v7996_v2  ;;  %v8476_v35 = vld [vmem:[#allocation7 + $0x4d0] sm:$0xf0]  ;;  %v9712_v36 = vld [vmem:[#allocation7 + $0x3c4] sm:$0xf] }
 0x28c   :  { %5228 = vmatpush.bf16.msra.mxu1 %v8111_v42  ;;  %v9632_v42 = vld [vmem:[#allocation7 + $0x144] sm:$0xf]  ;;  %v8300_v22 = vld [vmem:[#allocation7 + $0x370] sm:$0xf0] }
 0x28d   :  { %v9732_v63 = vld [vmem:[#allocation7 + $0x464] sm:$0xf]  ;;  %v8284_v16 = vld [vmem:[#allocation7 + $0x350] sm:$0xf0] }
 0x28e   :  { %5241 = vmatpush.bf16.msra.mxu2 %v8239_v48  ;;  %5216 = vmatpush.bf16.msra.mxu0 %v7967_v49  ;;  %v8156_v48 = vld [vmem:[#allocation7 + $0x250] sm:$0xf0]  ;;  %v8031_v49 = vor.u32 %v9632_v42, %v8028_v7  ;;  %v3410_v7 = vadd.f32 %v10280_v25, %v3397_v58 }
 0x28f   :  { %5207 = vmatpush.bf16.msrb.mxu3 %v8795_v44  ;;  %v9740_v44 = vld [vmem:[#allocation7 + $0x4a4] sm:$0xf]  ;;  %v8252_v56 = vld [vmem:[#allocation7 + $0x310] sm:$0xf0] }
 0x290   :  { %5229 = vmatpush.bf16.msra.mxu1 %v8095_v14  ;;  %v9822_v14 = vld [vmem:[#allocation7 + $0x72c] sm:$0xf0]  ;;  %v3423_v25 = vadd.f32 %v10282_v43, %v3410_v7  ;;  %v8268_v7 = vld [vmem:[#allocation7 + $0x330] sm:$0xf0] }
 0x291   :  { %v8779_v59 = vor.u32 %v9822_v14, %v8778_v0  ;;  %v9736_v0 = vld [vmem:[#allocation7 + $0x484] sm:$0xf] }
 0x292   :  { %5242 = vmatpush.bf16.msra.mxu2 %v8223_v61  ;;  %5217 = vmatpush.bf16.msra.mxu0 %v7951_v62  ;;  %v8159_v61 = vor.u32 %v9664_v34, %v8156_v48  ;;  %v7887_v62 = vor.u32 %v9596_v46, %v7884_v50  ;;  %v9708_v46 = vld [vmem:[#allocation7 + $0x3a4] sm:$0xf]  ;;  %v8332_v34 = vld [vmem:[#allocation7 + $0x3b0] sm:$0xf0] }
 0x293   :  { %5208 = vmatpush.bf16.msrb.mxu3 %v8779_v59  ;;  %v9772_v48 = vld [vmem:[#allocation7 + $0x5a4] sm:$0xf]  ;;  %v8335_v50 = vor.u32 %v9708_v46, %v8332_v34  ;;  %v8716_v34 = vld [vmem:[#allocation7 + $0x6b0] sm:$0xf0] }
 0x294   :  { %5230 = vmatpush.bf16.msra.mxu1 %v8079_v3  ;;  %v8140_v3 = vld [vmem:[#allocation7 + $0x230] sm:$0xf0]  ;;  %v9768_v59 = vld [vmem:[#allocation7 + $0x584] sm:$0xf] }
 0x295   :  { %v8143_v18 = vor.u32 %v9660_v26, %v8140_v3  ;;  %v8575_v43 = vor.u32 %v9768_v59, %v8572_v60  ;;  %v8428_v26 = vld [vmem:[#allocation7 + $0x470] sm:$0xf0]  ;;  %v9700_v3 = vld [vmem:[#allocation7 + $0x364] sm:$0xf]  ;;  %v7986_v59 = vld [vmem:[#allocation7 + $0xe8] sm:$0xf] }
 0x296   :  { %5243 = vmatpush.bf16.msra.mxu2 %v8207_v11  ;;  %5218 = vmatpush.bf16.msra.mxu0 %v7935_v12  ;;  %v3424_v11 = vpop.f32.mrf.mxu2  ;;  %v8763_v12 = vor.u32 %v9818_v29, %v8762_v23  ;;  %v8556_v23 = vld [vmem:[#allocation7 + $0x570] sm:$0xf0]  ;;  %v8303_v29 = vor.u32 %v9700_v3, %v8300_v22  ;;  %v8431_v24 = vor.u32 %v9732_v63, %v8428_v26  ;;  %v9804_v46 = vld [vmem:[#allocation7 + $0x6a4] sm:$0xf]  ;;  %v9623_v60 = vld [vmem:[#allocation7 + $0xf4] sm:$0xf0] }
 0x297   :  { %v8748_v11 = vld [vmem:[#allocation7 + $0x6f0] sm:$0xf0]  ;;  %v8719_v57 = vor.u32 %v9804_v46, %v8716_v34  ;;  %v9800_v63 = vld [vmem:[#allocation7 + $0x684] sm:$0xf]  ;;  %v7922_v46 = vld [vmem:[#allocation7 + $0x68] sm:$0xf] }
 0x298   :  { %5231 = vmatpush.bf16.msra.mxu1 %v8063_v17  ;;  %v8620_v17 = vld [vmem:[#allocation7 + $0x5f0] sm:$0xf0]  ;;  %5209 = vmatpush.bf16.msrb.mxu3 %v8763_v12  ;;  %v10294_v12 = vpop.f32.mrf.mxu1  ;;  %v9607_v34 = vld [vmem:[#allocation7 + $0x74] sm:$0xf0] }
 0x299   :  { %v8623_v33 = vor.u32 %v9780_v15, %v8620_v17  ;;  %v3448_v2 = vpop.f32.mrf.mxu0  ;;  %v8412_v17 = vld [vmem:[#allocation7 + $0x450] sm:$0xf0] }
 0x29a   :  { %5244 = vmatpush.bf16.msra.mxu2 %v8191_v30  ;;  %5219 = vmatpush.bf16.msra.mxu0 %v7919_v31  ;;  %v8495_v30 = vor.u32 %v9748_v51, %v8492_v20  ;;  %v9744_v31 = vld [vmem:[#allocation7 + $0x4c4] sm:$0xf] }
 0x29b   :  { %v8479_v32 = vor.u32 %v9744_v31, %v8476_v35  ;;  %v9764_v51 = vld [vmem:[#allocation7 + $0x564] sm:$0xf]  ;;  %v8732_v31 = vld [vmem:[#allocation7 + $0x6d0] sm:$0xf0] }
 0x29c   :  { %5232 = vmatpush.bf16.msra.mxu1 %v8047_v37  ;;  %5254 = vmatpush.bf16.msra.mxu3 %v8367_v47  ;;  %v8348_v37 = vld [vmem:[#allocation7 + $0x3d0] sm:$0xf0]  ;;  %v9812_v20 = vld [vmem:[#allocation7 + $0x6e4] sm:$0xf]  ;;  %v8559_v15 = vor.u32 %v9764_v51, %v8556_v23 }
 0x29d   :  { %v8351_v42 = vor.u32 %v9712_v36, %v8348_v37  ;;  %v9724_v37 = vld [vmem:[#allocation7 + $0x424] sm:$0xf] }
 0x29e   :  { %5245 = vmatpush.bf16.msra.mxu2 %v8175_v45  ;;  %5220 = vmatpush.bf16.msra.mxu0 %v7903_v41  ;;  %v8607_v45 = vor.u32 %v9776_v38, %v8604_v8  ;;  %v8460_v41 = vld [vmem:[#allocation7 + $0x4b0] sm:$0xf0]  ;;  %v8543_v38 = vor.u32 %v9760_v52, %v8540_v54  ;;  %v9647_v52 = vld [vmem:[#allocation7 + $0x1b4] sm:$0xf0]  ;;  %v9792_v54 = vld [vmem:[#allocation7 + $0x644] sm:$0xf] }
 0x29f   :  { %v8463_v10 = vor.u32 %v9740_v44, %v8460_v41  ;;  %v10298_v35 = vpop.f32.mrf.mxu2  ;;  %v8396_v8 = vld [vmem:[#allocation7 + $0x430] sm:$0xf0]  ;;  %v9756_v44 = vld [vmem:[#allocation7 + $0x524] sm:$0xf] }
 0x2a0   :  { %5233 = vmatpush.bf16.msra.mxu1 %v8031_v49  ;;  %5255 = vmatpush.bf16.msra.mxu3 %v8351_v42  ;;  %v8588_v49 = vld [vmem:[#allocation7 + $0x5b0] sm:$0xf0]  ;;  %v9692_v42 = vld [vmem:[#allocation7 + $0x324] sm:$0xf] }
 0x2a1   :  { %v8591_v14 = vor.u32 %v9772_v48, %v8588_v49  ;;  %v10300_v36 = vpop.f32.mrf.mxu3  ;;  %v8271_v41 = vor.u32 %v9692_v42, %v8268_v7  ;;  %v3463_v48 = vpop.f32.mrf.mxu1  ;;  %v8399_v49 = vor.u32 %v9724_v37, %v8396_v8  ;;  %v7938_v37 = vld [vmem:[#allocation7 + $0x88] sm:$0xf]  ;;  %v9643_v42 = vld [vmem:[#allocation7 + $0x194] sm:$0xf0]  ;;  %v9788_v7 = vld [vmem:[#allocation7 + $0x624] sm:$0xf] }
 0x2a2   :  { %5246 = vmatpush.bf16.msra.mxu2 %v8159_v61  ;;  %5221 = vmatpush.bf16.msra.mxu0 %v7887_v62  ;;  %v3436_v61 = vadd.f32 %v10284_v40, %v3423_v25  ;;  %v8447_v62 = vor.u32 %v9736_v0, %v8444_v55  ;;  %v8380_v25 = vld [vmem:[#allocation7 + $0x410] sm:$0xf0]  ;;  %v9688_v55 = vld [vmem:[#allocation7 + $0x304] sm:$0xf]  ;;  %v8066_v8 = vld [vmem:[#allocation7 + $0x188] sm:$0xf] }
 0x2a3   :  { %v8050_v48 = vld [vmem:[#allocation7 + $0x168] sm:$0xf] }
 0x2a4   :  { %5234 = vmatpush.bf16.msra.mxu1 %v8015_v6  ;;  %5256 = vmatpush.bf16.msra.mxu3 %v8335_v50  ;;  %v3449_v6 = vadd.f32 %v3448_v2, %v3436_v61  ;;  %v9720_v50 = vld [vmem:[#allocation7 + $0x404] sm:$0xf]  ;;  %v8255_v61 = vor.u32 %v9688_v55, %v8252_v56  ;;  %v8700_v2 = vld [vmem:[#allocation7 + $0x690] sm:$0xf0]  ;;  %v7923_v56 = vor.u32 %v9607_v34, %v7922_v46 }
 0x2a5   :  { %v8703_v23 = vor.u32 %v9800_v63, %v8700_v2  ;;  %v9635_v63 = vld [vmem:[#allocation7 + $0x154] sm:$0xf0] }
 0x2a6   :  { %5247 = vmatpush.bf16.msra.mxu2 %v8143_v18  ;;  %5222 = vmatpush.bf16.msra.mxu0 %v7871_v21  ;;  %vm3549_vm6 = vcmp.gt.f32.partialorder %v3449_v6, 0.0  ;;  %v3557_v40 = vmul.f32 0.2, %v3449_v6  ;;  %v9696_v18 = vld [vmem:[#allocation7 + $0x344] sm:$0xf]  ;;  %v8751_v21 = vor.u32 %v9812_v20, %v8748_v11 }
 0x2a7   :  { %v8287_v58 = vor.u32 %v9696_v18, %v8284_v16  ;;  %v3476_v26 = vpop.f32.mrf.mxu2  ;;  %v9619_v20 = vld [vmem:[#allocation7 + $0xd4] sm:$0xf0]  ;;  %v8098_v11 = vld [vmem:[#allocation7 + $0x1c8] sm:$0xf] }
 0x2a8   :  { %5235 = vmatpush.bf16.msra.mxu1 %v7999_v28  ;;  %5257 = vmatpush.bf16.msra.mxu3 %v8319_v5  ;;  %v3565_v47 = vsel %vm3549_vm6, %v3449_v6, %v3557_v40  ;;  %v8114_v5 = vld [vmem:[#allocation7 + $0x1e8] sm:$0xf]  ;;  %v7987_v6 = vor.u32 %v9623_v60, %v7986_v59  ;;  %v9651_v40 = vld [vmem:[#allocation7 + $0x1d4] sm:$0xf0] }
 0x2a9   :  { %5223 = vmatmul.bf16.vlgmr.msra.gmra.mxu0 %v10245_v4  ;;  %v10296_v28 = vpack.c.bf16 %v3565_v47, %v3565_v47  ;;  %v3489_v3 = vpop.f32.mrf.mxu3  ;;  %v7954_v16 = vld [vmem:[#allocation7 + $0xa8] sm:$0xf]  ;;  %v9615_v47 = vld [vmem:[#allocation7 + $0xb4] sm:$0xf0] }
 0x2aa   :  { %5267 = vmatpush.bf16.msrb.mxu0 %v8495_v30  ;;  %5248 = vmatpush.bf16.msra.mxu2 %v8127_v39  ;;  %v9808_v30 = vld [vmem:[#allocation7 + $0x6c4] sm:$0xf]  ;;  %v3450_v39 = vpop.f32.mrf.mxu0  ;;  %v7906_v60 = vld [vmem:[#allocation7 + $0x48] sm:$0xf]  ;;  %v9683_v2 = vld [vmem:[#allocation7 + $0x2d4] sm:$0xf0] }
 0x2ab   :  { %5236 = vmatmul.bf16.vlgmr.msra.gmra.mxu1 %v10247_v1  ;;  %5197 = vmatmul.bf16.vlgmr.msrb.gmra.mxu2 %v10296_v28  ;;  %v3475_v39 = vadd.f32 %v10298_v35, %v10294_v12  ;;  %v8242_v12 = vld [vmem:[#allocation7 + $0x2e8] sm:$0xf]  ;;  %v9687_v35 = vld [vmem:[#allocation7 + $0x2f4] sm:$0xf0] }
 0x2ac   :  { %5280 = vmatpush.bf16.msrb.mxu1 %v8623_v33  ;;  %5258 = vmatpush.bf16.msra.mxu3 %v8303_v29  ;;  %v8415_v33 = vor.u32 %v9728_v13, %v8412_v17  ;;  %v7970_v29 = vld [vmem:[#allocation7 + $0xc8] sm:$0xf]  ;;  %v8684_v13 = vld [vmem:[#allocation7 + $0x670] sm:$0xf0]  ;;  %v8099_v17 = vor.u32 %v9651_v40, %v8098_v11 }
 0x2ad   :  { %v8018_v40 = vld [vmem:[#allocation7 + $0x128] sm:$0xf] }
 0x2ae   :  { %5268 = vmatpush.bf16.msrb.mxu0 %v8479_v32  ;;  %5293 = vmatpush.bf16.msrb.mxu2 %v8751_v21  ;;  %v8735_v32 = vor.u32 %v9808_v30, %v8732_v31  ;;  %v8082_v21 = vld [vmem:[#allocation7 + $0x1a8] sm:$0xf]  ;;  %v7955_v30 = vor.u32 %v9615_v47, %v7954_v16  ;;  %v9679_v16 = vld [vmem:[#allocation7 + $0x2b4] sm:$0xf0] }
 0x2af   :  { %v8083_v31 = vor.u32 %v9647_v52, %v8082_v21  ;;  %v7874_v52 = vld [vmem:[#allocation7 + $0x8] sm:$0xf] }
 0x2b0   :  { %5281 = vmatpush.bf16.msrb.mxu1 %v8607_v45  ;;  %v8524_v45 = vld [vmem:[#allocation7 + $0x530] sm:$0xf0]  ;;  %5259 = vmatpush.bf16.msra.mxu3 %v8287_v58 }
 0x2b1   :  { %v8527_v0 = vor.u32 %v9756_v44, %v8524_v45  ;;  %v8668_v58 = vld [vmem:[#allocation7 + $0x650] sm:$0xf0]  ;;  %v8067_v45 = vor.u32 %v9643_v42, %v8066_v8  ;;  %v9783_v42 = vld [vmem:[#allocation7 + $0x5f4] sm:$0xf0] }
 0x2b2   :  { %5269 = vmatpush.bf16.msrb.mxu0 %v8463_v10  ;;  %v9752_v10 = vld [vmem:[#allocation7 + $0x504] sm:$0xf]  ;;  %5294 = vmatpush.bf16.msrb.mxu2 %v8735_v32  ;;  %v8652_v32 = vld [vmem:[#allocation7 + $0x630] sm:$0xf0] }
 0x2b4   :  { %5282 = vmatpush.bf16.msrb.mxu1 %v8591_v14  ;;  %v8508_v14 = vld [vmem:[#allocation7 + $0x510] sm:$0xf0]  ;;  %5260 = vmatpush.bf16.msra.mxu3 %v8271_v41  ;;  %v8655_v41 = vor.u32 %v9788_v7, %v8652_v32  ;;  %v8194_v7 = vld [vmem:[#allocation7 + $0x288] sm:$0xf]  ;;  %v9675_v32 = vld [vmem:[#allocation7 + $0x294] sm:$0xf0] }
 0x2b5   :  { %v8511_v22 = vor.u32 %v9752_v10, %v8508_v14  ;;  %v9784_v10 = vld [vmem:[#allocation7 + $0x604] sm:$0xf] }
 0x2b6   :  { %5270 = vmatpush.bf16.msrb.mxu0 %v8447_v62  ;;  %v9655_v62 = vld [vmem:[#allocation7 + $0x1f4] sm:$0xf0]  ;;  %5295 = vmatpush.bf16.msrb.mxu2 %v8719_v57 }
 0x2b7   :  { %v8115_v51 = vor.u32 %v9655_v62, %v8114_v5  ;;  %v9603_v5 = vld [vmem:[#allocation7 + $0x54] sm:$0xf0]  ;;  %v8034_v62 = vld [vmem:[#allocation7 + $0x148] sm:$0xf] }
 0x2b8   :  { %5283 = vmatpush.bf16.msrb.mxu1 %v8575_v43  ;;  %v8383_v43 = vor.u32 %v9720_v50, %v8380_v25  ;;  %5261 = vmatpush.bf16.msra.mxu3 %v8255_v61  ;;  %v9639_v25 = vld [vmem:[#allocation7 + $0x174] sm:$0xf0]  ;;  %v8243_v61 = vor.u32 %v9687_v35, %v8242_v12  ;;  %v7907_v26 = vor.u32 %v9603_v5, %v7906_v60  ;;  %v8482_v12 = vld [vmem:[#allocation7 + $0x4c8] sm:$0xf] }
 0x2b9   :  { %v8051_v57 = vor.u32 %v9639_v25, %v8050_v48  ;;  %v8860_v25 = vld [vmem:[#allocation7 + $0x7d0] sm:$0xf0]  ;;  %v9747_v35 = vld [vmem:[#allocation7 + $0x4d4] sm:$0xf0] }
 0x2ba   :  { %5271 = vmatpush.bf16.msrb.mxu0 %v8431_v24  ;;  %v9796_v24 = vld [vmem:[#allocation7 + $0x664] sm:$0xf]  ;;  %5296 = vmatpush.bf16.msrb.mxu2 %v8703_v23  ;;  %v8483_v5 = vor.u32 %v9747_v35, %v8482_v12  ;;  %v8546_v12 = vld [vmem:[#allocation7 + $0x548] sm:$0xf]  ;;  %v9763_v35 = vld [vmem:[#allocation7 + $0x554] sm:$0xf0] }
 0x2bb   :  { %v8687_v18 = vor.u32 %v9796_v24, %v8684_v13  ;;  %5249 = vmatmul.bf16.vlgmr.msra.gmra.mxu2 %v10249_v27  ;;  %v9631_v24 = vld [vmem:[#allocation7 + $0x134] sm:$0xf0] }
 0x2bc   :  { %5284 = vmatpush.bf16.msrb.mxu1 %v8559_v15  ;;  %v7971_v15 = vor.u32 %v9619_v20, %v7970_v29 }
 0x2be   :  { %5272 = vmatpush.bf16.msrb.mxu0 %v8415_v33  ;;  %5297 = vmatpush.bf16.msrb.mxu2 %v8687_v18  ;;  %v8671_v33 = vor.u32 %v9792_v54, %v8668_v58  ;;  %v8210_v18 = vld [vmem:[#allocation7 + $0x2a8] sm:$0xf]  ;;  %v9595_v54 = vld [vmem:[#allocation7 + $0x14] sm:$0xf0] }
 0x2bf   :  { %v8002_v58 = vld [vmem:[#allocation7 + $0x108] sm:$0xf]  ;;  %v8211_v8 = vor.u32 %v9679_v16, %v8210_v18  ;;  %v9663_v16 = vld [vmem:[#allocation7 + $0x234] sm:$0xf0] }
 0x2c0   :  { %5285 = vmatpush.bf16.msrb.mxu1 %v8543_v38  ;;  %v9611_v38 = vld [vmem:[#allocation7 + $0x94] sm:$0xf0]  ;;  %v8146_v18 = vld [vmem:[#allocation7 + $0x228] sm:$0xf] }
 0x2c1   :  { %v7939_v44 = vor.u32 %v9611_v38, %v7938_v37  ;;  %v9751_v37 = vld [vmem:[#allocation7 + $0x4f4] sm:$0xf0] }
 0x2c2   :  { %5273 = vmatpush.bf16.msrb.mxu0 %v8399_v49  ;;  %5298 = vmatpush.bf16.msrb.mxu2 %v8671_v33  ;;  %v3488_v49 = vadd.f32 %v10300_v36, %v3475_v39  ;;  %v8226_v36 = vld [vmem:[#allocation7 + $0x2c8] sm:$0xf] }
 0x2c3   :  { %v8227_v11 = vor.u32 %v9683_v2, %v8226_v36  ;;  %v8498_v33 = vld [vmem:[#allocation7 + $0x4e8] sm:$0xf] }
 0x2c4   :  { %5286 = vmatpush.bf16.msrb.mxu1 %v8527_v0  ;;  %v8636_v0 = vld [vmem:[#allocation7 + $0x610] sm:$0xf0]  ;;  %v8626_v39 = vld [vmem:[#allocation7 + $0x5e8] sm:$0xf] }
 0x2c5   :  { %v8639_v59 = vor.u32 %v9784_v10, %v8636_v0  ;;  %v8627_v0 = vor.u32 %v9783_v42, %v8626_v39  ;;  %v8466_v2 = vld [vmem:[#allocation7 + $0x4a8] sm:$0xf]  ;;  %v9659_v42 = vld [vmem:[#allocation7 + $0x214] sm:$0xf0] }
 0x2c6   :  { %5274 = vmatpush.bf16.msrb.mxu0 %v8383_v43  ;;  %v3500_v50 = vpop.f32.mrf.mxu0  ;;  %5299 = vmatpush.bf16.msrb.mxu2 %v8655_v41  ;;  %v7875_v41 = vor.u32 %v9595_v54, %v7874_v52  ;;  %v9828_v52 = vld [vmem:[#allocation7 + $0x764] sm:$0xf]  ;;  %v8812_v54 = vld [vmem:[#allocation7 + $0x770] sm:$0xf0]  ;;  %v8130_v39 = vld [vmem:[#allocation7 + $0x208] sm:$0xf] }
 0x2c7   :  { %v3501_v55 = vadd.f32 %v3500_v50, %v3488_v49  ;;  %v8499_v49 = vor.u32 %v9751_v37, %v8498_v33  ;;  %v9840_v50 = vld [vmem:[#allocation7 + $0x7c4] sm:$0xf]  ;;  %v9735_v33 = vld [vmem:[#allocation7 + $0x474] sm:$0xf0]  ;;  %v8562_v37 = vld [vmem:[#allocation7 + $0x568] sm:$0xf] }
 0x2c8   :  { %5287 = vmatpush.bf16.msrb.mxu1 %v8511_v22  ;;  %v3513_v14 = vpop.f32.mrf.mxu1  ;;  %v8035_v22 = vor.u32 %v9635_v63, %v8034_v62  ;;  %v8863_v60 = vor.u32 %v9840_v50, %v8860_v25  ;;  %v8844_v62 = vld [vmem:[#allocation7 + $0x7b0] sm:$0xf0]  ;;  %v8131_v25 = vor.u32 %v9659_v42, %v8130_v39  ;;  %v8706_v39 = vld [vmem:[#allocation7 + $0x688] sm:$0xf]  ;;  %v9803_v42 = vld [vmem:[#allocation7 + $0x694] sm:$0xf0] }
 0x2c9   :  { %5275 = vmatmul.bf16.vlgmr.msrb.gmra.mxu0 %v10272_v19  ;;  %v3514_v43 = vadd.f32 %v3513_v14, %v3501_v55  ;;  %v8195_v14 = vor.u32 %v9675_v32, %v8194_v7  ;;  %v8610_v55 = vld [vmem:[#allocation7 + $0x5c8] sm:$0xf]  ;;  %v8815_v32 = vor.u32 %v9828_v52, %v8812_v54  ;;  %v9755_v54 = vld [vmem:[#allocation7 + $0x514] sm:$0xf0] }
 0x2ca   :  { %5319 = vmatpush.bf16.msra.mxu0 %v7987_v6  ;;  %5300 = vmatpush.bf16.msrb.mxu2 %v8639_v59  ;;  %v7890_v6 = vld [vmem:[#allocation7 + $0x28] sm:$0xf]  ;;  %v9671_v59 = vld [vmem:[#allocation7 + $0x274] sm:$0xf0] }
 0x2cb   :  { %5288 = vmatmul.bf16.vlgmr.msrb.gmra.mxu1 %v10274_v53 }
 0x2cc   :  { %5332 = vmatpush.bf16.msra.mxu1 %v8115_v51  ;;  %v9599_v51 = vld [vmem:[#allocation7 + $0x34] sm:$0xf0] }
 0x2cd   :  { %5301 = vmatmul.bf16.vlgmr.msrb.gmra.mxu2 %v10296_v28  ;;  %v7891_v21 = vor.u32 %v9599_v51, %v7890_v6  ;;  %v9667_v6 = vld [vmem:[#allocation7 + $0x254] sm:$0xf0] }
 0x2ce   :  { %5320 = vmatpush.bf16.msra.mxu0 %v7971_v15  ;;  %v3502_v20 = vpop.f32.mrf.mxu0  ;;  %5345 = vmatpush.bf16.msra.mxu2 %v8243_v61  ;;  %v9844_v15 = vld [vmem:[#allocation7 + $0x7e4] sm:$0xf] }
 0x2cf   :  { %v9836_v61 = vld [vmem:[#allocation7 + $0x7a4] sm:$0xf]  ;;  %v8828_v20 = vld [vmem:[#allocation7 + $0x790] sm:$0xf0] }
 0x2d0   :  { %5333 = vmatpush.bf16.msra.mxu1 %v8099_v17  ;;  %v3526_v3 = vpop.f32.mrf.mxu2  ;;  %v3515_v13 = vpop.f32.mrf.mxu1  ;;  %v8876_v17 = vld [vmem:[#allocation7 + $0x7f0] sm:$0xf0]  ;;  %v8847_v51 = vor.u32 %v9836_v61, %v8844_v62  ;;  %v8547_v62 = vor.u32 %v9763_v35, %v8546_v12  ;;  %v8690_v12 = vld [vmem:[#allocation7 + $0x668] sm:$0xf]  ;;  %v9799_v35 = vld [vmem:[#allocation7 + $0x674] sm:$0xf0] }
 0x2d1   :  { %v3527_v23 = vadd.f32 %v3526_v3, %v3514_v43  ;;  %v9743_v43 = vld [vmem:[#allocation7 + $0x4b4] sm:$0xf0] }
 0x2d2   :  { %5321 = vmatpush.bf16.msra.mxu0 %v7955_v30  ;;  %v3539_v29 = vpop.f32.mrf.mxu3  ;;  %v8019_v30 = vor.u32 %v9631_v24, %v8018_v40  ;;  %5346 = vmatpush.bf16.msra.mxu2 %v8227_v11  ;;  %v9775_v3 = vld [vmem:[#allocation7 + $0x5b4] sm:$0xf0]  ;;  %v8450_v24 = vld [vmem:[#allocation7 + $0x488] sm:$0xf] }
 0x2d3   :  { %v3540_v47 = vadd.f32 %v3539_v29, %v3527_v23  ;;  %v8467_v23 = vor.u32 %v9743_v43, %v8466_v2  ;;  %v9832_v29 = vld [vmem:[#allocation7 + $0x784] sm:$0xf]  ;;  %v9739_v13 = vld [vmem:[#allocation7 + $0x494] sm:$0xf0] }
 0x2d4   :  { %5334 = vmatpush.bf16.msra.mxu1 %v8083_v31  ;;  %v9627_v31 = vld [vmem:[#allocation7 + $0x114] sm:$0xf0] }
 0x2d5   :  { %vm3550_vm7 = vcmp.gt.f32.partialorder %v3540_v47, 0.0  ;;  %v3558_v38 = vmul.f32 0.2, %v3540_v47  ;;  %v8003_v48 = vor.u32 %v9627_v31, %v8002_v58  ;;  %v8434_v31 = vld [vmem:[#allocation7 + $0x468] sm:$0xf] }
 0x2d6   :  { %5322 = vmatpush.bf16.msra.mxu0 %v7939_v44  ;;  %5347 = vmatpush.bf16.msra.mxu2 %v8211_v8  ;;  %v9767_v8 = vld [vmem:[#allocation7 + $0x574] sm:$0xf0] }
 0x2d7   :  { %v3566_v44 = vsel %vm3550_vm7, %v3540_v47, %v3558_v38  ;;  %v8831_v47 = vor.u32 %v9832_v29, %v8828_v20  ;;  %v8563_v50 = vor.u32 %v9767_v8, %v8562_v37  ;;  %v9816_v29 = vld [vmem:[#allocation7 + $0x704] sm:$0xf]  ;;  %v8722_v20 = vld [vmem:[#allocation7 + $0x6a8] sm:$0xf]  ;;  %v8116_v37 = vld [vmem:[#allocation7 + $0x1f8] sm:$0xf0] }
 0x2d8   :  { %5335 = vmatpush.bf16.msra.mxu1 %v8067_v45  ;;  %v8879_v45 = vor.u32 %v9844_v15, %v8876_v17  ;;  %v10310_v46 = vpack.c.bf16 %v3566_v44, %v3566_v44  ;;  %v3528_v34 = vpop.f32.mrf.mxu2  ;;  %v8578_v15 = vld [vmem:[#allocation7 + $0x588] sm:$0xf]  ;;  %v9771_v17 = vld [vmem:[#allocation7 + $0x594] sm:$0xf0] }
 0x2d9   :  { %v8579_v58 = vor.u32 %v9771_v17, %v8578_v15  ;;  %v8754_v44 = vld [vmem:[#allocation7 + $0x6e8] sm:$0xf]  ;;  %v8435_v34 = vor.u32 %v9735_v33, %v8434_v31  ;;  %v9719_v17 = vld [vmem:[#allocation7 + $0x3f4] sm:$0xf0]  ;;  %v9653_v33 = vld [vmem:[#allocation7 + $0x1ec] sm:$0xf] }
 0x2da   :  { %5323 = vmatpush.bf16.msra.mxu0 %v7923_v56  ;;  %v3541_v10 = vpop.f32.mrf.mxu3  ;;  %5210 = vmatmul.bf16.vlgmr.msrb.gmra.mxu3 %v10310_v46  ;;  %v9779_v56 = vld [vmem:[#allocation7 + $0x5d4] sm:$0xf0]  ;;  %v8370_v15 = vld [vmem:[#allocation7 + $0x3e8] sm:$0xf] }
 0x2db   :  { %5306 = vmatpush.bf16.msrb.mxu3 %v8879_v45  ;;  %5348 = vmatpush.bf16.msra.mxu2 %v8195_v14  ;;  %v8611_v63 = vor.u32 %v9779_v56, %v8610_v55  ;;  %v9815_v45 = vld [vmem:[#allocation7 + $0x6f4] sm:$0xf0]  ;;  %v8418_v10 = vld [vmem:[#allocation7 + $0x448] sm:$0xf] }
 0x2dc   :  { %5336 = vmatpush.bf16.msra.mxu1 %v8051_v57  ;;  %v8178_v57 = vld [vmem:[#allocation7 + $0x268] sm:$0xf]  ;;  %v8755_v14 = vor.u32 %v9815_v45, %v8754_v44 }
 0x2dd   :  { %v8179_v36 = vor.u32 %v9671_v59, %v8178_v57  ;;  %v8738_v56 = vld [vmem:[#allocation7 + $0x6c8] sm:$0xf]  ;;  %v9811_v57 = vld [vmem:[#allocation7 + $0x6d4] sm:$0xf0] }
 0x2de   :  { %5324 = vmatpush.bf16.msra.mxu0 %v7907_v26  ;;  %v8594_v26 = vld [vmem:[#allocation7 + $0x5a8] sm:$0xf] }
 0x2df   :  { %5307 = vmatpush.bf16.msrb.mxu3 %v8863_v60  ;;  %5349 = vmatpush.bf16.msra.mxu2 %v8179_v36  ;;  %v8595_v11 = vor.u32 %v9775_v3, %v8594_v26  ;;  %v9820_v60 = vld [vmem:[#allocation7 + $0x724] sm:$0xf]  ;;  %v9727_v36 = vld [vmem:[#allocation7 + $0x434] sm:$0xf0]  ;;  %v8739_v3 = vor.u32 %v9811_v57, %v8738_v56  ;;  %v8354_v45 = vld [vmem:[#allocation7 + $0x3c8] sm:$0xf] }
 0x2e0   :  { %5337 = vmatpush.bf16.msra.mxu1 %v8035_v22  ;;  %v8162_v22 = vld [vmem:[#allocation7 + $0x248] sm:$0xf]  ;;  %v9711_v57 = vld [vmem:[#allocation7 + $0x3b4] sm:$0xf0] }
 0x2e1   :  { %v8163_v40 = vor.u32 %v9667_v6, %v8162_v22  ;;  %v8530_v22 = vld [vmem:[#allocation7 + $0x528] sm:$0xf]  ;;  %v9759_v6 = vld [vmem:[#allocation7 + $0x534] sm:$0xf0] }
 0x2e2   :  { %5325 = vmatpush.bf16.msra.mxu0 %v7891_v21  ;;  %v8451_v21 = vor.u32 %v9739_v13, %v8450_v24  ;;  %v8764_v13 = vld [vmem:[#allocation7 + $0x710] sm:$0xf0]  ;;  %v8338_v56 = vld [vmem:[#allocation7 + $0x3a8] sm:$0xf] }
 0x2e3   :  { %5308 = vmatpush.bf16.msrb.mxu3 %v8847_v51  ;;  %5350 = vmatpush.bf16.msra.mxu2 %v8163_v40  ;;  %v8767_v31 = vor.u32 %v9816_v29, %v8764_v13  ;;  %v8658_v13 = vld [vmem:[#allocation7 + $0x628] sm:$0xf] }
 0x2e4   :  { %5338 = vmatpush.bf16.msra.mxu1 %v8019_v30  ;;  %v8147_v30 = vor.u32 %v9663_v16, %v8146_v18  ;;  %v8531_v18 = vor.u32 %v9759_v6, %v8530_v22  ;;  %v8386_v16 = vld [vmem:[#allocation7 + $0x408] sm:$0xf]  ;;  %v9707_v22 = vld [vmem:[#allocation7 + $0x394] sm:$0xf0] }
 0x2e6   :  { %5326 = vmatpush.bf16.msra.mxu0 %v7875_v41  ;;  %v5120_v38 = vpop.f32.mrf.mxu0 }
 0x2e7   :  { %5309 = vmatpush.bf16.msrb.mxu3 %v8831_v47  ;;  %5351 = vmatpush.bf16.msra.mxu2 %v8147_v30  ;;  %v9723_v47 = vld [vmem:[#allocation7 + $0x414] sm:$0xf0]  ;;  %v7988_v30 = vld [vmem:[#allocation7 + $0xf8] sm:$0xf0] }
 0x2e8   :  { %5339 = vmatpush.bf16.msra.mxu1 %v8003_v48  ;;  %v5133_v7 = vpop.f32.mrf.mxu1  ;;  %v9824_v48 = vld [vmem:[#allocation7 + $0x744] sm:$0xf]  ;;  %v8387_v8 = vor.u32 %v9723_v47, %v8386_v16  ;;  %v9703_v16 = vld [vmem:[#allocation7 + $0x374] sm:$0xf0] }
 0x2e9   :  { %5327 = vmatmul.bf16.vlgmr.msra.gmra.mxu0 %v10245_v4  ;;  %v5134_v41 = vadd.f32 %v5133_v7, %v5120_v38  ;;  %v8371_v38 = vor.u32 %v9719_v17, %v8370_v15  ;;  %v9791_v15 = vld [vmem:[#allocation7 + $0x634] sm:$0xf0] }
 0x2ea   :  { %5371 = vmatpush.bf16.msrb.mxu0 %v8499_v49  ;;  %v8796_v49 = vld [vmem:[#allocation7 + $0x750] sm:$0xf0]  ;;  %5262 = vmatmul.bf16.vlgmr.msra.gmra.mxu3 %v10251_v9 }
 0x2eb   :  { %5340 = vmatmul.bf16.vlgmr.msra.gmra.mxu1 %v10247_v1  ;;  %5310 = vmatpush.bf16.msrb.mxu3 %v8815_v32  ;;  %v8799_v55 = vor.u32 %v9824_v48, %v8796_v49  ;;  %v8119_v48 = vor.u32 %v9653_v33, %v8116_v37  ;;  %v9617_v49 = vld [vmem:[#allocation7 + $0xcc] sm:$0xf]  ;;  %v8290_v37 = vld [vmem:[#allocation7 + $0x348] sm:$0xf] }
 0x2ec   :  { %5384 = vmatpush.bf16.msrb.mxu1 %v8627_v0  ;;  %v9731_v0 = vld [vmem:[#allocation7 + $0x454] sm:$0xf0]  ;;  %5352 = vmatpush.bf16.msra.mxu2 %v8131_v25  ;;  %v8707_v25 = vor.u32 %v9803_v42, %v8706_v39 }
 0x2ed   :  { %v8419_v59 = vor.u32 %v9731_v0, %v8418_v10  ;;  %v9649_v10 = vld [vmem:[#allocation7 + $0x1cc] sm:$0xf]  ;;  %v8100_v0 = vld [vmem:[#allocation7 + $0x1d8] sm:$0xf0] }
 0x2ee   :  { %5372 = vmatpush.bf16.msrb.mxu0 %v8483_v5  ;;  %v8780_v5 = vld [vmem:[#allocation7 + $0x730] sm:$0xf0]  ;;  %v5122_v26 = vpop.f32.mrf.mxu0 }
 0x2ef   :  { %5311 = vmatpush.bf16.msrb.mxu3 %v8799_v55  ;;  %5353 = vmatmul.bf16.vlgmr.msra.gmra.mxu2 %v10249_v27 }
 0x2f0   :  { %5385 = vmatpush.bf16.msrb.mxu1 %v8611_v63  ;;  %v5146_v61 = vpop.f32.mrf.mxu2  ;;  %v8402_v63 = vld [vmem:[#allocation7 + $0x428] sm:$0xf]  ;;  %5397 = vmatpush.bf16.msrb.mxu2 %v8755_v14  ;;  %v5135_v51 = vpop.f32.mrf.mxu1 }
 0x2f1   :  { %v5147_v2 = vadd.f32 %v5146_v61, %v5134_v41  ;;  %v8403_v24 = vor.u32 %v9727_v36, %v8402_v63  ;;  %v9715_v41 = vld [vmem:[#allocation7 + $0x3d4] sm:$0xf0]  ;;  %v8691_v61 = vor.u32 %v9799_v35, %v8690_v12  ;;  %v8084_v63 = vld [vmem:[#allocation7 + $0x1b8] sm:$0xf0]  ;;  %v8339_v36 = vor.u32 %v9711_v57, %v8338_v56  ;;  %v9609_v51 = vld [vmem:[#allocation7 + $0x8c] sm:$0xf] }
 0x2f2   :  { %5373 = vmatpush.bf16.msrb.mxu0 %v8467_v23  ;;  %v5159_v43 = vpop.f32.mrf.mxu3  ;;  %v8783_v23 = vor.u32 %v9820_v60, %v8780_v5  ;;  %v8355_v14 = vor.u32 %v9715_v41, %v8354_v45  ;;  %v9613_v60 = vld [vmem:[#allocation7 + $0xac] sm:$0xf]  ;;  %v7956_v5 = vld [vmem:[#allocation7 + $0xb8] sm:$0xf0]  ;;  %v9695_v35 = vld [vmem:[#allocation7 + $0x334] sm:$0xf0] }
 0x2f3   :  { %v10316_v40 = vadd.f32 %v5159_v43, %v5147_v2  ;;  %v8674_v2 = vld [vmem:[#allocation7 + $0x648] sm:$0xf]  ;;  %v9795_v43 = vld [vmem:[#allocation7 + $0x654] sm:$0xf0]  ;;  %v7959_v26 = vor.u32 %v9613_v60, %v7956_v5  ;;  %v8244_v45 = vld [vmem:[#allocation7 + $0x2f8] sm:$0xf0] }
 0x2f4   :  { %5386 = vmatpush.bf16.msrb.mxu1 %v8595_v11  ;;  %v9807_v11 = vld [vmem:[#allocation7 + $0x6b4] sm:$0xf0]  ;;  %5398 = vmatpush.bf16.msrb.mxu2 %v8739_v3  ;;  %v8322_v3 = vld [vmem:[#allocation7 + $0x388] sm:$0xf]  ;;  %v8675_v29 = vor.u32 %v9795_v43, %v8674_v2  ;;  %v8228_v56 = vld [vmem:[#allocation7 + $0x2d8] sm:$0xf0] }
 0x2f5   :  { %v8723_v52 = vor.u32 %v9807_v11, %v8722_v20  ;;  %5312 = vmatpush.bf16.msrb.mxu3 %v8783_v23  ;;  %v7940_v23 = vld [vmem:[#allocation7 + $0x98] sm:$0xf0]  ;;  %v9641_v20 = vld [vmem:[#allocation7 + $0x18c] sm:$0xf]  ;;  %v8258_v2 = vld [vmem:[#allocation7 + $0x308] sm:$0xf] }
 0x2f6   :  { %5374 = vmatpush.bf16.msrb.mxu0 %v8451_v21  ;;  %v8514_v21 = vld [vmem:[#allocation7 + $0x508] sm:$0xf]  ;;  %v8068_v11 = vld [vmem:[#allocation7 + $0x198] sm:$0xf0]  ;;  %v7943_v17 = vor.u32 %v9609_v51, %v7940_v23  ;;  %v9629_v5 = vld [vmem:[#allocation7 + $0x12c] sm:$0xf] }
 0x2f7   :  { %v8515_v32 = vor.u32 %v9755_v54, %v8514_v21  ;;  %v8071_v47 = vor.u32 %v9641_v20, %v8068_v11  ;;  %v9605_v21 = vld [vmem:[#allocation7 + $0x6c] sm:$0xf]  ;;  %v8659_v54 = vor.u32 %v9791_v15, %v8658_v13  ;;  %v7892_v60 = vld [vmem:[#allocation7 + $0x38] sm:$0xf0]  ;;  %v9691_v43 = vld [vmem:[#allocation7 + $0x314] sm:$0xf0] }
 0x2f8   :  { %5387 = vmatpush.bf16.msrb.mxu1 %v8579_v58  ;;  %v9621_v58 = vld [vmem:[#allocation7 + $0xec] sm:$0xf]  ;;  %v5148_v7 = vpop.f32.mrf.mxu2  ;;  %5399 = vmatpush.bf16.msrb.mxu2 %v8723_v52  ;;  %v7924_v52 = vld [vmem:[#allocation7 + $0x78] sm:$0xf0] }
 0x2f9   :  { %v7991_v44 = vor.u32 %v9621_v58, %v7988_v30  ;;  %5313 = vmatpush.bf16.msrb.mxu3 %v8767_v31  ;;  %v9637_v58 = vld [vmem:[#allocation7 + $0x16c] sm:$0xf]  ;;  %v8052_v30 = vld [vmem:[#allocation7 + $0x178] sm:$0xf0]  ;;  %v7927_v7 = vor.u32 %v9605_v21, %v7924_v52 }
 0x2fa   :  { %5375 = vmatpush.bf16.msrb.mxu0 %v8435_v34  ;;  %v5161_v34 = vpop.f32.mrf.mxu3  ;;  %v8055_v41 = vor.u32 %v9637_v58, %v8052_v30  ;;  %v9677_v51 = vld [vmem:[#allocation7 + $0x2ac] sm:$0xf]  ;;  %v8212_v23 = vld [vmem:[#allocation7 + $0x2b8] sm:$0xf0] }
 0x2fb   :  { %v9601_v34 = vld [vmem:[#allocation7 + $0x4c] sm:$0xf]  ;;  %v7876_v11 = vld [vmem:[#allocation7 + $0x18] sm:$0xf0] }
 0x2fc   :  { %5388 = vmatpush.bf16.msrb.mxu1 %v8563_v50  ;;  %v7972_v50 = vld [vmem:[#allocation7 + $0xd8] sm:$0xf0]  ;;  %5314 = vmatmul.bf16.vlgmr.msrb.gmra.mxu3 %v10310_v46  ;;  %v9593_v20 = vld [vmem:[#allocation7 + $0xc] sm:$0xf] }
 0x2fd   :  { %5358 = vmatpush.bf16.msra.mxu3 %v8371_v38  ;;  %v7975_v55 = vor.u32 %v9617_v49, %v7972_v50  ;;  %5400 = vmatpush.bf16.msrb.mxu2 %v8707_v25  ;;  %v8642_v38 = vld [vmem:[#allocation7 + $0x608] sm:$0xf]  ;;  %v9633_v25 = vld [vmem:[#allocation7 + $0x14c] sm:$0xf]  ;;  %v8004_v13 = vld [vmem:[#allocation7 + $0x118] sm:$0xf0] }
 0x2fe   :  { %5376 = vmatpush.bf16.msrb.mxu0 %v8419_v59  ;;  %v8103_v59 = vor.u32 %v9649_v10, %v8100_v0  ;;  %v8036_v10 = vld [vmem:[#allocation7 + $0x158] sm:$0xf0]  ;;  %v9749_v15 = vld [vmem:[#allocation7 + $0x4ec] sm:$0xf] }
 0x2ff   :  { %v8039_v57 = vor.u32 %v9633_v25, %v8036_v10  ;;  %v8628_v21 = vld [vmem:[#allocation7 + $0x5f8] sm:$0xf0]  ;;  %v9673_v58 = vld [vmem:[#allocation7 + $0x28c] sm:$0xf]  ;;  %v9839_v25 = vld [vmem:[#allocation7 + $0x7b4] sm:$0xf0] }
 0x300   :  { %5389 = vmatpush.bf16.msrb.mxu1 %v8547_v62  ;;  %v9645_v62 = vld [vmem:[#allocation7 + $0x1ac] sm:$0xf]  ;;  %v8196_v30 = vld [vmem:[#allocation7 + $0x298] sm:$0xf0] }
 0x301   :  { %5359 = vmatpush.bf16.msra.mxu3 %v8355_v14  ;;  %v8087_v6 = vor.u32 %v9645_v62, %v8084_v63  ;;  %5401 = vmatpush.bf16.msrb.mxu2 %v8691_v61  ;;  %v8020_v61 = vld [vmem:[#allocation7 + $0x138] sm:$0xf0] }
 0x302   :  { %5377 = vmatpush.bf16.msrb.mxu0 %v8403_v24  ;;  %v8323_v24 = vor.u32 %v9707_v22, %v8322_v3 }
 0x304   :  { %5390 = vmatpush.bf16.msrb.mxu1 %v8531_v18  ;;  %v8306_v18 = vld [vmem:[#allocation7 + $0x368] sm:$0xf] }
 0x305   :  { %5360 = vmatpush.bf16.msra.mxu3 %v8339_v36  ;;  %5402 = vmatpush.bf16.msrb.mxu2 %v8675_v29  ;;  %v8307_v33 = vor.u32 %v9703_v16, %v8306_v18  ;;  %v8023_v29 = vor.u32 %v9629_v5, %v8020_v61  ;;  %v8259_v18 = vor.u32 %v9691_v43, %v8258_v2  ;;  %v9835_v5 = vld [vmem:[#allocation7 + $0x794] sm:$0xf0]  ;;  %v8580_v2 = vld [vmem:[#allocation7 + $0x598] sm:$0xf0] }
 0x306   :  { %5378 = vmatpush.bf16.msrb.mxu0 %v8387_v8  ;;  %v5172_v31 = vpop.f32.mrf.mxu0  ;;  %v9787_v8 = vld [vmem:[#allocation7 + $0x614] sm:$0xf0]  ;;  %v8215_v16 = vor.u32 %v9677_v51, %v8212_v23  ;;  %v9733_v23 = vld [vmem:[#allocation7 + $0x46c] sm:$0xf] }
 0x307   :  { %v5173_v39 = vadd.f32 %v5172_v31, %v10316_v40  ;;  %v8643_v50 = vor.u32 %v9787_v8, %v8642_v38  ;;  %v8274_v40 = vld [vmem:[#allocation7 + $0x328] sm:$0xf]  ;;  %v9843_v38 = vld [vmem:[#allocation7 + $0x7d4] sm:$0xf0] }
 0x308   :  { %5391 = vmatpush.bf16.msrb.mxu1 %v8515_v32  ;;  %v5185_v42 = vpop.f32.mrf.mxu1  ;;  %v9699_v32 = vld [vmem:[#allocation7 + $0x354] sm:$0xf0]  ;;  %v8275_v63 = vor.u32 %v9695_v35, %v8274_v40  ;;  %v8596_v35 = vld [vmem:[#allocation7 + $0x5b8] sm:$0xf0] }
 0x309   :  { %5379 = vmatmul.bf16.vlgmr.msrb.gmra.mxu0 %v10272_v19  ;;  %5361 = vmatpush.bf16.msra.mxu3 %v8323_v24  ;;  %v10323_v49 = vadd.f32 %v5185_v42, %v5173_v39  ;;  %v8291_v0 = vor.u32 %v9699_v32, %v8290_v37  ;;  %v9625_v24 = vld [vmem:[#allocation7 + $0x10c] sm:$0xf]  ;;  %v8866_v37 = vld [vmem:[#allocation7 + $0x7c8] sm:$0xf]  ;;  %v8484_v42 = vld [vmem:[#allocation7 + $0x4d8] sm:$0xf0] }
 0x30a   :  { %5423 = vmatpush.bf16.msra.mxu0 %v7991_v44  ;;  %v9685_v44 = vld [vmem:[#allocation7 + $0x2ec] sm:$0xf]  ;;  %5403 = vmatpush.bf16.msrb.mxu2 %v8659_v54  ;;  %v7879_v54 = vor.u32 %v9593_v20, %v7876_v11  ;;  %v8007_v31 = vor.u32 %v9625_v24, %v8004_v13  ;;  %v8564_v24 = vld [vmem:[#allocation7 + $0x578] sm:$0xf0] }
 0x30b   :  { %5392 = vmatmul.bf16.vlgmr.msrb.gmra.mxu1 %v10274_v53  ;;  %v8247_v14 = vor.u32 %v9685_v44, %v8244_v45  ;;  %v9745_v39 = vld [vmem:[#allocation7 + $0x4cc] sm:$0xf]  ;;  %v8612_v44 = vld [vmem:[#allocation7 + $0x5d8] sm:$0xf0]  ;;  %v8867_v45 = vor.u32 %v9843_v38, %v8866_v37 }
 0x30c   :  { %5436 = vmatpush.bf16.msra.mxu1 %v8119_v48  ;;  %v7908_v48 = vld [vmem:[#allocation7 + $0x58] sm:$0xf0]  ;;  %v9777_v32 = vld [vmem:[#allocation7 + $0x5cc] sm:$0xf] }
 0x30d   :  { %5362 = vmatpush.bf16.msra.mxu3 %v8307_v33  ;;  %v7911_v12 = vor.u32 %v9601_v34, %v7908_v48  ;;  %v8180_v34 = vld [vmem:[#allocation7 + $0x278] sm:$0xf0]  ;;  %v8487_v48 = vor.u32 %v9745_v39, %v8484_v42  ;;  %v8615_v10 = vor.u32 %v9777_v32, %v8612_v44  ;;  %v9765_v11 = vld [vmem:[#allocation7 + $0x56c] sm:$0xf]  ;;  %v8786_v32 = vld [vmem:[#allocation7 + $0x728] sm:$0xf] }
 0x30e   :  { %5424 = vmatpush.bf16.msra.mxu0 %v7975_v55  ;;  %v9681_v55 = vld [vmem:[#allocation7 + $0x2cc] sm:$0xf]  ;;  %5404 = vmatpush.bf16.msrb.mxu2 %v8643_v50  ;;  %v5174_v62 = vpop.f32.mrf.mxu0  ;;  %v8850_v50 = vld [vmem:[#allocation7 + $0x7a8] sm:$0xf]  ;;  %v8420_v37 = vld [vmem:[#allocation7 + $0x458] sm:$0xf0] }
 0x30f   :  { %v8231_v36 = vor.u32 %v9681_v55, %v8228_v56  ;;  %v8851_v55 = vor.u32 %v9839_v25, %v8850_v50  ;;  %v9665_v56 = vld [vmem:[#allocation7 + $0x24c] sm:$0xf]  ;;  %v8548_v39 = vld [vmem:[#allocation7 + $0x558] sm:$0xf0] }
 0x310   :  { %5437 = vmatpush.bf16.msra.mxu1 %v8103_v59  ;;  %v9597_v59 = vld [vmem:[#allocation7 + $0x2c] sm:$0xf]  ;;  %v5187_v3 = vpop.f32.mrf.mxu1  ;;  %v8404_v25 = vld [vmem:[#allocation7 + $0x438] sm:$0xf0] }
 0x311   :  { %5363 = vmatpush.bf16.msra.mxu3 %v8291_v0  ;;  %v7895_v22 = vor.u32 %v9597_v59, %v7892_v60  ;;  %5405 = vmatmul.bf16.vlgmr.msrb.gmra.mxu2 %v10296_v28  ;;  %v9741_v0 = vld [vmem:[#allocation7 + $0x4ac] sm:$0xf]  ;;  %v8834_v60 = vld [vmem:[#allocation7 + $0x788] sm:$0xf]  ;;  %v8148_v3 = vld [vmem:[#allocation7 + $0x238] sm:$0xf0] }
 0x312   :  { %5425 = vmatpush.bf16.msra.mxu0 %v7959_v26  ;;  %5449 = vmatpush.bf16.msra.mxu2 %v8247_v14  ;;  %v8882_v26 = vld [vmem:[#allocation7 + $0x7e8] sm:$0xf]  ;;  %v8468_v14 = vld [vmem:[#allocation7 + $0x4b8] sm:$0xf0]  ;;  %v9737_v62 = vld [vmem:[#allocation7 + $0x48c] sm:$0xf]  ;;  %v8835_v43 = vor.u32 %v9835_v5, %v8834_v60 }
 0x313   :  { %v8471_v59 = vor.u32 %v9741_v0, %v8468_v14  ;;  %v9725_v50 = vld [vmem:[#allocation7 + $0x42c] sm:$0xf]  ;;  %v8532_v0 = vld [vmem:[#allocation7 + $0x538] sm:$0xf0] }
 0x314   :  { %5438 = vmatpush.bf16.msra.mxu1 %v8087_v6  ;;  %v9847_v6 = vld [vmem:[#allocation7 + $0x7f4] sm:$0xf0]  ;;  %v8372_v60 = vld [vmem:[#allocation7 + $0x3f8] sm:$0xf0]  ;;  %v9805_v5 = vld [vmem:[#allocation7 + $0x6ac] sm:$0xf] }
 0x315   :  { %5364 = vmatpush.bf16.msra.mxu3 %v8275_v63  ;;  %v8883_v52 = vor.u32 %v9847_v6, %v8882_v26  ;;  %v8452_v63 = vld [vmem:[#allocation7 + $0x498] sm:$0xf0]  ;;  %v9661_v26 = vld [vmem:[#allocation7 + $0x22c] sm:$0xf]  ;;  %v9831_v6 = vld [vmem:[#allocation7 + $0x774] sm:$0xf0] }
 0x316   :  { %5426 = vmatpush.bf16.msra.mxu0 %v7943_v17  ;;  %v8500_v17 = vld [vmem:[#allocation7 + $0x4f8] sm:$0xf0]  ;;  %5450 = vmatpush.bf16.msra.mxu2 %v8231_v36  ;;  %v9769_v36 = vld [vmem:[#allocation7 + $0x58c] sm:$0xf]  ;;  %v8151_v20 = vor.u32 %v9661_v26, %v8148_v3  ;;  %v9863_v26 = vld [vmem:[#allocation8 + $0x74] sm:$0xf0] }
 0x317   :  { %v8503_v33 = vor.u32 %v9749_v15, %v8500_v17  ;;  %v8583_v51 = vor.u32 %v9769_v36, %v8580_v2  ;;  %v8802_v17 = vld [vmem:[#allocation7 + $0x748] sm:$0xf]  ;;  %v9753_v36 = vld [vmem:[#allocation7 + $0x50c] sm:$0xf]  ;;  %v8516_v2 = vld [vmem:[#allocation7 + $0x518] sm:$0xf0] }
 0x318   :  { %5439 = vmatpush.bf16.msra.mxu1 %v8071_v47  ;;  %v9781_v47 = vld [vmem:[#allocation7 + $0x5ec] sm:$0xf] }
 0x319   :  { %v8631_v8 = vor.u32 %v9781_v47, %v8628_v21  ;;  %5365 = vmatpush.bf16.msra.mxu3 %v8259_v18  ;;  %v9657_v18 = vld [vmem:[#allocation7 + $0x20c] sm:$0xf] }
 0x31a   :  { %5427 = vmatpush.bf16.msra.mxu0 %v7927_v7  ;;  %5451 = vmatpush.bf16.msra.mxu2 %v8215_v16  ;;  %v8199_v7 = vor.u32 %v9673_v58, %v8196_v30  ;;  %v8132_v16 = vld [vmem:[#allocation7 + $0x218] sm:$0xf0] }
 0x31b   :  { %v8756_v58 = vld [vmem:[#allocation7 + $0x6f8] sm:$0xf0]  ;;  %v8135_v38 = vor.u32 %v9657_v18, %v8132_v16  ;;  %v9797_v18 = vld [vmem:[#allocation7 + $0x66c] sm:$0xf] }
 0x31c   :  { %5440 = vmatpush.bf16.msra.mxu1 %v8055_v41  ;;  %v9669_v41 = vld [vmem:[#allocation7 + $0x26c] sm:$0xf]  ;;  %5366 = vmatmul.bf16.vlgmr.msra.gmra.mxu3 %v10251_v9  ;;  %v8692_v16 = vld [vmem:[#allocation7 + $0x678] sm:$0xf0] }
 0x31d   :  { %5410 = vmatpush.bf16.msrb.mxu3 %v8883_v52  ;;  %v8183_v40 = vor.u32 %v9669_v41, %v8180_v34  ;;  %v9827_v52 = vld [vmem:[#allocation7 + $0x754] sm:$0xf0]  ;;  %v9809_v41 = vld [vmem:[#allocation7 + $0x6cc] sm:$0xf]  ;;  %v8740_v34 = vld [vmem:[#allocation7 + $0x6d8] sm:$0xf0] }
 0x31e   :  { %5428 = vmatpush.bf16.msra.mxu0 %v7911_v12  ;;  %5452 = vmatpush.bf16.msra.mxu2 %v8199_v7  ;;  %v9773_v12 = vld [vmem:[#allocation7 + $0x5ac] sm:$0xf]  ;;  %v8803_v42 = vor.u32 %v9827_v52, %v8802_v17 }
 0x31f   :  { %v8599_v61 = vor.u32 %v9773_v12, %v8596_v35  ;;  %v8743_v12 = vor.u32 %v9809_v41, %v8740_v34  ;;  %v8770_v35 = vld [vmem:[#allocation7 + $0x708] sm:$0xf] }
 0x320   :  { %5441 = vmatpush.bf16.msra.mxu1 %v8039_v57  ;;  %v8164_v57 = vld [vmem:[#allocation7 + $0x258] sm:$0xf0]  ;;  %v9857_v41 = vld [vmem:[#allocation8 + $0x44] sm:$0xf0] }
 0x321   :  { %5411 = vmatpush.bf16.msrb.mxu3 %v8867_v45  ;;  %v9823_v45 = vld [vmem:[#allocation7 + $0x734] sm:$0xf0] }
 0x322   :  { %5429 = vmatpush.bf16.msra.mxu0 %v7895_v22  ;;  %5453 = vmatpush.bf16.msra.mxu2 %v8183_v40  ;;  %v8818_v22 = vld [vmem:[#allocation7 + $0x768] sm:$0xf]  ;;  %v8787_v40 = vor.u32 %v9823_v45, %v8786_v32  ;;  %v9010_v32 = vld [vmem:[#allocation8 + $0xf0] sm:$0xf]  ;;  %v8922_v45 = vld [vmem:[#allocation8 + $0x40] sm:$0xf] }
 0x323   :  { %v8819_v15 = vor.u32 %v9831_v6, %v8818_v22 }
 0x324   :  { %5442 = vmatpush.bf16.msra.mxu1 %v8023_v29  ;;  %v8436_v29 = vld [vmem:[#allocation7 + $0x478] sm:$0xf0] }
 0x325   :  { %5412 = vmatpush.bf16.msrb.mxu3 %v8851_v55  ;;  %v8439_v21 = vor.u32 %v9733_v23, %v8436_v29  ;;  %v9819_v55 = vld [vmem:[#allocation7 + $0x714] sm:$0xf0]  ;;  %v8708_v23 = vld [vmem:[#allocation7 + $0x698] sm:$0xf0]  ;;  %v8519_v29 = vor.u32 %v9753_v36, %v8516_v2  ;;  %v8994_v2 = vld [vmem:[#allocation8 + $0xd0] sm:$0xf] }
 0x326   :  { %5430 = vmatpush.bf16.msra.mxu0 %v7879_v54  ;;  %v5224_v13 = vpop.f32.mrf.mxu0  ;;  %v9813_v54 = vld [vmem:[#allocation7 + $0x6ec] sm:$0xf]  ;;  %v8771_v3 = vor.u32 %v9819_v55, %v8770_v35  ;;  %v9855_v35 = vld [vmem:[#allocation8 + $0x34] sm:$0xf0] }
 0x327   :  { %v8759_v7 = vor.u32 %v9813_v54, %v8756_v58  ;;  %v8930_v54 = vld [vmem:[#allocation8 + $0x50] sm:$0xf]  ;;  %v9859_v58 = vld [vmem:[#allocation8 + $0x54] sm:$0xf0] }
 0x328   :  { %5443 = vmatpush.bf16.msra.mxu1 %v8007_v31  ;;  %v5237_v47 = vpop.f32.mrf.mxu1  ;;  %v8567_v31 = vor.u32 %v9765_v11, %v8564_v24  ;;  %v8938_v24 = vld [vmem:[#allocation8 + $0x60] sm:$0xf] }
 0x329   :  { %5431 = vmatmul.bf16.vlgmr.msra.gmra.mxu0 %v10245_v4  ;;  %v8167_v4 = vor.u32 %v9665_v56, %v8164_v57  ;;  %5413 = vmatpush.bf16.msrb.mxu3 %v8835_v43  ;;  %v10329_v30 = vadd.f32 %v5237_v47, %v5224_v13  ;;  %v9717_v56 = vld [vmem:[#allocation7 + $0x3ec] sm:$0xf]  ;;  %v8946_v43 = vld [vmem:[#allocation8 + $0x70] sm:$0xf]  ;;  %v9861_v13 = vld [vmem:[#allocation8 + $0x64] sm:$0xf0] }
 0x32a   :  { %5475 = vmatpush.bf16.msrb.mxu0 %v8503_v33  ;;  %v9729_v33 = vld [vmem:[#allocation7 + $0x44c] sm:$0xf]  ;;  %v8375_v22 = vor.u32 %v9717_v56, %v8372_v60  ;;  %v8947_v11 = vor.u32 %v9863_v26, %v8946_v43  ;;  %v8939_v52 = vor.u32 %v9861_v13, %v8938_v24  ;;  %v9875_v43 = vld [vmem:[#allocation8 + $0xd4] sm:$0xf0]  ;;  %v8906_v26 = vld [vmem:[#allocation8 + $0x20] sm:$0xf] }
 0x32b   :  { %5444 = vmatmul.bf16.vlgmr.msra.gmra.mxu1 %v10247_v1  ;;  %v8455_v1 = vor.u32 %v9737_v62, %v8452_v63  ;;  %5454 = vmatpush.bf16.msra.mxu2 %v8167_v4  ;;  %v8423_v44 = vor.u32 %v9729_v33, %v8420_v37  ;;  %v9721_v63 = vld [vmem:[#allocation7 + $0x40c] sm:$0xf]  ;;  %v8388_v4 = vld [vmem:[#allocation7 + $0x418] sm:$0xf0]  ;;  %v9851_v24 = vld [vmem:[#allocation8 + $0x14] sm:$0xf0] }
 0x32c   :  { %5488 = vmatpush.bf16.msrb.mxu1 %v8631_v8  ;;  %v9761_v8 = vld [vmem:[#allocation7 + $0x54c] sm:$0xf]  ;;  %v8391_v6 = vor.u32 %v9721_v63, %v8388_v4  ;;  %v8292_v4 = vld [vmem:[#allocation7 + $0x358] sm:$0xf0] }
 0x32d   :  { %5414 = vmatpush.bf16.msrb.mxu3 %v8819_v15  ;;  %v9709_v47 = vld [vmem:[#allocation7 + $0x3ac] sm:$0xf] }
 0x32e   :  { %5476 = vmatpush.bf16.msrb.mxu0 %v8487_v48  ;;  %v8551_v48 = vor.u32 %v9761_v8, %v8548_v39  ;;  %v5226_v14 = vpop.f32.mrf.mxu0  ;;  %v10335_v33 = vpop.f32.mrf.mxu2  ;;  %v9793_v8 = vld [vmem:[#allocation7 + $0x64c] sm:$0xf]  ;;  %v8676_v39 = vld [vmem:[#allocation7 + $0x658] sm:$0xf0] }
 0x32f   :  { %5455 = vmatpush.bf16.msra.mxu2 %v8151_v20  ;;  %v9713_v20 = vld [vmem:[#allocation7 + $0x3cc] sm:$0xf]  ;;  %v9002_v14 = vld [vmem:[#allocation8 + $0xe0] sm:$0xf] }
 0x330   :  { %5489 = vmatpush.bf16.msrb.mxu1 %v8615_v10  ;;  %v9757_v10 = vld [vmem:[#allocation7 + $0x52c] sm:$0xf]  ;;  %v5239_v57 = vpop.f32.mrf.mxu1 }
 0x331   :  { %5415 = vmatpush.bf16.msrb.mxu3 %v8803_v42  ;;  %v8535_v62 = vor.u32 %v9757_v10, %v8532_v0  ;;  %v8324_v42 = vld [vmem:[#allocation7 + $0x398] sm:$0xf0]  ;;  %v8923_v0 = vor.u32 %v9857_v41, %v8922_v45  ;;  %v8970_v41 = vld [vmem:[#allocation8 + $0xa0] sm:$0xf] }
 0x332   :  { %5477 = vmatpush.bf16.msrb.mxu0 %v8471_v59  ;;  %v8407_v59 = vor.u32 %v9725_v50, %v8404_v25  ;;  %v9701_v50 = vld [vmem:[#allocation7 + $0x36c] sm:$0xf]  ;;  %v8660_v25 = vld [vmem:[#allocation7 + $0x638] sm:$0xf0] }
 0x333   :  { %5456 = vmatpush.bf16.msra.mxu2 %v8135_v38  ;;  %v9705_v38 = vld [vmem:[#allocation7 + $0x38c] sm:$0xf]  ;;  %v8308_v10 = vld [vmem:[#allocation7 + $0x378] sm:$0xf0] }
 0x334   :  { %5490 = vmatpush.bf16.msrb.mxu1 %v8599_v61  ;;  %v8724_v61 = vld [vmem:[#allocation7 + $0x6b8] sm:$0xf0]  ;;  %v8311_v60 = vor.u32 %v9701_v50, %v8308_v10 }
 0x335   :  { %5416 = vmatpush.bf16.msrb.mxu3 %v8787_v40  ;;  %v9877_v40 = vld [vmem:[#allocation8 + $0xe4] sm:$0xf0] }
 0x336   :  { %5478 = vmatpush.bf16.msrb.mxu0 %v8455_v1  ;;  %5457 = vmatmul.bf16.vlgmr.msra.gmra.mxu2 %v10249_v27  ;;  %v8727_v1 = vor.u32 %v9805_v5, %v8724_v61  ;;  %v8356_v27 = vld [vmem:[#allocation7 + $0x3d8] sm:$0xf0]  ;;  %v9003_v55 = vor.u32 %v9877_v40, %v9002_v14  ;;  %v9697_v5 = vld [vmem:[#allocation7 + $0x34c] sm:$0xf]  ;;  %v8962_v14 = vld [vmem:[#allocation8 + $0x90] sm:$0xf] }
 0x337   :  { %5501 = vmatpush.bf16.msrb.mxu2 %v8759_v7  ;;  %v8359_v17 = vor.u32 %v9713_v20, %v8356_v27  ;;  %v8931_v7 = vor.u32 %v9859_v58, %v8930_v54  ;;  %v9785_v61 = vld [vmem:[#allocation7 + $0x60c] sm:$0xf]  ;;  %v8986_v20 = vld [vmem:[#allocation8 + $0xc0] sm:$0xf]  ;;  %v9873_v27 = vld [vmem:[#allocation8 + $0xc4] sm:$0xf0] }
 0x338   :  { %5491 = vmatpush.bf16.msrb.mxu1 %v8583_v51  ;;  %v9801_v51 = vld [vmem:[#allocation7 + $0x68c] sm:$0xf]  ;;  %v8987_v13 = vor.u32 %v9873_v27, %v8986_v20  ;;  %v8978_v58 = vld [vmem:[#allocation8 + $0xb0] sm:$0xf]  ;;  %v9867_v40 = vld [vmem:[#allocation8 + $0x94] sm:$0xf0] }
 0x339   :  { %5417 = vmatpush.bf16.msrb.mxu3 %v8771_v3  ;;  %v8711_v15 = vor.u32 %v9801_v51, %v8708_v23  ;;  %v9853_v3 = vld [vmem:[#allocation8 + $0x24] sm:$0xf0]  ;;  %v9693_v51 = vld [vmem:[#allocation7 + $0x32c] sm:$0xf]  ;;  %v8276_v23 = vld [vmem:[#allocation7 + $0x338] sm:$0xf0] }
 0x33a   :  { %5479 = vmatpush.bf16.msrb.mxu0 %v8439_v21  ;;  %v8340_v21 = vld [vmem:[#allocation7 + $0x3b8] sm:$0xf0]  ;;  %v9876_v27 = vld [vmem:[#allocation8 + $0xe4] sm:$0xf] }
 0x33b   :  { %5502 = vmatpush.bf16.msrb.mxu2 %v8743_v12  ;;  %v8343_v37 = vor.u32 %v9709_v47, %v8340_v21  ;;  %v8914_v12 = vld [vmem:[#allocation8 + $0x30] sm:$0xf]  ;;  %v8260_v47 = vld [vmem:[#allocation7 + $0x318] sm:$0xf0] }
 0x33c   :  { %5492 = vmatpush.bf16.msrb.mxu1 %v8567_v31  ;;  %5418 = vmatmul.bf16.vlgmr.msrb.gmra.mxu3 %v10310_v46  ;;  %v8695_v31 = vor.u32 %v9797_v18, %v8692_v16  ;;  %v8915_v36 = vor.u32 %v9855_v35, %v8914_v12  ;;  %v8279_v18 = vor.u32 %v9693_v51, %v8276_v23  ;;  %v9689_v16 = vld [vmem:[#allocation7 + $0x30c] sm:$0xf]  ;;  %v8852_v35 = vld [vmem:[#allocation7 + $0x7b8] sm:$0xf0] }
 0x33d   :  { %5462 = vmatpush.bf16.msra.mxu3 %v8375_v22  ;;  %v9837_v12 = vld [vmem:[#allocation7 + $0x7ac] sm:$0xf] }
 0x33e   :  { %5480 = vmatpush.bf16.msrb.mxu0 %v8423_v44  ;;  %v9879_v44 = vld [vmem:[#allocation8 + $0xf4] sm:$0xf0]  ;;  %v9829_v23 = vld [vmem:[#allocation7 + $0x76c] sm:$0xf] }
 0x33f   :  { %5503 = vmatpush.bf16.msrb.mxu2 %v8727_v1  ;;  %v9011_v34 = vor.u32 %v9879_v44, %v9010_v32  ;;  %v8995_v1 = vor.u32 %v9875_v43, %v8994_v2  ;;  %v8263_v32 = vor.u32 %v9689_v16, %v8260_v47  ;;  %v9825_v47 = vld [vmem:[#allocation7 + $0x74c] sm:$0xf] }
 0x340   :  { %5493 = vmatpush.bf16.msrb.mxu1 %v8551_v48  ;;  %v8327_v48 = vor.u32 %v9705_v38, %v8324_v42  ;;  %v8890_v38 = vld [vmem:[#allocation8] sm:$0xf]  ;;  %v9862_v42 = vld [vmem:[#allocation8 + $0x74] sm:$0xf] }
 0x341   :  { %5463 = vmatpush.bf16.msra.mxu3 %v8359_v17 }
 0x342   :  { %5481 = vmatpush.bf16.msrb.mxu0 %v8407_v59  ;;  %v5200_v59 = vpop.f32.mrf.mxu2 }
 0x343   :  { %5504 = vmatpush.bf16.msrb.mxu2 %v8711_v15  ;;  %v9858_v59 = vld [vmem:[#allocation8 + $0x54] sm:$0xf] }
 0x344   :  { %5494 = vmatpush.bf16.msrb.mxu1 %v8535_v62  ;;  %v8644_v62 = vld [vmem:[#allocation7 + $0x618] sm:$0xf0] }
 0x345   :  { %5464 = vmatpush.bf16.msra.mxu3 %v8343_v37  ;;  %v8647_v22 = vor.u32 %v9785_v61, %v8644_v62  ;;  %v8884_v37 = vld [vmem:[#allocation7 + $0x7f8] sm:$0xf0]  ;;  %v9833_v61 = vld [vmem:[#allocation7 + $0x78c] sm:$0xf]  ;;  %v8954_v62 = vld [vmem:[#allocation8 + $0x80] sm:$0xf] }
 0x346   :  { %5482 = vmatpush.bf16.msrb.mxu0 %v8391_v6  ;;  %v10337_v57 = vpop.f32.mrf.mxu0  ;;  %v8295_v6 = vor.u32 %v9697_v5, %v8292_v4  ;;  %v8855_v5 = vor.u32 %v9837_v12, %v8852_v35  ;;  %v9865_v4 = vld [vmem:[#allocation8 + $0x84] sm:$0xf0]  ;;  %v8772_v12 = vld [vmem:[#allocation7 + $0x718] sm:$0xf0] }
 0x347   :  { %5505 = vmatpush.bf16.msrb.mxu2 %v8695_v31  ;;  %v9871_v31 = vld [vmem:[#allocation8 + $0xb4] sm:$0xf0]  ;;  %v8955_v43 = vor.u32 %v9865_v4, %v8954_v62  ;;  %v9868_v4 = vld [vmem:[#allocation8 + $0xa4] sm:$0xf] }
 0x348   :  { %5495 = vmatpush.bf16.msrb.mxu1 %v8519_v29  ;;  %v10339_v63 = vpop.f32.mrf.mxu1  ;;  %v8907_v29 = vor.u32 %v9853_v3, %v8906_v26  ;;  %v9878_v26 = vld [vmem:[#allocation8 + $0xf4] sm:$0xf]  ;;  %v9012_v3 = vld [vmem:[#allocation8 + $0xf8] sm:$0xf0] }
 0x349   :  { %5483 = vmatmul.bf16.vlgmr.msrb.gmra.mxu0 %v10272_v19  ;;  %v8679_v19 = vor.u32 %v9793_v8, %v8676_v39  ;;  %5465 = vmatpush.bf16.msra.mxu3 %v8327_v48  ;;  %v9849_v8 = vld [vmem:[#allocation8 + $0x4] sm:$0xf0]  ;;  %v8979_v39 = vor.u32 %v9871_v31, %v8978_v58  ;;  %v8868_v48 = vld [vmem:[#allocation7 + $0x7d8] sm:$0xf0]  ;;  %v9874_v31 = vld [vmem:[#allocation8 + $0xd4] sm:$0xf] }
 0x34a   :  { %5927 = vmatpush.bf16.msra.mxu0 %v8947_v11  ;;  %v8898_v11 = vld [vmem:[#allocation8 + $0x10] sm:$0xf]  ;;  %v10341_v17 = vpop.f32.mrf.mxu2  ;;  %v8891_v45 = vor.u32 %v9849_v8, %v8890_v38 }
 0x34b   :  { %5496 = vmatmul.bf16.vlgmr.msrb.gmra.mxu1 %v10274_v53  ;;  %v9789_v53 = vld [vmem:[#allocation7 + $0x62c] sm:$0xf]  ;;  %5506 = vmatpush.bf16.msrb.mxu2 %v8679_v19  ;;  %v8899_v54 = vor.u32 %v9851_v24, %v8898_v11  ;;  %v9854_v24 = vld [vmem:[#allocation8 + $0x34] sm:$0xf] }
 0x34c   :  { %5940 = vmatpush.bf16.msra.mxu1 %v9011_v34  ;;  %v8663_v56 = vor.u32 %v9789_v53, %v8660_v25  ;;  %v9869_v34 = vld [vmem:[#allocation8 + $0xa4] sm:$0xf0]  ;;  %v9841_v19 = vld [vmem:[#allocation7 + $0x7cc] sm:$0xf]  ;;  %v9860_v25 = vld [vmem:[#allocation8 + $0x64] sm:$0xf] }
 0x34d   :  { %5466 = vmatpush.bf16.msra.mxu3 %v8311_v60  ;;  %v8971_v53 = vor.u32 %v9869_v34, %v8970_v41  ;;  %v8932_v60 = vld [vmem:[#allocation8 + $0x58] sm:$0xf0]  ;;  %v9004_v11 = vld [vmem:[#allocation8 + $0xe8] sm:$0xf0] }
 0x34e   :  { %5928 = vmatpush.bf16.msra.mxu0 %v8939_v52  ;;  %v5278_v15 = vpop.f32.mrf.mxu0  ;;  %v9845_v52 = vld [vmem:[#allocation7 + $0x7ec] sm:$0xf]  ;;  %v8935_v2 = vor.u32 %v9858_v59, %v8932_v60  ;;  %v8788_v34 = vld [vmem:[#allocation7 + $0x738] sm:$0xf0]  ;;  %v9870_v59 = vld [vmem:[#allocation8 + $0xb4] sm:$0xf] }
 0x34f   :  { %5507 = vmatpush.bf16.msrb.mxu2 %v8663_v56  ;;  %v8887_v44 = vor.u32 %v9845_v52, %v8884_v37  ;;  %v8963_v56 = vor.u32 %v9867_v40, %v8962_v14  ;;  %v9007_v15 = vor.u32 %v9876_v27, %v9004_v11  ;;  %v8996_v37 = vld [vmem:[#allocation8 + $0xd8] sm:$0xf0]  ;;  %v9821_v41 = vld [vmem:[#allocation7 + $0x72c] sm:$0xf]  ;;  %v9864_v27 = vld [vmem:[#allocation8 + $0x84] sm:$0xf] }
 0x350   :  { %5941 = vmatpush.bf16.msra.mxu1 %v9003_v55  ;;  %v5291_v21 = vpop.f32.mrf.mxu1  ;;  %v8791_v14 = vor.u32 %v9821_v41, %v8788_v34  ;;  %v9817_v40 = vld [vmem:[#allocation7 + $0x70c] sm:$0xf]  ;;  %v8980_v60 = vld [vmem:[#allocation8 + $0xb8] sm:$0xf0]  ;;  %v9042_v41 = vld [vmem:[#allocation8 + $0x130] sm:$0xf] }
 0x351   :  { %5467 = vmatpush.bf16.msra.mxu3 %v8295_v6  ;;  %v9015_v6 = vor.u32 %v9878_v26, %v9012_v3  ;;  %v5199_v21 = vadd.f32 %v10335_v33, %v10323_v49  ;;  %v8983_v62 = vor.u32 %v9870_v59, %v8980_v60  ;;  %v9866_v3 = vld [vmem:[#allocation8 + $0x94] sm:$0xf]  ;;  %v9887_v34 = vld [vmem:[#allocation8 + $0x134] sm:$0xf0]  ;;  %v9892_v59 = vld [vmem:[#allocation8 + $0x164] sm:$0xf] }
 0x352   :  { %5929 = vmatpush.bf16.msra.mxu0 %v8931_v7  ;;  %v8948_v7 = vld [vmem:[#allocation8 + $0x78] sm:$0xf0]  ;;  %v5252_v10 = vpop.f32.mrf.mxu2  ;;  %v9068_v60 = vld [vmem:[#allocation8 + $0x168] sm:$0xf0] }
 0x353   :  { %5508 = vmatpush.bf16.msrb.mxu2 %v8647_v22  ;;  %v8951_v50 = vor.u32 %v9862_v42, %v8948_v7  ;;  %v8924_v22 = vld [vmem:[#allocation8 + $0x48] sm:$0xf0]  ;;  %v8999_v7 = vor.u32 %v9874_v31, %v8996_v37 }
 0x354   :  { %5942 = vmatpush.bf16.msra.mxu1 %v8995_v1  ;;  %v9856_v1 = vld [vmem:[#allocation8 + $0x44] sm:$0xf]  ;;  %v8908_v42 = vld [vmem:[#allocation8 + $0x28] sm:$0xf0] }
 0x355   :  { %5468 = vmatpush.bf16.msra.mxu3 %v8279_v18  ;;  %v8927_v20 = vor.u32 %v9856_v1, %v8924_v22  ;;  %v8964_v1 = vld [vmem:[#allocation8 + $0x98] sm:$0xf0] }
 0x356   :  { %5930 = vmatpush.bf16.msra.mxu0 %v8923_v0  ;;  %5509 = vmatmul.bf16.vlgmr.msrb.gmra.mxu2 %v10296_v28  ;;  %v8940_v28 = vld [vmem:[#allocation8 + $0x68] sm:$0xf0]  ;;  %v8871_v0 = vor.u32 %v9841_v19, %v8868_v48  ;;  %v9872_v19 = vld [vmem:[#allocation8 + $0xc4] sm:$0xf]  ;;  %v9850_v48 = vld [vmem:[#allocation8 + $0x14] sm:$0xf]  ;;  %v8967_v22 = vor.u32 %v9866_v3, %v8964_v1 }
 0x357   :  { %v8943_v55 = vor.u32 %v9860_v25, %v8940_v28  ;;  %v9888_v3 = vld [vmem:[#allocation8 + $0x144] sm:$0xf]  ;;  %v9052_v1 = vld [vmem:[#allocation8 + $0x148] sm:$0xf0] }
 0x358   :  { %5943 = vmatpush.bf16.msra.mxu1 %v8987_v13  ;;  %v8916_v13 = vld [vmem:[#allocation8 + $0x38] sm:$0xf0] }
 0x359   :  { %5469 = vmatpush.bf16.msra.mxu3 %v8263_v32  ;;  %v8919_v58 = vor.u32 %v9854_v24, %v8916_v13  ;;  %v8956_v24 = vld [vmem:[#allocation8 + $0x88] sm:$0xf0] }
 0x35a   :  { %5931 = vmatpush.bf16.msra.mxu0 %v8915_v36  ;;  %v8836_v36 = vld [vmem:[#allocation7 + $0x798] sm:$0xf0]  ;;  %v10345_v51 = vpop.f32.mrf.mxu2  ;;  %v8959_v13 = vor.u32 %v9864_v27, %v8956_v24  ;;  %v9036_v24 = vld [vmem:[#allocation8 + $0x128] sm:$0xf0] }
 0x35c   :  { %5944 = vmatpush.bf16.msra.mxu1 %v8979_v39  ;;  %5470 = vmatmul.bf16.vlgmr.msra.gmra.mxu3 %v10251_v9  ;;  %v8839_v9 = vor.u32 %v9833_v61, %v8836_v36  ;;  %v9852_v39 = vld [vmem:[#allocation8 + $0x24] sm:$0xf]  ;;  %v8892_v61 = vld [vmem:[#allocation8 + $0x8] sm:$0xf0] }
 0x35d   :  { %5514 = vmatpush.bf16.msrb.mxu3 %v8887_v44  ;;  %v5211_v8 = vpop.f32.mrf.mxu3  ;;  %v8911_v33 = vor.u32 %v9852_v39, %v8908_v42  ;;  %v8972_v36 = vld [vmem:[#allocation8 + $0xa8] sm:$0xf0]  ;;  %v9889_v39 = vld [vmem:[#allocation8 + $0x144] sm:$0xf0] }
 0x35e   :  { %5932 = vmatpush.bf16.msra.mxu0 %v8907_v29  ;;  %v8820_v29 = vld [vmem:[#allocation7 + $0x778] sm:$0xf0]  ;;  %v5212_v32 = vadd.f32 %v5211_v8, %v5199_v21  ;;  %v8975_v26 = vor.u32 %v9868_v4, %v8972_v36  ;;  %v9050_v8 = vld [vmem:[#allocation8 + $0x140] sm:$0xf] }
 0x35f   :  { %v8823_v16 = vor.u32 %v9829_v23, %v8820_v29  ;;  %v9074_v29 = vld [vmem:[#allocation8 + $0x170] sm:$0xf]  ;;  %v9060_v4 = vld [vmem:[#allocation8 + $0x158] sm:$0xf0] }
 0x360   :  { %5945 = vmatpush.bf16.msra.mxu1 %v8971_v53  ;;  %vm5527_vm8 = vcmp.gt.f32.partialorder %v5212_v32, 0.0  ;;  %v5531_v49 = vmul.f32 0.2, %v5212_v32  ;;  %v8988_v53 = vld [vmem:[#allocation8 + $0xc8] sm:$0xf0] }
 0x361   :  { %5515 = vmatpush.bf16.msrb.mxu3 %v8871_v0  ;;  %v8991_v28 = vor.u32 %v9872_v19, %v8988_v53  ;;  %v9034_v19 = vld [vmem:[#allocation8 + $0x120] sm:$0xf] }
 0x362   :  { %5933 = vmatpush.bf16.msra.mxu0 %v8899_v54  ;;  %v8804_v54 = vld [vmem:[#allocation7 + $0x758] sm:$0xf0]  ;;  %v5304_v44 = vpop.f32.mrf.mxu2  ;;  %v5535_v25 = vsel %vm5527_vm8, %v5212_v32, %v5531_v49 }
 0x363   :  { %v5539_v10 = vpack.c.bf16 %v5535_v25, %v5535_v25  ;;  %v9026_v25 = vld [vmem:[#allocation8 + $0x110] sm:$0xf] }
 0x364   :  { %5946 = vmatpush.bf16.msra.mxu1 %v8963_v56  ;;  %v9848_v56 = vld [vmem:[#allocation8 + $0x4] sm:$0xf] }
 0x365   :  { %5516 = vmatpush.bf16.msrb.mxu3 %v8855_v5  ;;  %v5213_v5 = vpop.f32.mrf.mxu3 }
 0x366   :  { %5934 = vmatpush.bf16.msra.mxu0 %v8891_v45  ;;  %v5328_v18 = vpop.f32.mrf.mxu0  ;;  %v8807_v45 = vor.u32 %v9825_v47, %v8804_v54  ;;  %v9893_v47 = vld [vmem:[#allocation8 + $0x164] sm:$0xf0]  ;;  %v9891_v54 = vld [vmem:[#allocation8 + $0x154] sm:$0xf0]  ;;  %v9071_v5 = vor.u32 %v9892_v59, %v9068_v60  ;;  %v9090_v59 = vld [vmem:[#allocation8 + $0x190] sm:$0xf] }
 0x367   :  { %v9899_v60 = vld [vmem:[#allocation8 + $0x194] sm:$0xf0] }
 0x368   :  { %5947 = vmatpush.bf16.msra.mxu1 %v8955_v43  ;;  %v5341_v52 = vpop.f32.mrf.mxu1  ;;  %v8895_v43 = vor.u32 %v9848_v56, %v8892_v61 }
 0x369   :  { %5517 = vmatpush.bf16.msrb.mxu3 %v8839_v9  ;;  %v10349_v38 = vadd.f32 %v5341_v52, %v5328_v18  ;;  %5935 = vmatmul.bf16.vlgmr.msra.gmra.mxu0 %v5539_v10  ;;  %v5251_v9 = vadd.f32 %v10341_v17, %v10329_v30  ;;  %v9058_v52 = vld [vmem:[#allocation8 + $0x150] sm:$0xf] }
 0x36a   :  { %5979 = vmatpush.bf16.msrb.mxu0 %v8951_v50  ;;  %v8900_v50 = vld [vmem:[#allocation8 + $0x18] sm:$0xf0]  ;;  %v9059_v31 = vor.u32 %v9891_v54, %v9058_v52  ;;  %v9020_v52 = vld [vmem:[#allocation8 + $0x108] sm:$0xf0] }
 0x36c   :  { %5992 = vmatpush.bf16.msrb.mxu1 %v9015_v6 }
 0x36d   :  { %5518 = vmatpush.bf16.msrb.mxu3 %v8823_v16  ;;  %v5263_v6 = vpop.f32.mrf.mxu3  ;;  %v9066_v16 = vld [vmem:[#allocation8 + $0x160] sm:$0xf] }
 0x36e   :  { %5980 = vmatpush.bf16.msrb.mxu0 %v8943_v55  ;;  %v5330_v0 = vpop.f32.mrf.mxu0  ;;  %v8903_v55 = vor.u32 %v9850_v48, %v8900_v50  ;;  %v5264_v23 = vadd.f32 %v5263_v6, %v5251_v9  ;;  %v9067_v30 = vor.u32 %v9893_v47, %v9066_v16  ;;  %v9885_v48 = vld [vmem:[#allocation8 + $0x124] sm:$0xf0]  ;;  %v9055_v6 = vor.u32 %v9888_v3, %v9052_v1  ;;  %v9882_v16 = vld [vmem:[#allocation8 + $0x114] sm:$0xf]  ;;  %v9028_v47 = vld [vmem:[#allocation8 + $0x118] sm:$0xf0] }
 0x36f   :  { %v9035_v53 = vor.u32 %v9885_v48, %v9034_v19  ;;  %v9018_v0 = vld [vmem:[#allocation8 + $0x100] sm:$0xf]  ;;  %v9908_v3 = vld [vmem:[#allocation8 + $0x1e4] sm:$0xf]  ;;  %v9132_v1 = vld [vmem:[#allocation8 + $0x1e8] sm:$0xf0] }
 0x370   :  { %5993 = vmatpush.bf16.msrb.mxu1 %v9007_v15  ;;  %v5343_v35 = vpop.f32.mrf.mxu1  ;;  %v5277_v18 = vadd.f32 %v10337_v57, %v5264_v23  ;;  %v9886_v23 = vld [vmem:[#allocation8 + $0x134] sm:$0xf]  ;;  %v9114_v19 = vld [vmem:[#allocation8 + $0x1c0] sm:$0xf] }
 0x371   :  { %5519 = vmatpush.bf16.msrb.mxu3 %v8807_v45  ;;  %v9076_v35 = vld [vmem:[#allocation8 + $0x178] sm:$0xf0] }
 0x372   :  { %5981 = vmatpush.bf16.msrb.mxu0 %v8935_v2  ;;  %v8775_v2 = vor.u32 %v9817_v40, %v8772_v12  ;;  %v10354_v15 = vpop.f32.mrf.mxu2  ;;  %v5290_v17 = vadd.f32 %v10339_v63, %v5277_v18  ;;  %v9894_v12 = vld [vmem:[#allocation8 + $0x174] sm:$0xf] }
 0x374   :  { %5994 = vmatpush.bf16.msrb.mxu1 %v8999_v7  ;;  %v5303_v57 = vadd.f32 %v10345_v51, %v5290_v17  ;;  %v9051_v7 = vor.u32 %v9889_v39, %v9050_v8  ;;  %v9880_v17 = vld [vmem:[#allocation8 + $0x104] sm:$0xf] }
 0x375   :  { %5520 = vmatpush.bf16.msrb.mxu3 %v8791_v14  ;;  %v5265_v21 = vpop.f32.mrf.mxu3  ;;  %v9881_v14 = vld [vmem:[#allocation8 + $0x104] sm:$0xf0] }
 0x376   :  { %5982 = vmatpush.bf16.msrb.mxu0 %v8927_v20  ;;  %v9895_v20 = vld [vmem:[#allocation8 + $0x174] sm:$0xf0]  ;;  %v9019_v40 = vor.u32 %v9881_v14, %v9018_v0  ;;  %v9031_v21 = vor.u32 %v9882_v16, %v9028_v47  ;;  %v9108_v16 = vld [vmem:[#allocation8 + $0x1b8] sm:$0xf0] }
 0x377   :  { %v9075_v11 = vor.u32 %v9895_v20, %v9074_v29  ;;  %v9044_v29 = vld [vmem:[#allocation8 + $0x138] sm:$0xf0] }
 0x378   :  { %5995 = vmatpush.bf16.msrb.mxu1 %v8991_v28  ;;  %v9883_v28 = vld [vmem:[#allocation8 + $0x114] sm:$0xf0]  ;;  %v9047_v27 = vor.u32 %v9886_v23, %v9044_v29  ;;  %v9124_v23 = vld [vmem:[#allocation8 + $0x1d8] sm:$0xf0] }
 0x379   :  { %5521 = vmatpush.bf16.msrb.mxu3 %v8775_v2  ;;  %5953 = vmatpush.bf16.msra.mxu2 %v9075_v11  ;;  %v9884_v11 = vld [vmem:[#allocation8 + $0x124] sm:$0xf] }
 0x37a   :  { %5983 = vmatpush.bf16.msrb.mxu0 %v8919_v58  ;;  %v5356_v37 = vpop.f32.mrf.mxu2 }
 0x37b   :  { %v9138_v37 = vld [vmem:[#allocation8 + $0x1f0] sm:$0xf] }
 0x37c   :  { %5996 = vmatpush.bf16.msrb.mxu1 %v8983_v62  ;;  %5522 = vmatmul.bf16.vlgmr.msrb.gmra.mxu3 %v10310_v46  ;;  %v9890_v62 = vld [vmem:[#allocation8 + $0x154] sm:$0xf] }
 0x37d   :  { %5954 = vmatpush.bf16.msra.mxu2 %v9067_v30  ;;  %v9063_v2 = vor.u32 %v9890_v62, %v9060_v4  ;;  %v5355_v30 = vadd.f32 %v10354_v15, %v10349_v38  ;;  %v9122_v15 = vld [vmem:[#allocation8 + $0x1d0] sm:$0xf]  ;;  %v9897_v62 = vld [vmem:[#allocation8 + $0x184] sm:$0xf0]  ;;  %v9910_v4 = vld [vmem:[#allocation8 + $0x1f4] sm:$0xf] }
 0x37e   :  { %5984 = vmatpush.bf16.msrb.mxu0 %v8911_v33  ;;  %v9043_v33 = vor.u32 %v9887_v34, %v9042_v41  ;;  %v9907_v41 = vld [vmem:[#allocation8 + $0x1d4] sm:$0xf0] }
 0x37f   :  { %v5315_v42 = vpop.f32.mrf.mxu3  ;;  %v9123_v34 = vor.u32 %v9907_v41, %v9122_v15 }
 0x380   :  { %5997 = vmatpush.bf16.msrb.mxu1 %v8975_v26  ;;  %v5316_v32 = vadd.f32 %v5315_v42, %v5303_v57  ;;  %v9911_v57 = vld [vmem:[#allocation8 + $0x1f4] sm:$0xf0] }
 0x381   :  { %5955 = vmatpush.bf16.msra.mxu2 %v9059_v31  ;;  %v9023_v31 = vor.u32 %v9880_v17, %v9020_v52  ;;  %v9139_v8 = vor.u32 %v9911_v57, %v9138_v37 }
 0x382   :  { %5985 = vmatpush.bf16.msrb.mxu0 %v8903_v55  ;;  %vm5528_vm9 = vcmp.gt.f32.partialorder %v5316_v32, 0.0  ;;  %v5532_v44 = vmul.f32 0.2, %v5316_v32  ;;  %v9079_v55 = vor.u32 %v9894_v12, %v9076_v35  ;;  %v9901_v12 = vld [vmem:[#allocation8 + $0x1a4] sm:$0xf0] }
 0x383   :  { %5966 = vmatpush.bf16.msra.mxu3 %v9139_v8 }
 0x384   :  { %5998 = vmatpush.bf16.msrb.mxu1 %v8967_v22  ;;  %v5536_v49 = vsel %vm5528_vm9, %v5316_v32, %v5532_v44  ;;  %v9909_v32 = vld [vmem:[#allocation8 + $0x1e4] sm:$0xf0] }
 0x385   :  { %5956 = vmatpush.bf16.msra.mxu2 %v9051_v7  ;;  %v5540_v50 = vpack.c.bf16 %v5536_v49, %v5536_v49  ;;  %v9130_v7 = vld [vmem:[#allocation8 + $0x1e0] sm:$0xf] }
 0x386   :  { %5986 = vmatpush.bf16.msrb.mxu0 %v8895_v43  ;;  %v10357_v46 = vpop.f32.mrf.mxu0  ;;  %v9131_v44 = vor.u32 %v9909_v32, %v9130_v7  ;;  %v9084_v7 = vld [vmem:[#allocation8 + $0x188] sm:$0xf0] }
 0x387   :  { %v5317_v51 = vpop.f32.mrf.mxu3  ;;  %5948 = vmatmul.bf16.vlgmr.msra.gmra.mxu1 %v5540_v50 }
 0x388   :  { %5999 = vmatpush.bf16.msrb.mxu1 %v8959_v13  ;;  %v10360_v58 = vpop.f32.mrf.mxu1  ;;  %v9039_v13 = vor.u32 %v9884_v11, %v9036_v24  ;;  %5967 = vmatpush.bf16.msra.mxu3 %v9131_v44  ;;  %v9116_v11 = vld [vmem:[#allocation8 + $0x1c8] sm:$0xf0] }
 0x389   :  { %5987 = vmatmul.bf16.vlgmr.msrb.gmra.mxu0 %v5539_v10  ;;  %5957 = vmatpush.bf16.msra.mxu2 %v9043_v33  ;;  %v9027_v10 = vor.u32 %v9883_v28, %v9026_v25  ;;  %v9106_v28 = vld [vmem:[#allocation8 + $0x1b0] sm:$0xf] }
 0x38c   :  { %5968 = vmatpush.bf16.msra.mxu3 %v9123_v34 }
 0x38d   :  { %5958 = vmatpush.bf16.msra.mxu2 %v9035_v53 }
 0x38e   :  { %v5382_v45 = vpop.f32.mrf.mxu0 }
 0x390   :  { %v5395_v63 = vpop.f32.mrf.mxu1 }
 0x391   :  { %5959 = vmatpush.bf16.msra.mxu2 %v9027_v10 }
 0x394   :  { %v5406_v56 = vpop.f32.mrf.mxu2 }
 0x395   :  { %5960 = vmatpush.bf16.msra.mxu2 %v9019_v40  ;;  %v9098_v40 = vld [vmem:[#allocation8 + $0x1a0] sm:$0xf] }
 0x397   :  { %6000 = vmatmul.bf16.vlgmr.msrb.gmra.mxu1 %v5540_v50 }
 0x399   :  { %6005 = vmatpush.bf16.msrb.mxu2 %v9079_v55  ;;  %v9099_v55 = vor.u32 %v9901_v12, %v9098_v40 }
 0x39c   :  { %v5408_v26 = vpop.f32.mrf.mxu2 }
 0x39d   :  { %6006 = vmatpush.bf16.msrb.mxu2 %v9071_v5  ;;  %v9091_v5 = vor.u32 %v9899_v60, %v9090_v59 }
 0x39f   :  { %v5367_v22 = vpop.f32.mrf.mxu3 }
 0x3a0   :  { %v5368_v54 = vadd.f32 %v5367_v22, %v5355_v30  ;;  %v9100_v30 = vld [vmem:[#allocation8 + $0x1a8] sm:$0xf0] }
 0x3a1   :  { %6007 = vmatpush.bf16.msrb.mxu2 %v9063_v2 }
 0x3a2   :  { %v5381_v39 = vadd.f32 %v10357_v46, %v5368_v54  ;;  %v9905_v46 = vld [vmem:[#allocation8 + $0x1c4] sm:$0xf0]  ;;  %v9898_v54 = vld [vmem:[#allocation8 + $0x194] sm:$0xf] }
 0x3a3   :  { %v9115_v50 = vor.u32 %v9905_v46, %v9114_v19 }
 0x3a4   :  { %v5394_v38 = vadd.f32 %v10360_v58, %v5381_v39  ;;  %v9903_v58 = vld [vmem:[#allocation8 + $0x1b4] sm:$0xf0]  ;;  %v9896_v39 = vld [vmem:[#allocation8 + $0x184] sm:$0xf] }
 0x3a5   :  { %6008 = vmatpush.bf16.msrb.mxu2 %v9055_v6  ;;  %5969 = vmatpush.bf16.msra.mxu3 %v9115_v50  ;;  %v9107_v14 = vor.u32 %v9903_v58, %v9106_v28  ;;  %v9135_v6 = vor.u32 %v9908_v3, %v9132_v1  ;;  %v9087_v44 = vor.u32 %v9896_v39, %v9084_v7 }
 0x3a6   :  { %v5432_v61 = vpop.f32.mrf.mxu0  ;;  %v5407_v49 = vadd.f32 %v5406_v56, %v5394_v38 }
 0x3a7   :  { %v5369_v18 = vpop.f32.mrf.mxu3 }
 0x3a8   :  { %v5445_v36 = vpop.f32.mrf.mxu1  ;;  %v9902_v18 = vld [vmem:[#allocation8 + $0x1b4] sm:$0xf] }
 0x3a9   :  { %v10363_v43 = vadd.f32 %v5445_v36, %v5432_v61  ;;  %6009 = vmatpush.bf16.msrb.mxu2 %v9047_v27  ;;  %5970 = vmatpush.bf16.msra.mxu3 %v9107_v14  ;;  %v9082_v61 = vld [vmem:[#allocation8 + $0x180] sm:$0xf]  ;;  %v9140_v36 = vld [vmem:[#allocation8 + $0x1f8] sm:$0xf0]  ;;  %v9904_v27 = vld [vmem:[#allocation8 + $0x1c4] sm:$0xf]  ;;  %v9111_v47 = vor.u32 %v9902_v18, %v9108_v16 }
 0x3aa   :  { %v9083_v2 = vor.u32 %v9897_v62, %v9082_v61  ;;  %v9143_v26 = vor.u32 %v9910_v4, %v9140_v36 }
 0x3ad   :  { %6010 = vmatpush.bf16.msrb.mxu2 %v9039_v13  ;;  %5971 = vmatpush.bf16.msra.mxu3 %v9099_v55  ;;  %v9119_v13 = vor.u32 %v9904_v27, %v9116_v11 }
 0x3ae   :  { %v5434_v9 = vpop.f32.mrf.mxu0 }
 0x3af   :  { %v9906_v9 = vld [vmem:[#allocation8 + $0x1d4] sm:$0xf] }
 0x3b0   :  { %v5447_v20 = vpop.f32.mrf.mxu1  ;;  %v9127_v29 = vor.u32 %v9906_v9, %v9124_v23 }
 0x3b1   :  { %6011 = vmatpush.bf16.msrb.mxu2 %v9031_v21  ;;  %5972 = vmatpush.bf16.msra.mxu3 %v9091_v5  ;;  %v9900_v21 = vld [vmem:[#allocation8 + $0x1a4] sm:$0xf] }
 0x3b2   :  { %v9103_v17 = vor.u32 %v9900_v21, %v9100_v30 }
 0x3b5   :  { %6012 = vmatpush.bf16.msrb.mxu2 %v9023_v31  ;;  %5973 = vmatpush.bf16.msra.mxu3 %v9083_v2  ;;  %v9092_v31 = vld [vmem:[#allocation8 + $0x198] sm:$0xf0] }
 0x3b6   :  { %v9095_v37 = vor.u32 %v9898_v54, %v9092_v31 }
 0x3b9   :  { %v10368_v42 = vpop.f32.mrf.mxu2  ;;  %6018 = vmatpush.bf16.msrb.mxu3 %v9143_v26 }
 0x3ba   :  { %v5459_v57 = vadd.f32 %v10368_v42, %v10363_v43 }
 0x3bd   :  { %6019 = vmatpush.bf16.msrb.mxu3 %v9135_v6 }
 0x3bf   :  { %v5419_v48 = vpop.f32.mrf.mxu3 }
 0x3c0   :  { %v5420_v53 = vadd.f32 %v5419_v48, %v5407_v49 }
 0x3c1   :  { %v5460_v33 = vpop.f32.mrf.mxu2  ;;  %6020 = vmatpush.bf16.msrb.mxu3 %v9127_v29 }
 0x3c2   :  { %vm5529_vm10 = vcmp.gt.f32.partialorder %v5420_v53, 0.0  ;;  %v5533_v51 = vmul.f32 0.2, %v5420_v53 }
 0x3c4   :  { %v5537_v0 = vsel %vm5529_vm10, %v5420_v53, %v5533_v51 }
 0x3c5   :  { %v5541_v35 = vpack.c.bf16 %v5537_v0, %v5537_v0  ;;  %6021 = vmatpush.bf16.msrb.mxu3 %v9119_v13 }
 0x3c6   :  { %v10370_v45 = vpop.f32.mrf.mxu0 }
 0x3c7   :  { %v5421_v56 = vpop.f32.mrf.mxu3  ;;  %5961 = vmatmul.bf16.vlgmr.msra.gmra.mxu2 %v5541_v35 }
 0x3c8   :  { %v10373_v63 = vpop.f32.mrf.mxu1 }
 0x3c9   :  { %6022 = vmatpush.bf16.msrb.mxu3 %v9111_v47 }
 0x3cd   :  { %6023 = vmatpush.bf16.msrb.mxu3 %v9103_v17 }
 0x3ce   :  { %v5486_v25 = vpop.f32.mrf.mxu0 }
 0x3d0   :  { %v5499_v10 = vpop.f32.mrf.mxu1 }
 0x3d1   :  { %6024 = vmatpush.bf16.msrb.mxu3 %v9095_v37 }
 0x3d5   :  { %6025 = vmatpush.bf16.msrb.mxu3 %v9087_v44 }
 0x3d7   :  { %6013 = vmatmul.bf16.vlgmr.msrb.gmra.mxu2 %v5541_v35  ;;  %v6037_v35 = vld [vmem:[#allocation10] sm:$0x3] }
 0x3d8   :  { %v6038_v56 = vunpack.c.l.bf16 %v6037_v35 }
 0x3d9   :  { %v5510_v22 = vpop.f32.mrf.mxu2 }
 0x3da   :  { %v6040_v60 = vperm.slane %v6038_v56, 0  ;;  %v6041_v5 = vperm.slane %v6038_v56, 2 }
 0x3dc   :  { %v6044_v2 = vperm.slane %v6040_v60, 0  ;;  %v6045_v26 = vperm.slane %v6041_v5, 0 }
 0x3df   :  { %v5471_v24 = vpop.f32.mrf.mxu3 }
 0x3e0   :  { %v5472_v32 = vadd.f32 %v5471_v24, %v5459_v57 }
 0x3e1   :  { %v5512_v20 = vpop.f32.mrf.mxu2 }
 0x3e2   :  { %v5485_v38 = vadd.f32 %v10370_v45, %v5472_v32  ;;  %v6052_v20 = vstv %s10390_s5 }
 0x3e4   :  { %v5498_v41 = vadd.f32 %v10373_v63, %v5485_v38 }
 0x3e6   :  { %v5936_v8 = vpop.f32.mrf.mxu0  ;;  %v5511_v34 = vadd.f32 %v5510_v22, %v5498_v41 }
 0x3e7   :  { %v5473_v52 = vpop.f32.mrf.mxu3 }
 0x3ee   :  { %v5938_v15 = vpop.f32.mrf.mxu0 }
 0x3ff   :  { %v5523_v49 = vpop.f32.mrf.mxu3 }
 0x400   :  { %v5524_v33 = vadd.f32 %v5523_v49, %v5511_v34 }
 0x402   :  { %vm5530_vm11 = vcmp.gt.f32.partialorder %v5524_v33, 0.0  ;;  %v5534_v46 = vmul.f32 0.2, %v5524_v33 }
 0x404   :  { %v5538_v48 = vsel %vm5530_vm11, %v5524_v33, %v5534_v46  ;;  %v5949_v53 = vpop.f32.mrf.mxu1 }
 0x405   :  { %v5542_v43 = vpack.c.bf16 %v5538_v48, %v5538_v48  ;;  %v5950_v51 = vadd.f32 %v5949_v53, %v5936_v8 }
 0x406   :  { %v5988_v19 = vpop.f32.mrf.mxu0 }
 0x407   :  { %v5525_v42 = vpop.f32.mrf.mxu3  ;;  %5974 = vmatmul.bf16.vlgmr.msra.gmra.mxu3 %v5542_v43 }
 0x40c   :  { %v5951_v25 = vpop.f32.mrf.mxu1 }
 0x40e   :  { %v5990_v50 = vpop.f32.mrf.mxu0 }
 0x414   :  { %v6001_v28 = vpop.f32.mrf.mxu1 }
 0x415   :  { %v6002_v45 = vadd.f32 %v6001_v28, %v5988_v19 }
 0x417   :  { %6026 = vmatmul.bf16.vlgmr.msrb.gmra.mxu3 %v5542_v43 }
 0x41c   :  { %v6003_v10 = vpop.f32.mrf.mxu1 }
 0x44a   :  { %v5962_v58 = vpop.f32.mrf.mxu2 }
 0x44b   :  { %v5963_v63 = vadd.f32 %v5962_v58, %v5950_v51 }
 0x452   :  { %v5964_v0 = vpop.f32.mrf.mxu2 }
 0x45a   :  { %v6014_v14 = vpop.f32.mrf.mxu2 }
 0x45b   :  { %v6015_v61 = vadd.f32 %v6014_v14, %v6002_v45 }
 0x462   :  { %v6016_v40 = vpop.f32.mrf.mxu2 }
 0x48a   :  { %v5975_v12 = vpop.f32.mrf.mxu3 }
 0x48b   :  { %v5976_v59 = vadd.f32 %v5975_v12, %v5963_v63 }
 0x48d   :  { %v6033_v62 = vmul.f32 0.2, %v5976_v59  ;;  %vm6031_vm12 = vcmp.gt.f32.partialorder %v5976_v59, 0.0 }
 0x48f   :  { %v6035_v1 = vsel %vm6031_vm12, %v5976_v59, %v6033_v62 }
 0x490   :  { %v6046_v6 = vmul.f32 %v6044_v2, %v6035_v1 }
 0x492   :  { %v5977_v55 = vpop.f32.mrf.mxu3 }
 0x49a   :  { %v6027_v4 = vpop.f32.mrf.mxu3 }
 0x49b   :  { %v6028_v36 = vadd.f32 %v6027_v4, %v6015_v61 }
 0x49d   :  { %vm6032_vm13 = vcmp.gt.f32.partialorder %v6028_v36, 0.0  ;;  %v6034_v3 = vmul.f32 0.2, %v6028_v36 }
 0x49f   :  { %v6036_v22 = vsel %vm6032_vm13, %v6028_v36, %v6034_v3 }
 0x4a0   :  { %v6047_v9 = vmul.f32 %v6045_v26, %v6036_v22 }
 0x4a2   :  { %v6029_v23 = vpop.f32.mrf.mxu3  ;;  %v6048_v29 = vadd.f32 %v6047_v9, %v6046_v6 }
 0x4a4   :  { %6049 = vadd.xlane.f32.xlu0 %v6048_v29 }
 0x517   :  { %v6050_v27 = vpop.xlane.xlu0 %6049 }
 0x518   :  { %v6053_v11 = vadd.f32 %v6052_v20, %v6050_v27 }
 0x51a   :  { %v6054_v24 = vand.u32 2147483647, %v6053_v11  ;;  %vm6060_vm15 = vcmp.ge.f32.partialorder %v6053_v11, 0.0 }
 0x51c   :  { %v6055_v13 = vsub.f32 0.0, %v6054_v24 }
 0x51e   :  { %v6056_v18 = vmul.f32 1.442695, %v6055_v13 }
 0x520   :  { %9923 = vpow2.f32 %v6056_v18 }
 0x526   :  { %v9924_v16 = vpop.eup %9923 }
 0x527   :  { %v6058_v47 = vadd.f32 1.0, %v9924_v16 }
 0x529   :  { %9925 = vrcp.f32 %v6058_v47 }
 0x52f   :  { %v9926_v21 = vpop.eup %9925 }
 0x530   :  { %v6061_v30 = vmul.f32 %v9926_v21, %v9924_v16 }
 0x532   :  { %v6062_v17 = vsel %vm6060_vm15, %v9926_v21, %v6061_v30 }
 0x533   :  { %6064 = vst.msk [vmem:[%s10391_s6] sm:$0xff] %vm6063_vm14, %v6062_v17 }
 0x534   :  { %6069 = vsyncpa [#allocation4], 1 }
 0x535   :  { %6070 = vsyncpa [#allocation6], 1 }
 0x536   :  { %6071 = vsyncpa [#allocation9], 1 }

</bundles_post_ra>
